<compile_context>
chip_gen: v6e
topology: v6e:2x2x1
jax: 0.10.0
libtpu: 0.0.40
codegen_flags: <defaults>
</compile_context>

<pallas_src>
import functools

import jax
import jax.numpy as jnp
from jax import lax
from jax.experimental import pallas as pl

LN_EPS = 1e-5        # nn.LayerNorm default
FAVOR_EPS = 1e-4     # performer_pytorch softmax_kernel eps


# ----------------------------------------------------------------------------
# In-kernel building blocks (take f32 values + parameter *refs*)
# ----------------------------------------------------------------------------
def _linear(x, wb, activation=None):
    w, b = wb
    y = jnp.dot(x, w[...], preferred_element_type=jnp.float32) + b[...]
    if activation == "relu":
        y = jnp.maximum(y, 0.0)
    elif activation == "sigmoid":
        y = jax.nn.sigmoid(y)
    elif activation == "gelu":
        # TODO(synk): nn.GELU() default is exact-erf; tanh approximation used here
        # because erf lowering inside Mosaic kernels is not guaranteed (EUP tanh).
        y = jax.nn.gelu(y, approximate=True)
    return y


def _layernorm(x, gb):
    g, b = gb
    mu = jnp.mean(x, axis=-1, keepdims=True)
    var = jnp.mean((x - mu) ** 2, axis=-1, keepdims=True)
    return (x - mu) * lax.rsqrt(var + LN_EPS) * g[...] + b[...]


def _favor_head(q, k, v, proj):
    """Non-causal FAVOR+ attention for one head (performer_pytorch softmax_kernel)."""
    dh = q.shape[-1]
    m = proj.shape[0]
    data_normalizer = dh ** -0.25
    ratio = m ** -0.5

    q_dash = lax.dot_general(q * data_normalizer, proj,
                             dimension_numbers=(((1,), (1,)), ((), ())),
                             preferred_element_type=jnp.float32)          # (N, m)
    k_dash = lax.dot_general(k * data_normalizer, proj,
                             dimension_numbers=(((1,), (1,)), ((), ())),
                             preferred_element_type=jnp.float32)          # (N, m)
    diag_q = jnp.sum(q * q, axis=-1, keepdims=True) * 0.5 * data_normalizer ** 2
    diag_k = jnp.sum(k * k, axis=-1, keepdims=True) * 0.5 * data_normalizer ** 2

    q_prime = ratio * (jnp.exp(q_dash - diag_q
                               - jnp.max(q_dash, axis=-1, keepdims=True)) + FAVOR_EPS)
    k_prime = ratio * (jnp.exp(k_dash - diag_k
                               - jnp.max(k_dash, axis=(0, 1), keepdims=True)) + FAVOR_EPS)

    # non-causal linear attention
    k_sum = jnp.sum(k_prime, axis=0, keepdims=True)                        # (1, m)
    d_inv = pl.reciprocal(jnp.sum(q_prime * k_sum, axis=-1, keepdims=True),
                          approx=True)                                     # (N, 1)
    context = lax.dot_general(k_prime, v,
                              dimension_numbers=(((0,), (0,)), ((), ())),
                              preferred_element_type=jnp.float32)          # (m, dh)
    return jnp.dot(q_prime, context, preferred_element_type=jnp.float32) * d_inv


def _performer_self_attention(h, p, heads):
    """PerformerSelfAttention.forward: out_proj(Performer(x)), Performer depth=1."""
    N, D = h.shape
    dh = D // heads
    proj = p["proj"][...]

    # --- Performer layer: x = x + Attn(LN(x)) ---
    y = _layernorm(h, p["attn_ln"])
    q = _linear(y, p["to_q"])
    k = _linear(y, p["to_k"])
    v = _linear(y, p["to_v"])
    # all heads inside one kernel invocation: static lane slices of (N, D),
    # no host-side transpose / per-head grid steps.
    head_out = []
    for hh in range(heads):
        sl = slice(hh * dh, (hh + 1) * dh)
        head_out.append(_favor_head(q[:, sl], k[:, sl], v[:, sl], proj))
    attn = jnp.concatenate(head_out, axis=-1)                              # 'h n d -> n (h d)'
    x1 = h + _linear(attn, p["to_out"])

    # --- Performer layer: x = x + FF(LN(x)), GELU fused into the matmul epilogue ---
    y = _layernorm(x1, p["ff_ln"])
    y = _linear(y, p["pf_ff_w1"], activation="gelu")
    y = _linear(y, p["pf_ff_w2"])
    x2 = x1 + y

    return _linear(x2, p["out_proj"])


# ----------------------------------------------------------------------------
# Whole-forward fused kernel
# ----------------------------------------------------------------------------
def _forward_kernel(*refs, treedef, n_params, heads, num_layers):
    x_ref = refs[0]
    params = jax.tree_util.tree_unflatten(treedef, list(refs[1:1 + n_params]))
    o_ref = refs[1 + n_params]

    h = _linear(x_ref[...].astype(jnp.float32), params["input_proj"])      # (N, D)
    for li in range(num_layers):                                           # static unroll
        lp = params["layers"][li]
        attn_out = _performer_self_attention(h, lp["mha"], heads)
        h = _layernorm(h + attn_out, lp["norm1"])                          # dropout = identity
        f = _linear(h, lp["ffn_w1"], activation="relu")
        f = _linear(f, lp["ffn_w2"])
        h = _layernorm(h + f, lp["norm2"])
    logits = _linear(h, params["classifier"], activation="sigmoid")        # (N, 1)
    o_ref[...] = logits.astype(o_ref.dtype)


def forward(params, x, heads):
    N = x.shape[0]
    num_layers = len(params["layers"])
    flat, treedef = jax.tree_util.tree_flatten(params)
    kernel = functools.partial(_forward_kernel, treedef=treedef,
                               n_params=len(flat), heads=heads,
                               num_layers=num_layers)
    # Single pallas_call: grid=(), whole arrays resident in VMEM (activations and
    # all parameters are only a few hundred KiB at these shapes).
    logits = pl.pallas_call(
        kernel,
        out_shape=jax.ShapeDtypeStruct((N, 1), jnp.float32),
    )(x, *flat)
    # attention-map placeholders: the reference returns torch.zeros(N, N) per layer;
    # built once and reused instead of per-layer HBM allocations.
    zeros_nn = jnp.zeros((N, N), dtype=logits.dtype)
    return logits[:, 0], [zeros_nn] * num_layers


# ----------------------------------------------------------------------------
# Parameter init (deterministic, synthetic)
# ----------------------------------------------------------------------------
def _lin_init(key, din, dout, scale=0.05):
    kw, kb = jax.random.split(key)
    w = jax.random.normal(kw, (din, dout), jnp.float32) * scale
    b = jax.random.normal(kb, (1, dout), jnp.float32) * scale
    return (w, b)


def _ln_init(dim):
    return (jnp.ones((1, dim), jnp.float32), jnp.zeros((1, dim), jnp.float32))


def init_params(key, in_dim, embed_dim, heads, num_layers, nb_features):
    dim_head = embed_dim // heads
    keys = jax.random.split(key, 2 + num_layers)
    params = {
        "input_proj": _lin_init(keys[0], in_dim, embed_dim),
        "classifier": _lin_init(keys[1], embed_dim, 1),
        "layers": [],
    }
    for li in range(num_layers):
        lk = jax.random.split(keys[2 + li], 10)
        mha = {
            "attn_ln": _ln_init(embed_dim),
            "to_q": _lin_init(lk[0], embed_dim, embed_dim),
            "to_k": _lin_init(lk[1], embed_dim, embed_dim),
            "to_v": _lin_init(lk[2], embed_dim, embed_dim),
            "to_out": _lin_init(lk[3], embed_dim, embed_dim),
            # TODO(synk): performer-pytorch orthogonalizes the gaussian random-feature
            # matrix (QR); plain gaussian init used here (init-only difference).
            "proj": jax.random.normal(lk[4], (nb_features, dim_head), jnp.float32),
            "ff_ln": _ln_init(embed_dim),
            "pf_ff_w1": _lin_init(lk[5], embed_dim, 4 * embed_dim),
            "pf_ff_w2": _lin_init(lk[6], 4 * embed_dim, embed_dim),
            "out_proj": _lin_init(lk[7], embed_dim, embed_dim),
        }
        params["layers"].append({
            "mha": mha,
            "norm1": _ln_init(embed_dim),
            "ffn_w1": _lin_init(lk[8], embed_dim, 4 * embed_dim),
            "ffn_w2": _lin_init(lk[9], 4 * embed_dim, embed_dim),
            "norm2": _ln_init(embed_dim),
        })
    return params


# ----------------------------------------------------------------------------
if __name__ == "__main__":
    N, IN_DIM = 16, 12
    EMBED_DIM, HEADS, NUM_LAYERS, NB_FEATURES = 32, 4, 2, 16

    key = jax.random.PRNGKey(0)
    kx, kp = jax.random.split(key)
    x = jax.random.normal(kx, (N, IN_DIM), jnp.float32)    # data.x
    params = init_params(kp, IN_DIM, EMBED_DIM, HEADS, NUM_LAYERS, NB_FEATURES)

    logits, attn_maps = forward(params, x, HEADS)
    logits = jax.block_until_ready(logits)
    for a in attn_maps:
        jax.block_until_ready(a)

    assert logits.shape == (N,)
    assert len(attn_maps) == NUM_LAYERS and attn_maps[0].shape == (N, N)
    assert bool(jnp.all(jnp.isfinite(logits)))
    assert bool(jnp.all((logits >= 0.0) & (logits <= 1.0)))
    print("KERNEL_OK")
</pallas_src>

<mosaic_0001>
module attributes {stable_mosaic.version = 11 : i64} {
  func.func @_forward_kernel(%arg0: memref<16x12xf32, #tpu.memory_space<vmem>>, %arg1: memref<32x1xf32, #tpu.memory_space<vmem>>, %arg2: memref<1x1xf32, #tpu.memory_space<vmem>>, %arg3: memref<12x32xf32, #tpu.memory_space<vmem>>, %arg4: memref<1x32xf32, #tpu.memory_space<vmem>>, %arg5: memref<32x128xf32, #tpu.memory_space<vmem>>, %arg6: memref<1x128xf32, #tpu.memory_space<vmem>>, %arg7: memref<128x32xf32, #tpu.memory_space<vmem>>, %arg8: memref<1x32xf32, #tpu.memory_space<vmem>>, %arg9: memref<1x32xf32, #tpu.memory_space<vmem>>, %arg10: memref<1x32xf32, #tpu.memory_space<vmem>>, %arg11: memref<1x32xf32, #tpu.memory_space<vmem>>, %arg12: memref<1x32xf32, #tpu.memory_space<vmem>>, %arg13: memref<32x32xf32, #tpu.memory_space<vmem>>, %arg14: memref<1x32xf32, #tpu.memory_space<vmem>>, %arg15: memref<32x128xf32, #tpu.memory_space<vmem>>, %arg16: memref<1x128xf32, #tpu.memory_space<vmem>>, %arg17: memref<128x32xf32, #tpu.memory_space<vmem>>, %arg18: memref<1x32xf32, #tpu.memory_space<vmem>>, %arg19: memref<16x8xf32, #tpu.memory_space<vmem>>, %arg20: memref<32x32xf32, #tpu.memory_space<vmem>>, %arg21: memref<1x32xf32, #tpu.memory_space<vmem>>, %arg22: memref<32x32xf32, #tpu.memory_space<vmem>>, %arg23: memref<1x32xf32, #tpu.memory_space<vmem>>, %arg24: memref<32x32xf32, #tpu.memory_space<vmem>>, %arg25: memref<1x32xf32, #tpu.memory_space<vmem>>, %arg26: memref<32x32xf32, #tpu.memory_space<vmem>>, %arg27: memref<1x32xf32, #tpu.memory_space<vmem>>, %arg28: memref<1x32xf32, #tpu.memory_space<vmem>>, %arg29: memref<1x32xf32, #tpu.memory_space<vmem>>, %arg30: memref<1x32xf32, #tpu.memory_space<vmem>>, %arg31: memref<1x32xf32, #tpu.memory_space<vmem>>, %arg32: memref<32x128xf32, #tpu.memory_space<vmem>>, %arg33: memref<1x128xf32, #tpu.memory_space<vmem>>, %arg34: memref<128x32xf32, #tpu.memory_space<vmem>>, %arg35: memref<1x32xf32, #tpu.memory_space<vmem>>, %arg36: memref<1x32xf32, #tpu.memory_space<vmem>>, %arg37: memref<1x32xf32, #tpu.memory_space<vmem>>, %arg38: memref<1x32xf32, #tpu.memory_space<vmem>>, %arg39: memref<1x32xf32, #tpu.memory_space<vmem>>, %arg40: memref<32x32xf32, #tpu.memory_space<vmem>>, %arg41: memref<1x32xf32, #tpu.memory_space<vmem>>, %arg42: memref<32x128xf32, #tpu.memory_space<vmem>>, %arg43: memref<1x128xf32, #tpu.memory_space<vmem>>, %arg44: memref<128x32xf32, #tpu.memory_space<vmem>>, %arg45: memref<1x32xf32, #tpu.memory_space<vmem>>, %arg46: memref<16x8xf32, #tpu.memory_space<vmem>>, %arg47: memref<32x32xf32, #tpu.memory_space<vmem>>, %arg48: memref<1x32xf32, #tpu.memory_space<vmem>>, %arg49: memref<32x32xf32, #tpu.memory_space<vmem>>, %arg50: memref<1x32xf32, #tpu.memory_space<vmem>>, %arg51: memref<32x32xf32, #tpu.memory_space<vmem>>, %arg52: memref<1x32xf32, #tpu.memory_space<vmem>>, %arg53: memref<32x32xf32, #tpu.memory_space<vmem>>, %arg54: memref<1x32xf32, #tpu.memory_space<vmem>>, %arg55: memref<1x32xf32, #tpu.memory_space<vmem>>, %arg56: memref<1x32xf32, #tpu.memory_space<vmem>>, %arg57: memref<1x32xf32, #tpu.memory_space<vmem>>, %arg58: memref<1x32xf32, #tpu.memory_space<vmem>>, %arg59: memref<16x1xf32, #tpu.memory_space<vmem>>) attributes {dimension_semantics = [], scalar_prefetch = 0 : i64, scratch_operands = 0 : i64, tpu.core_type = #tpu.core_type<tc>} {
    %c0 = arith.constant 0 : index
    %c0_0 = arith.constant 0 : index
    %0 = vector.load %arg0[%c0, %c0_0] : memref<16x12xf32, #tpu.memory_space<vmem>>, vector<16x12xf32>
    %c0_1 = arith.constant 0 : index
    %c0_2 = arith.constant 0 : index
    %1 = vector.load %arg3[%c0_1, %c0_2] : memref<12x32xf32, #tpu.memory_space<vmem>>, vector<12x32xf32>
    %cst = arith.constant dense<0.000000e+00> : vector<16x32xf32>
    %2 = tpu.matmul %0, %1, %cst {dimension_numbers = #tpu.dot_dimension_numbers<[1], [0], [0], [1], [0, 0, 1, 1], [], []>} : vector<16x12xf32>, vector<12x32xf32>, vector<16x32xf32> -> vector<16x32xf32>
    %c0_3 = arith.constant 0 : index
    %c0_4 = arith.constant 0 : index
    %3 = vector.load %arg4[%c0_3, %c0_4] : memref<1x32xf32, #tpu.memory_space<vmem>>, vector<1x32xf32>
    %4 = vector.broadcast %3 : vector<1x32xf32> to vector<16x32xf32>
    %5 = arith.addf %2, %4 : vector<16x32xf32>
    %c0_5 = arith.constant 0 : index
    %c0_6 = arith.constant 0 : index
    %6 = vector.load %arg19[%c0_5, %c0_6] : memref<16x8xf32, #tpu.memory_space<vmem>>, vector<16x8xf32>
    %cst_7 = arith.constant dense<0.000000e+00> : vector<16xf32>
    %7 = vector.multi_reduction <add>, %5, %cst_7 [1] : vector<16x32xf32> to vector<16xf32>
    %8 = vector.shape_cast %7 : vector<16xf32> to vector<16x1xf32>
    %cst_8 = arith.constant 3.200000e+01 : f32
    %9 = vector.broadcast %cst_8 : f32 to vector<16x1xf32>
    %10 = arith.divf %8, %9 : vector<16x1xf32>
    %11 = vector.broadcast %10 : vector<16x1xf32> to vector<16x32xf32>
    %12 = arith.subf %5, %11 : vector<16x32xf32>
    %13 = arith.mulf %12, %12 : vector<16x32xf32>
    %cst_9 = arith.constant dense<0.000000e+00> : vector<16xf32>
    %14 = vector.multi_reduction <add>, %13, %cst_9 [1] : vector<16x32xf32> to vector<16xf32>
    %15 = vector.shape_cast %14 : vector<16xf32> to vector<16x1xf32>
    %cst_10 = arith.constant 3.200000e+01 : f32
    %16 = vector.broadcast %cst_10 : f32 to vector<16x1xf32>
    %17 = arith.divf %15, %16 : vector<16x1xf32>
    %18 = vector.broadcast %10 : vector<16x1xf32> to vector<16x32xf32>
    %19 = arith.subf %5, %18 : vector<16x32xf32>
    %cst_11 = arith.constant 9.99999974E-6 : f32
    %20 = vector.broadcast %cst_11 : f32 to vector<16x1xf32>
    %21 = arith.addf %17, %20 : vector<16x1xf32>
    %22 = math.rsqrt %21 : vector<16x1xf32>
    %23 = vector.broadcast %22 : vector<16x1xf32> to vector<16x32xf32>
    %24 = arith.mulf %19, %23 : vector<16x32xf32>
    %c0_12 = arith.constant 0 : index
    %c0_13 = arith.constant 0 : index
    %25 = vector.load %arg9[%c0_12, %c0_13] : memref<1x32xf32, #tpu.memory_space<vmem>>, vector<1x32xf32>
    %26 = vector.broadcast %25 : vector<1x32xf32> to vector<16x32xf32>
    %27 = arith.mulf %24, %26 : vector<16x32xf32>
    %c0_14 = arith.constant 0 : index
    %c0_15 = arith.constant 0 : index
    %28 = vector.load %arg10[%c0_14, %c0_15] : memref<1x32xf32, #tpu.memory_space<vmem>>, vector<1x32xf32>
    %29 = vector.broadcast %28 : vector<1x32xf32> to vector<16x32xf32>
    %30 = arith.addf %27, %29 : vector<16x32xf32>
    %c0_16 = arith.constant 0 : index
    %c0_17 = arith.constant 0 : index
    %31 = vector.load %arg24[%c0_16, %c0_17] : memref<32x32xf32, #tpu.memory_space<vmem>>, vector<32x32xf32>
    %cst_18 = arith.constant dense<0.000000e+00> : vector<16x32xf32>
    %32 = tpu.matmul %30, %31, %cst_18 {dimension_numbers = #tpu.dot_dimension_numbers<[1], [0], [0], [1], [0, 0, 1, 1], [], []>} : vector<16x32xf32>, vector<32x32xf32>, vector<16x32xf32> -> vector<16x32xf32>
    %c0_19 = arith.constant 0 : index
    %c0_20 = arith.constant 0 : index
    %33 = vector.load %arg25[%c0_19, %c0_20] : memref<1x32xf32, #tpu.memory_space<vmem>>, vector<1x32xf32>
    %34 = vector.broadcast %33 : vector<1x32xf32> to vector<16x32xf32>
    %35 = arith.addf %32, %34 : vector<16x32xf32>
    %c0_21 = arith.constant 0 : index
    %c0_22 = arith.constant 0 : index
    %36 = vector.load %arg20[%c0_21, %c0_22] : memref<32x32xf32, #tpu.memory_space<vmem>>, vector<32x32xf32>
    %cst_23 = arith.constant dense<0.000000e+00> : vector<16x32xf32>
    %37 = tpu.matmul %30, %36, %cst_23 {dimension_numbers = #tpu.dot_dimension_numbers<[1], [0], [0], [1], [0, 0, 1, 1], [], []>} : vector<16x32xf32>, vector<32x32xf32>, vector<16x32xf32> -> vector<16x32xf32>
    %c0_24 = arith.constant 0 : index
    %c0_25 = arith.constant 0 : index
    %38 = vector.load %arg21[%c0_24, %c0_25] : memref<1x32xf32, #tpu.memory_space<vmem>>, vector<1x32xf32>
    %39 = vector.broadcast %38 : vector<1x32xf32> to vector<16x32xf32>
    %40 = arith.addf %37, %39 : vector<16x32xf32>
    %c0_26 = arith.constant 0 : index
    %c0_27 = arith.constant 0 : index
    %41 = vector.load %arg26[%c0_26, %c0_27] : memref<32x32xf32, #tpu.memory_space<vmem>>, vector<32x32xf32>
    %cst_28 = arith.constant dense<0.000000e+00> : vector<16x32xf32>
    %42 = tpu.matmul %30, %41, %cst_28 {dimension_numbers = #tpu.dot_dimension_numbers<[1], [0], [0], [1], [0, 0, 1, 1], [], []>} : vector<16x32xf32>, vector<32x32xf32>, vector<16x32xf32> -> vector<16x32xf32>
    %c0_29 = arith.constant 0 : index
    %c0_30 = arith.constant 0 : index
    %43 = vector.load %arg27[%c0_29, %c0_30] : memref<1x32xf32, #tpu.memory_space<vmem>>, vector<1x32xf32>
    %44 = vector.broadcast %43 : vector<1x32xf32> to vector<16x32xf32>
    %45 = arith.addf %42, %44 : vector<16x32xf32>
    %46 = vector.extract_strided_slice %35 {offsets = [0, 0], sizes = [16, 8], strides = [1, 1]} : vector<16x32xf32> to vector<16x8xf32>
    %47 = vector.extract_strided_slice %40 {offsets = [0, 0], sizes = [16, 8], strides = [1, 1]} : vector<16x32xf32> to vector<16x8xf32>
    %48 = vector.extract_strided_slice %45 {offsets = [0, 0], sizes = [16, 8], strides = [1, 1]} : vector<16x32xf32> to vector<16x8xf32>
    %cst_31 = arith.constant 0.594603539 : f32
    %49 = vector.broadcast %cst_31 : f32 to vector<16x8xf32>
    %50 = arith.mulf %46, %49 : vector<16x8xf32>
    %cst_32 = arith.constant dense<0.000000e+00> : vector<16x16xf32>
    %51 = tpu.matmul %50, %6, %cst_32 {dimension_numbers = #tpu.dot_dimension_numbers<[1], [1], [0], [0], [0, 0, 1, 0], [], []>} : vector<16x8xf32>, vector<16x8xf32>, vector<16x16xf32> -> vector<16x16xf32>
    %cst_33 = arith.constant 0.594603539 : f32
    %52 = vector.broadcast %cst_33 : f32 to vector<16x8xf32>
    %53 = arith.mulf %47, %52 : vector<16x8xf32>
    %cst_34 = arith.constant dense<0.000000e+00> : vector<16x16xf32>
    %54 = tpu.matmul %53, %6, %cst_34 {dimension_numbers = #tpu.dot_dimension_numbers<[1], [1], [0], [0], [0, 0, 1, 0], [], []>} : vector<16x8xf32>, vector<16x8xf32>, vector<16x16xf32> -> vector<16x16xf32>
    %55 = arith.mulf %46, %46 : vector<16x8xf32>
    %cst_35 = arith.constant dense<0.000000e+00> : vector<16xf32>
    %56 = vector.multi_reduction <add>, %55, %cst_35 [1] : vector<16x8xf32> to vector<16xf32>
    %57 = vector.shape_cast %56 : vector<16xf32> to vector<16x1xf32>
    %cst_36 = arith.constant 5.000000e-01 : f32
    %58 = vector.broadcast %cst_36 : f32 to vector<16x1xf32>
    %59 = arith.mulf %57, %58 : vector<16x1xf32>
    %cst_37 = arith.constant 0.353553385 : f32
    %60 = vector.broadcast %cst_37 : f32 to vector<16x1xf32>
    %61 = arith.mulf %59, %60 : vector<16x1xf32>
    %62 = arith.mulf %47, %47 : vector<16x8xf32>
    %cst_38 = arith.constant dense<0.000000e+00> : vector<16xf32>
    %63 = vector.multi_reduction <add>, %62, %cst_38 [1] : vector<16x8xf32> to vector<16xf32>
    %64 = vector.shape_cast %63 : vector<16xf32> to vector<16x1xf32>
    %cst_39 = arith.constant 5.000000e-01 : f32
    %65 = vector.broadcast %cst_39 : f32 to vector<16x1xf32>
    %66 = arith.mulf %64, %65 : vector<16x1xf32>
    %cst_40 = arith.constant 0.353553385 : f32
    %67 = vector.broadcast %cst_40 : f32 to vector<16x1xf32>
    %68 = arith.mulf %66, %67 : vector<16x1xf32>
    %69 = vector.broadcast %61 : vector<16x1xf32> to vector<16x16xf32>
    %70 = arith.subf %51, %69 : vector<16x16xf32>
    %cst_41 = arith.constant dense<0xFF800000> : vector<16xf32>
    %71 = vector.multi_reduction <maximumf>, %51, %cst_41 [1] : vector<16x16xf32> to vector<16xf32>
    %72 = vector.shape_cast %71 : vector<16xf32> to vector<16x1xf32>
    %73 = vector.broadcast %72 : vector<16x1xf32> to vector<16x16xf32>
    %74 = arith.subf %70, %73 : vector<16x16xf32>
    %75 = math.exp %74 : vector<16x16xf32>
    %cst_42 = arith.constant 9.99999974E-5 : f32
    %76 = vector.broadcast %cst_42 : f32 to vector<16x16xf32>
    %77 = arith.addf %75, %76 : vector<16x16xf32>
    %cst_43 = arith.constant 2.500000e-01 : f32
    %78 = vector.broadcast %cst_43 : f32 to vector<16x16xf32>
    %79 = arith.mulf %78, %77 : vector<16x16xf32>
    %80 = vector.broadcast %68 : vector<16x1xf32> to vector<16x16xf32>
    %81 = arith.subf %54, %80 : vector<16x16xf32>
    %82 = vector.shape_cast %54 : vector<16x16xf32> to vector<1x16x16xf32>
    %cst_44 = arith.constant dense<0xFF800000> : vector<1xf32>
    %83 = vector.multi_reduction <maximumf>, %82, %cst_44 [1, 2] : vector<1x16x16xf32> to vector<1xf32>
    %84 = vector.shape_cast %83 : vector<1xf32> to vector<1x1x1xf32>
    %85 = vector.extract %84[0, 0, 0] : f32 from vector<1x1x1xf32>
    %86 = vector.broadcast %85 : f32 to vector<1x1xf32>
    %87 = vector.broadcast %86 : vector<1x1xf32> to vector<16x16xf32>
    %88 = arith.subf %81, %87 : vector<16x16xf32>
    %89 = math.exp %88 : vector<16x16xf32>
    %cst_45 = arith.constant 9.99999974E-5 : f32
    %90 = vector.broadcast %cst_45 : f32 to vector<16x16xf32>
    %91 = arith.addf %89, %90 : vector<16x16xf32>
    %cst_46 = arith.constant 2.500000e-01 : f32
    %92 = vector.broadcast %cst_46 : f32 to vector<16x16xf32>
    %93 = arith.mulf %92, %91 : vector<16x16xf32>
    %cst_47 = arith.constant dense<0.000000e+00> : vector<16xf32>
    %94 = vector.multi_reduction <add>, %93, %cst_47 [0] : vector<16x16xf32> to vector<16xf32>
    %95 = vector.shape_cast %94 : vector<16xf32> to vector<1x16xf32>
    %96 = vector.broadcast %95 : vector<1x16xf32> to vector<16x16xf32>
    %97 = arith.mulf %79, %96 : vector<16x16xf32>
    %cst_48 = arith.constant dense<0.000000e+00> : vector<16xf32>
    %98 = vector.multi_reduction <add>, %97, %cst_48 [1] : vector<16x16xf32> to vector<16xf32>
    %99 = vector.shape_cast %98 : vector<16xf32> to vector<16x1xf32>
    %100 = tpu.reciprocal %99 {approx = true} : vector<16x1xf32> -> vector<16x1xf32>
    %cst_49 = arith.constant dense<0.000000e+00> : vector<16x8xf32>
    %101 = tpu.matmul %93, %48, %cst_49 {dimension_numbers = #tpu.dot_dimension_numbers<[0], [0], [1], [1], [0, 1, 1, 1], [], []>} : vector<16x16xf32>, vector<16x8xf32>, vector<16x8xf32> -> vector<16x8xf32>
    %cst_50 = arith.constant dense<0.000000e+00> : vector<16x8xf32>
    %102 = tpu.matmul %79, %101, %cst_50 {dimension_numbers = #tpu.dot_dimension_numbers<[1], [0], [0], [1], [0, 0, 1, 1], [], []>} : vector<16x16xf32>, vector<16x8xf32>, vector<16x8xf32> -> vector<16x8xf32>
    %103 = vector.broadcast %100 : vector<16x1xf32> to vector<16x8xf32>
    %104 = arith.mulf %102, %103 : vector<16x8xf32>
    %105 = vector.extract_strided_slice %35 {offsets = [0, 8], sizes = [16, 8], strides = [1, 1]} : vector<16x32xf32> to vector<16x8xf32>
    %106 = vector.extract_strided_slice %40 {offsets = [0, 8], sizes = [16, 8], strides = [1, 1]} : vector<16x32xf32> to vector<16x8xf32>
    %107 = vector.extract_strided_slice %45 {offsets = [0, 8], sizes = [16, 8], strides = [1, 1]} : vector<16x32xf32> to vector<16x8xf32>
    %cst_51 = arith.constant 0.594603539 : f32
    %108 = vector.broadcast %cst_51 : f32 to vector<16x8xf32>
    %109 = arith.mulf %105, %108 : vector<16x8xf32>
    %cst_52 = arith.constant dense<0.000000e+00> : vector<16x16xf32>
    %110 = tpu.matmul %109, %6, %cst_52 {dimension_numbers = #tpu.dot_dimension_numbers<[1], [1], [0], [0], [0, 0, 1, 0], [], []>} : vector<16x8xf32>, vector<16x8xf32>, vector<16x16xf32> -> vector<16x16xf32>
    %cst_53 = arith.constant 0.594603539 : f32
    %111 = vector.broadcast %cst_53 : f32 to vector<16x8xf32>
    %112 = arith.mulf %106, %111 : vector<16x8xf32>
    %cst_54 = arith.constant dense<0.000000e+00> : vector<16x16xf32>
    %113 = tpu.matmul %112, %6, %cst_54 {dimension_numbers = #tpu.dot_dimension_numbers<[1], [1], [0], [0], [0, 0, 1, 0], [], []>} : vector<16x8xf32>, vector<16x8xf32>, vector<16x16xf32> -> vector<16x16xf32>
    %114 = arith.mulf %105, %105 : vector<16x8xf32>
    %cst_55 = arith.constant dense<0.000000e+00> : vector<16xf32>
    %115 = vector.multi_reduction <add>, %114, %cst_55 [1] : vector<16x8xf32> to vector<16xf32>
    %116 = vector.shape_cast %115 : vector<16xf32> to vector<16x1xf32>
    %cst_56 = arith.constant 5.000000e-01 : f32
    %117 = vector.broadcast %cst_56 : f32 to vector<16x1xf32>
    %118 = arith.mulf %116, %117 : vector<16x1xf32>
    %cst_57 = arith.constant 0.353553385 : f32
    %119 = vector.broadcast %cst_57 : f32 to vector<16x1xf32>
    %120 = arith.mulf %118, %119 : vector<16x1xf32>
    %121 = arith.mulf %106, %106 : vector<16x8xf32>
    %cst_58 = arith.constant dense<0.000000e+00> : vector<16xf32>
    %122 = vector.multi_reduction <add>, %121, %cst_58 [1] : vector<16x8xf32> to vector<16xf32>
    %123 = vector.shape_cast %122 : vector<16xf32> to vector<16x1xf32>
    %cst_59 = arith.constant 5.000000e-01 : f32
    %124 = vector.broadcast %cst_59 : f32 to vector<16x1xf32>
    %125 = arith.mulf %123, %124 : vector<16x1xf32>
    %cst_60 = arith.constant 0.353553385 : f32
    %126 = vector.broadcast %cst_60 : f32 to vector<16x1xf32>
    %127 = arith.mulf %125, %126 : vector<16x1xf32>
    %128 = vector.broadcast %120 : vector<16x1xf32> to vector<16x16xf32>
    %129 = arith.subf %110, %128 : vector<16x16xf32>
    %cst_61 = arith.constant dense<0xFF800000> : vector<16xf32>
    %130 = vector.multi_reduction <maximumf>, %110, %cst_61 [1] : vector<16x16xf32> to vector<16xf32>
    %131 = vector.shape_cast %130 : vector<16xf32> to vector<16x1xf32>
    %132 = vector.broadcast %131 : vector<16x1xf32> to vector<16x16xf32>
    %133 = arith.subf %129, %132 : vector<16x16xf32>
    %134 = math.exp %133 : vector<16x16xf32>
    %cst_62 = arith.constant 9.99999974E-5 : f32
    %135 = vector.broadcast %cst_62 : f32 to vector<16x16xf32>
    %136 = arith.addf %134, %135 : vector<16x16xf32>
    %cst_63 = arith.constant 2.500000e-01 : f32
    %137 = vector.broadcast %cst_63 : f32 to vector<16x16xf32>
    %138 = arith.mulf %137, %136 : vector<16x16xf32>
    %139 = vector.broadcast %127 : vector<16x1xf32> to vector<16x16xf32>
    %140 = arith.subf %113, %139 : vector<16x16xf32>
    %141 = vector.shape_cast %113 : vector<16x16xf32> to vector<1x16x16xf32>
    %cst_64 = arith.constant dense<0xFF800000> : vector<1xf32>
    %142 = vector.multi_reduction <maximumf>, %141, %cst_64 [1, 2] : vector<1x16x16xf32> to vector<1xf32>
    %143 = vector.shape_cast %142 : vector<1xf32> to vector<1x1x1xf32>
    %144 = vector.extract %143[0, 0, 0] : f32 from vector<1x1x1xf32>
    %145 = vector.broadcast %144 : f32 to vector<1x1xf32>
    %146 = vector.broadcast %145 : vector<1x1xf32> to vector<16x16xf32>
    %147 = arith.subf %140, %146 : vector<16x16xf32>
    %148 = math.exp %147 : vector<16x16xf32>
    %cst_65 = arith.constant 9.99999974E-5 : f32
    %149 = vector.broadcast %cst_65 : f32 to vector<16x16xf32>
    %150 = arith.addf %148, %149 : vector<16x16xf32>
    %cst_66 = arith.constant 2.500000e-01 : f32
    %151 = vector.broadcast %cst_66 : f32 to vector<16x16xf32>
    %152 = arith.mulf %151, %150 : vector<16x16xf32>
    %cst_67 = arith.constant dense<0.000000e+00> : vector<16xf32>
    %153 = vector.multi_reduction <add>, %152, %cst_67 [0] : vector<16x16xf32> to vector<16xf32>
    %154 = vector.shape_cast %153 : vector<16xf32> to vector<1x16xf32>
    %155 = vector.broadcast %154 : vector<1x16xf32> to vector<16x16xf32>
    %156 = arith.mulf %138, %155 : vector<16x16xf32>
    %cst_68 = arith.constant dense<0.000000e+00> : vector<16xf32>
    %157 = vector.multi_reduction <add>, %156, %cst_68 [1] : vector<16x16xf32> to vector<16xf32>
    %158 = vector.shape_cast %157 : vector<16xf32> to vector<16x1xf32>
    %159 = tpu.reciprocal %158 {approx = true} : vector<16x1xf32> -> vector<16x1xf32>
    %cst_69 = arith.constant dense<0.000000e+00> : vector<16x8xf32>
    %160 = tpu.matmul %152, %107, %cst_69 {dimension_numbers = #tpu.dot_dimension_numbers<[0], [0], [1], [1], [0, 1, 1, 1], [], []>} : vector<16x16xf32>, vector<16x8xf32>, vector<16x8xf32> -> vector<16x8xf32>
    %cst_70 = arith.constant dense<0.000000e+00> : vector<16x8xf32>
    %161 = tpu.matmul %138, %160, %cst_70 {dimension_numbers = #tpu.dot_dimension_numbers<[1], [0], [0], [1], [0, 0, 1, 1], [], []>} : vector<16x16xf32>, vector<16x8xf32>, vector<16x8xf32> -> vector<16x8xf32>
    %162 = vector.broadcast %159 : vector<16x1xf32> to vector<16x8xf32>
    %163 = arith.mulf %161, %162 : vector<16x8xf32>
    %164 = vector.extract_strided_slice %35 {offsets = [0, 16], sizes = [16, 8], strides = [1, 1]} : vector<16x32xf32> to vector<16x8xf32>
    %165 = vector.extract_strided_slice %40 {offsets = [0, 16], sizes = [16, 8], strides = [1, 1]} : vector<16x32xf32> to vector<16x8xf32>
    %166 = vector.extract_strided_slice %45 {offsets = [0, 16], sizes = [16, 8], strides = [1, 1]} : vector<16x32xf32> to vector<16x8xf32>
    %cst_71 = arith.constant 0.594603539 : f32
    %167 = vector.broadcast %cst_71 : f32 to vector<16x8xf32>
    %168 = arith.mulf %164, %167 : vector<16x8xf32>
    %cst_72 = arith.constant dense<0.000000e+00> : vector<16x16xf32>
    %169 = tpu.matmul %168, %6, %cst_72 {dimension_numbers = #tpu.dot_dimension_numbers<[1], [1], [0], [0], [0, 0, 1, 0], [], []>} : vector<16x8xf32>, vector<16x8xf32>, vector<16x16xf32> -> vector<16x16xf32>
    %cst_73 = arith.constant 0.594603539 : f32
    %170 = vector.broadcast %cst_73 : f32 to vector<16x8xf32>
    %171 = arith.mulf %165, %170 : vector<16x8xf32>
    %cst_74 = arith.constant dense<0.000000e+00> : vector<16x16xf32>
    %172 = tpu.matmul %171, %6, %cst_74 {dimension_numbers = #tpu.dot_dimension_numbers<[1], [1], [0], [0], [0, 0, 1, 0], [], []>} : vector<16x8xf32>, vector<16x8xf32>, vector<16x16xf32> -> vector<16x16xf32>
    %173 = arith.mulf %164, %164 : vector<16x8xf32>
    %cst_75 = arith.constant dense<0.000000e+00> : vector<16xf32>
    %174 = vector.multi_reduction <add>, %173, %cst_75 [1] : vector<16x8xf32> to vector<16xf32>
    %175 = vector.shape_cast %174 : vector<16xf32> to vector<16x1xf32>
    %cst_76 = arith.constant 5.000000e-01 : f32
    %176 = vector.broadcast %cst_76 : f32 to vector<16x1xf32>
    %177 = arith.mulf %175, %176 : vector<16x1xf32>
    %cst_77 = arith.constant 0.353553385 : f32
    %178 = vector.broadcast %cst_77 : f32 to vector<16x1xf32>
    %179 = arith.mulf %177, %178 : vector<16x1xf32>
    %180 = arith.mulf %165, %165 : vector<16x8xf32>
    %cst_78 = arith.constant dense<0.000000e+00> : vector<16xf32>
    %181 = vector.multi_reduction <add>, %180, %cst_78 [1] : vector<16x8xf32> to vector<16xf32>
    %182 = vector.shape_cast %181 : vector<16xf32> to vector<16x1xf32>
    %cst_79 = arith.constant 5.000000e-01 : f32
    %183 = vector.broadcast %cst_79 : f32 to vector<16x1xf32>
    %184 = arith.mulf %182, %183 : vector<16x1xf32>
    %cst_80 = arith.constant 0.353553385 : f32
    %185 = vector.broadcast %cst_80 : f32 to vector<16x1xf32>
    %186 = arith.mulf %184, %185 : vector<16x1xf32>
    %187 = vector.broadcast %179 : vector<16x1xf32> to vector<16x16xf32>
    %188 = arith.subf %169, %187 : vector<16x16xf32>
    %cst_81 = arith.constant dense<0xFF800000> : vector<16xf32>
    %189 = vector.multi_reduction <maximumf>, %169, %cst_81 [1] : vector<16x16xf32> to vector<16xf32>
    %190 = vector.shape_cast %189 : vector<16xf32> to vector<16x1xf32>
    %191 = vector.broadcast %190 : vector<16x1xf32> to vector<16x16xf32>
    %192 = arith.subf %188, %191 : vector<16x16xf32>
    %193 = math.exp %192 : vector<16x16xf32>
    %cst_82 = arith.constant 9.99999974E-5 : f32
    %194 = vector.broadcast %cst_82 : f32 to vector<16x16xf32>
    %195 = arith.addf %193, %194 : vector<16x16xf32>
    %cst_83 = arith.constant 2.500000e-01 : f32
    %196 = vector.broadcast %cst_83 : f32 to vector<16x16xf32>
    %197 = arith.mulf %196, %195 : vector<16x16xf32>
    %198 = vector.broadcast %186 : vector<16x1xf32> to vector<16x16xf32>
    %199 = arith.subf %172, %198 : vector<16x16xf32>
    %200 = vector.shape_cast %172 : vector<16x16xf32> to vector<1x16x16xf32>
    %cst_84 = arith.constant dense<0xFF800000> : vector<1xf32>
    %201 = vector.multi_reduction <maximumf>, %200, %cst_84 [1, 2] : vector<1x16x16xf32> to vector<1xf32>
    %202 = vector.shape_cast %201 : vector<1xf32> to vector<1x1x1xf32>
    %203 = vector.extract %202[0, 0, 0] : f32 from vector<1x1x1xf32>
    %204 = vector.broadcast %203 : f32 to vector<1x1xf32>
    %205 = vector.broadcast %204 : vector<1x1xf32> to vector<16x16xf32>
    %206 = arith.subf %199, %205 : vector<16x16xf32>
    %207 = math.exp %206 : vector<16x16xf32>
    %cst_85 = arith.constant 9.99999974E-5 : f32
    %208 = vector.broadcast %cst_85 : f32 to vector<16x16xf32>
    %209 = arith.addf %207, %208 : vector<16x16xf32>
    %cst_86 = arith.constant 2.500000e-01 : f32
    %210 = vector.broadcast %cst_86 : f32 to vector<16x16xf32>
    %211 = arith.mulf %210, %209 : vector<16x16xf32>
    %cst_87 = arith.constant dense<0.000000e+00> : vector<16xf32>
    %212 = vector.multi_reduction <add>, %211, %cst_87 [0] : vector<16x16xf32> to vector<16xf32>
    %213 = vector.shape_cast %212 : vector<16xf32> to vector<1x16xf32>
    %214 = vector.broadcast %213 : vector<1x16xf32> to vector<16x16xf32>
    %215 = arith.mulf %197, %214 : vector<16x16xf32>
    %cst_88 = arith.constant dense<0.000000e+00> : vector<16xf32>
    %216 = vector.multi_reduction <add>, %215, %cst_88 [1] : vector<16x16xf32> to vector<16xf32>
    %217 = vector.shape_cast %216 : vector<16xf32> to vector<16x1xf32>
    %218 = tpu.reciprocal %217 {approx = true} : vector<16x1xf32> -> vector<16x1xf32>
    %cst_89 = arith.constant dense<0.000000e+00> : vector<16x8xf32>
    %219 = tpu.matmul %211, %166, %cst_89 {dimension_numbers = #tpu.dot_dimension_numbers<[0], [0], [1], [1], [0, 1, 1, 1], [], []>} : vector<16x16xf32>, vector<16x8xf32>, vector<16x8xf32> -> vector<16x8xf32>
    %cst_90 = arith.constant dense<0.000000e+00> : vector<16x8xf32>
    %220 = tpu.matmul %197, %219, %cst_90 {dimension_numbers = #tpu.dot_dimension_numbers<[1], [0], [0], [1], [0, 0, 1, 1], [], []>} : vector<16x16xf32>, vector<16x8xf32>, vector<16x8xf32> -> vector<16x8xf32>
    %221 = vector.broadcast %218 : vector<16x1xf32> to vector<16x8xf32>
    %222 = arith.mulf %220, %221 : vector<16x8xf32>
    %223 = vector.extract_strided_slice %35 {offsets = [0, 24], sizes = [16, 8], strides = [1, 1]} : vector<16x32xf32> to vector<16x8xf32>
    %224 = vector.extract_strided_slice %40 {offsets = [0, 24], sizes = [16, 8], strides = [1, 1]} : vector<16x32xf32> to vector<16x8xf32>
    %225 = vector.extract_strided_slice %45 {offsets = [0, 24], sizes = [16, 8], strides = [1, 1]} : vector<16x32xf32> to vector<16x8xf32>
    %cst_91 = arith.constant 0.594603539 : f32
    %226 = vector.broadcast %cst_91 : f32 to vector<16x8xf32>
    %227 = arith.mulf %223, %226 : vector<16x8xf32>
    %cst_92 = arith.constant dense<0.000000e+00> : vector<16x16xf32>
    %228 = tpu.matmul %227, %6, %cst_92 {dimension_numbers = #tpu.dot_dimension_numbers<[1], [1], [0], [0], [0, 0, 1, 0], [], []>} : vector<16x8xf32>, vector<16x8xf32>, vector<16x16xf32> -> vector<16x16xf32>
    %cst_93 = arith.constant 0.594603539 : f32
    %229 = vector.broadcast %cst_93 : f32 to vector<16x8xf32>
    %230 = arith.mulf %224, %229 : vector<16x8xf32>
    %cst_94 = arith.constant dense<0.000000e+00> : vector<16x16xf32>
    %231 = tpu.matmul %230, %6, %cst_94 {dimension_numbers = #tpu.dot_dimension_numbers<[1], [1], [0], [0], [0, 0, 1, 0], [], []>} : vector<16x8xf32>, vector<16x8xf32>, vector<16x16xf32> -> vector<16x16xf32>
    %232 = arith.mulf %223, %223 : vector<16x8xf32>
    %cst_95 = arith.constant dense<0.000000e+00> : vector<16xf32>
    %233 = vector.multi_reduction <add>, %232, %cst_95 [1] : vector<16x8xf32> to vector<16xf32>
    %234 = vector.shape_cast %233 : vector<16xf32> to vector<16x1xf32>
    %cst_96 = arith.constant 5.000000e-01 : f32
    %235 = vector.broadcast %cst_96 : f32 to vector<16x1xf32>
    %236 = arith.mulf %234, %235 : vector<16x1xf32>
    %cst_97 = arith.constant 0.353553385 : f32
    %237 = vector.broadcast %cst_97 : f32 to vector<16x1xf32>
    %238 = arith.mulf %236, %237 : vector<16x1xf32>
    %239 = arith.mulf %224, %224 : vector<16x8xf32>
    %cst_98 = arith.constant dense<0.000000e+00> : vector<16xf32>
    %240 = vector.multi_reduction <add>, %239, %cst_98 [1] : vector<16x8xf32> to vector<16xf32>
    %241 = vector.shape_cast %240 : vector<16xf32> to vector<16x1xf32>
    %cst_99 = arith.constant 5.000000e-01 : f32
    %242 = vector.broadcast %cst_99 : f32 to vector<16x1xf32>
    %243 = arith.mulf %241, %242 : vector<16x1xf32>
    %cst_100 = arith.constant 0.353553385 : f32
    %244 = vector.broadcast %cst_100 : f32 to vector<16x1xf32>
    %245 = arith.mulf %243, %244 : vector<16x1xf32>
    %246 = vector.broadcast %238 : vector<16x1xf32> to vector<16x16xf32>
    %247 = arith.subf %228, %246 : vector<16x16xf32>
    %cst_101 = arith.constant dense<0xFF800000> : vector<16xf32>
    %248 = vector.multi_reduction <maximumf>, %228, %cst_101 [1] : vector<16x16xf32> to vector<16xf32>
    %249 = vector.shape_cast %248 : vector<16xf32> to vector<16x1xf32>
    %250 = vector.broadcast %249 : vector<16x1xf32> to vector<16x16xf32>
    %251 = arith.subf %247, %250 : vector<16x16xf32>
    %252 = math.exp %251 : vector<16x16xf32>
    %cst_102 = arith.constant 9.99999974E-5 : f32
    %253 = vector.broadcast %cst_102 : f32 to vector<16x16xf32>
    %254 = arith.addf %252, %253 : vector<16x16xf32>
    %cst_103 = arith.constant 2.500000e-01 : f32
    %255 = vector.broadcast %cst_103 : f32 to vector<16x16xf32>
    %256 = arith.mulf %255, %254 : vector<16x16xf32>
    %257 = vector.broadcast %245 : vector<16x1xf32> to vector<16x16xf32>
    %258 = arith.subf %231, %257 : vector<16x16xf32>
    %259 = vector.shape_cast %231 : vector<16x16xf32> to vector<1x16x16xf32>
    %cst_104 = arith.constant dense<0xFF800000> : vector<1xf32>
    %260 = vector.multi_reduction <maximumf>, %259, %cst_104 [1, 2] : vector<1x16x16xf32> to vector<1xf32>
    %261 = vector.shape_cast %260 : vector<1xf32> to vector<1x1x1xf32>
    %262 = vector.extract %261[0, 0, 0] : f32 from vector<1x1x1xf32>
    %263 = vector.broadcast %262 : f32 to vector<1x1xf32>
    %264 = vector.broadcast %263 : vector<1x1xf32> to vector<16x16xf32>
    %265 = arith.subf %258, %264 : vector<16x16xf32>
    %266 = math.exp %265 : vector<16x16xf32>
    %cst_105 = arith.constant 9.99999974E-5 : f32
    %267 = vector.broadcast %cst_105 : f32 to vector<16x16xf32>
    %268 = arith.addf %266, %267 : vector<16x16xf32>
    %cst_106 = arith.constant 2.500000e-01 : f32
    %269 = vector.broadcast %cst_106 : f32 to vector<16x16xf32>
    %270 = arith.mulf %269, %268 : vector<16x16xf32>
    %cst_107 = arith.constant dense<0.000000e+00> : vector<16xf32>
    %271 = vector.multi_reduction <add>, %270, %cst_107 [0] : vector<16x16xf32> to vector<16xf32>
    %272 = vector.shape_cast %271 : vector<16xf32> to vector<1x16xf32>
    %273 = vector.broadcast %272 : vector<1x16xf32> to vector<16x16xf32>
    %274 = arith.mulf %256, %273 : vector<16x16xf32>
    %cst_108 = arith.constant dense<0.000000e+00> : vector<16xf32>
    %275 = vector.multi_reduction <add>, %274, %cst_108 [1] : vector<16x16xf32> to vector<16xf32>
    %276 = vector.shape_cast %275 : vector<16xf32> to vector<16x1xf32>
    %277 = tpu.reciprocal %276 {approx = true} : vector<16x1xf32> -> vector<16x1xf32>
    %cst_109 = arith.constant dense<0.000000e+00> : vector<16x8xf32>
    %278 = tpu.matmul %270, %225, %cst_109 {dimension_numbers = #tpu.dot_dimension_numbers<[0], [0], [1], [1], [0, 1, 1, 1], [], []>} : vector<16x16xf32>, vector<16x8xf32>, vector<16x8xf32> -> vector<16x8xf32>
    %cst_110 = arith.constant dense<0.000000e+00> : vector<16x8xf32>
    %279 = tpu.matmul %256, %278, %cst_110 {dimension_numbers = #tpu.dot_dimension_numbers<[1], [0], [0], [1], [0, 0, 1, 1], [], []>} : vector<16x16xf32>, vector<16x8xf32>, vector<16x8xf32> -> vector<16x8xf32>
    %280 = vector.broadcast %277 : vector<16x1xf32> to vector<16x8xf32>
    %281 = arith.mulf %279, %280 : vector<16x8xf32>
    %282 = tpu.concatenate %104, %163, %222, %281 in 1 : vector<16x8xf32>, vector<16x8xf32>, vector<16x8xf32>, vector<16x8xf32> -> vector<16x32xf32>
    %c0_111 = arith.constant 0 : index
    %c0_112 = arith.constant 0 : index
    %283 = vector.load %arg22[%c0_111, %c0_112] : memref<32x32xf32, #tpu.memory_space<vmem>>, vector<32x32xf32>
    %cst_113 = arith.constant dense<0.000000e+00> : vector<16x32xf32>
    %284 = tpu.matmul %282, %283, %cst_113 {dimension_numbers = #tpu.dot_dimension_numbers<[1], [0], [0], [1], [0, 0, 1, 1], [], []>} : vector<16x32xf32>, vector<32x32xf32>, vector<16x32xf32> -> vector<16x32xf32>
    %c0_114 = arith.constant 0 : index
    %c0_115 = arith.constant 0 : index
    %285 = vector.load %arg23[%c0_114, %c0_115] : memref<1x32xf32, #tpu.memory_space<vmem>>, vector<1x32xf32>
    %286 = vector.broadcast %285 : vector<1x32xf32> to vector<16x32xf32>
    %287 = arith.addf %284, %286 : vector<16x32xf32>
    %288 = arith.addf %5, %287 : vector<16x32xf32>
    %cst_116 = arith.constant dense<0.000000e+00> : vector<16xf32>
    %289 = vector.multi_reduction <add>, %288, %cst_116 [1] : vector<16x32xf32> to vector<16xf32>
    %290 = vector.shape_cast %289 : vector<16xf32> to vector<16x1xf32>
    %cst_117 = arith.constant 3.200000e+01 : f32
    %291 = vector.broadcast %cst_117 : f32 to vector<16x1xf32>
    %292 = arith.divf %290, %291 : vector<16x1xf32>
    %293 = vector.broadcast %292 : vector<16x1xf32> to vector<16x32xf32>
    %294 = arith.subf %288, %293 : vector<16x32xf32>
    %295 = arith.mulf %294, %294 : vector<16x32xf32>
    %cst_118 = arith.constant dense<0.000000e+00> : vector<16xf32>
    %296 = vector.multi_reduction <add>, %295, %cst_118 [1] : vector<16x32xf32> to vector<16xf32>
    %297 = vector.shape_cast %296 : vector<16xf32> to vector<16x1xf32>
    %cst_119 = arith.constant 3.200000e+01 : f32
    %298 = vector.broadcast %cst_119 : f32 to vector<16x1xf32>
    %299 = arith.divf %297, %298 : vector<16x1xf32>
    %300 = vector.broadcast %292 : vector<16x1xf32> to vector<16x32xf32>
    %301 = arith.subf %288, %300 : vector<16x32xf32>
    %cst_120 = arith.constant 9.99999974E-6 : f32
    %302 = vector.broadcast %cst_120 : f32 to vector<16x1xf32>
    %303 = arith.addf %299, %302 : vector<16x1xf32>
    %304 = math.rsqrt %303 : vector<16x1xf32>
    %305 = vector.broadcast %304 : vector<16x1xf32> to vector<16x32xf32>
    %306 = arith.mulf %301, %305 : vector<16x32xf32>
    %c0_121 = arith.constant 0 : index
    %c0_122 = arith.constant 0 : index
    %307 = vector.load %arg11[%c0_121, %c0_122] : memref<1x32xf32, #tpu.memory_space<vmem>>, vector<1x32xf32>
    %308 = vector.broadcast %307 : vector<1x32xf32> to vector<16x32xf32>
    %309 = arith.mulf %306, %308 : vector<16x32xf32>
    %c0_123 = arith.constant 0 : index
    %c0_124 = arith.constant 0 : index
    %310 = vector.load %arg12[%c0_123, %c0_124] : memref<1x32xf32, #tpu.memory_space<vmem>>, vector<1x32xf32>
    %311 = vector.broadcast %310 : vector<1x32xf32> to vector<16x32xf32>
    %312 = arith.addf %309, %311 : vector<16x32xf32>
    %c0_125 = arith.constant 0 : index
    %c0_126 = arith.constant 0 : index
    %313 = vector.load %arg15[%c0_125, %c0_126] : memref<32x128xf32, #tpu.memory_space<vmem>>, vector<32x128xf32>
    %cst_127 = arith.constant dense<0.000000e+00> : vector<16x128xf32>
    %314 = tpu.matmul %312, %313, %cst_127 {dimension_numbers = #tpu.dot_dimension_numbers<[1], [0], [0], [1], [0, 0, 1, 1], [], []>} : vector<16x32xf32>, vector<32x128xf32>, vector<16x128xf32> -> vector<16x128xf32>
    %c0_128 = arith.constant 0 : index
    %c0_129 = arith.constant 0 : index
    %315 = vector.load %arg16[%c0_128, %c0_129] : memref<1x128xf32, #tpu.memory_space<vmem>>, vector<1x128xf32>
    %316 = vector.broadcast %315 : vector<1x128xf32> to vector<16x128xf32>
    %317 = arith.addf %314, %316 : vector<16x128xf32>
    %318 = arith.mulf %317, %317 : vector<16x128xf32>
    %319 = arith.mulf %317, %318 : vector<16x128xf32>
    %cst_130 = arith.constant 4.471500e-02 : f32
    %320 = vector.broadcast %cst_130 : f32 to vector<16x128xf32>
    %321 = arith.mulf %320, %319 : vector<16x128xf32>
    %322 = arith.addf %317, %321 : vector<16x128xf32>
    %cst_131 = arith.constant 0.797884583 : f32
    %323 = vector.broadcast %cst_131 : f32 to vector<16x128xf32>
    %324 = arith.mulf %323, %322 : vector<16x128xf32>
    %325 = math.tanh %324 : vector<16x128xf32>
    %cst_132 = arith.constant 1.000000e+00 : f32
    %326 = vector.broadcast %cst_132 : f32 to vector<16x128xf32>
    %327 = arith.addf %326, %325 : vector<16x128xf32>
    %cst_133 = arith.constant 5.000000e-01 : f32
    %328 = vector.broadcast %cst_133 : f32 to vector<16x128xf32>
    %329 = arith.mulf %328, %327 : vector<16x128xf32>
    %330 = arith.mulf %317, %329 : vector<16x128xf32>
    %c0_134 = arith.constant 0 : index
    %c0_135 = arith.constant 0 : index
    %331 = vector.load %arg17[%c0_134, %c0_135] : memref<128x32xf32, #tpu.memory_space<vmem>>, vector<128x32xf32>
    %cst_136 = arith.constant dense<0.000000e+00> : vector<16x32xf32>
    %332 = tpu.matmul %330, %331, %cst_136 {dimension_numbers = #tpu.dot_dimension_numbers<[1], [0], [0], [1], [0, 0, 1, 1], [], []>} : vector<16x128xf32>, vector<128x32xf32>, vector<16x32xf32> -> vector<16x32xf32>
    %c0_137 = arith.constant 0 : index
    %c0_138 = arith.constant 0 : index
    %333 = vector.load %arg18[%c0_137, %c0_138] : memref<1x32xf32, #tpu.memory_space<vmem>>, vector<1x32xf32>
    %334 = vector.broadcast %333 : vector<1x32xf32> to vector<16x32xf32>
    %335 = arith.addf %332, %334 : vector<16x32xf32>
    %336 = arith.addf %288, %335 : vector<16x32xf32>
    %c0_139 = arith.constant 0 : index
    %c0_140 = arith.constant 0 : index
    %337 = vector.load %arg13[%c0_139, %c0_140] : memref<32x32xf32, #tpu.memory_space<vmem>>, vector<32x32xf32>
    %cst_141 = arith.constant dense<0.000000e+00> : vector<16x32xf32>
    %338 = tpu.matmul %336, %337, %cst_141 {dimension_numbers = #tpu.dot_dimension_numbers<[1], [0], [0], [1], [0, 0, 1, 1], [], []>} : vector<16x32xf32>, vector<32x32xf32>, vector<16x32xf32> -> vector<16x32xf32>
    %c0_142 = arith.constant 0 : index
    %c0_143 = arith.constant 0 : index
    %339 = vector.load %arg14[%c0_142, %c0_143] : memref<1x32xf32, #tpu.memory_space<vmem>>, vector<1x32xf32>
    %340 = vector.broadcast %339 : vector<1x32xf32> to vector<16x32xf32>
    %341 = arith.addf %338, %340 : vector<16x32xf32>
    %342 = arith.addf %5, %341 : vector<16x32xf32>
    %cst_144 = arith.constant dense<0.000000e+00> : vector<16xf32>
    %343 = vector.multi_reduction <add>, %342, %cst_144 [1] : vector<16x32xf32> to vector<16xf32>
    %344 = vector.shape_cast %343 : vector<16xf32> to vector<16x1xf32>
    %cst_145 = arith.constant 3.200000e+01 : f32
    %345 = vector.broadcast %cst_145 : f32 to vector<16x1xf32>
    %346 = arith.divf %344, %345 : vector<16x1xf32>
    %347 = vector.broadcast %346 : vector<16x1xf32> to vector<16x32xf32>
    %348 = arith.subf %342, %347 : vector<16x32xf32>
    %349 = arith.mulf %348, %348 : vector<16x32xf32>
    %cst_146 = arith.constant dense<0.000000e+00> : vector<16xf32>
    %350 = vector.multi_reduction <add>, %349, %cst_146 [1] : vector<16x32xf32> to vector<16xf32>
    %351 = vector.shape_cast %350 : vector<16xf32> to vector<16x1xf32>
    %cst_147 = arith.constant 3.200000e+01 : f32
    %352 = vector.broadcast %cst_147 : f32 to vector<16x1xf32>
    %353 = arith.divf %351, %352 : vector<16x1xf32>
    %354 = vector.broadcast %346 : vector<16x1xf32> to vector<16x32xf32>
    %355 = arith.subf %342, %354 : vector<16x32xf32>
    %cst_148 = arith.constant 9.99999974E-6 : f32
    %356 = vector.broadcast %cst_148 : f32 to vector<16x1xf32>
    %357 = arith.addf %353, %356 : vector<16x1xf32>
    %358 = math.rsqrt %357 : vector<16x1xf32>
    %359 = vector.broadcast %358 : vector<16x1xf32> to vector<16x32xf32>
    %360 = arith.mulf %355, %359 : vector<16x32xf32>
    %c0_149 = arith.constant 0 : index
    %c0_150 = arith.constant 0 : index
    %361 = vector.load %arg28[%c0_149, %c0_150] : memref<1x32xf32, #tpu.memory_space<vmem>>, vector<1x32xf32>
    %362 = vector.broadcast %361 : vector<1x32xf32> to vector<16x32xf32>
    %363 = arith.mulf %360, %362 : vector<16x32xf32>
    %c0_151 = arith.constant 0 : index
    %c0_152 = arith.constant 0 : index
    %364 = vector.load %arg29[%c0_151, %c0_152] : memref<1x32xf32, #tpu.memory_space<vmem>>, vector<1x32xf32>
    %365 = vector.broadcast %364 : vector<1x32xf32> to vector<16x32xf32>
    %366 = arith.addf %363, %365 : vector<16x32xf32>
    %c0_153 = arith.constant 0 : index
    %c0_154 = arith.constant 0 : index
    %367 = vector.load %arg5[%c0_153, %c0_154] : memref<32x128xf32, #tpu.memory_space<vmem>>, vector<32x128xf32>
    %cst_155 = arith.constant dense<0.000000e+00> : vector<16x128xf32>
    %368 = tpu.matmul %366, %367, %cst_155 {dimension_numbers = #tpu.dot_dimension_numbers<[1], [0], [0], [1], [0, 0, 1, 1], [], []>} : vector<16x32xf32>, vector<32x128xf32>, vector<16x128xf32> -> vector<16x128xf32>
    %c0_156 = arith.constant 0 : index
    %c0_157 = arith.constant 0 : index
    %369 = vector.load %arg6[%c0_156, %c0_157] : memref<1x128xf32, #tpu.memory_space<vmem>>, vector<1x128xf32>
    %370 = vector.broadcast %369 : vector<1x128xf32> to vector<16x128xf32>
    %371 = arith.addf %368, %370 : vector<16x128xf32>
    %cst_158 = arith.constant 0.000000e+00 : f32
    %372 = vector.broadcast %cst_158 : f32 to vector<16x128xf32>
    %373 = arith.maximumf %371, %372 : vector<16x128xf32>
    %c0_159 = arith.constant 0 : index
    %c0_160 = arith.constant 0 : index
    %374 = vector.load %arg7[%c0_159, %c0_160] : memref<128x32xf32, #tpu.memory_space<vmem>>, vector<128x32xf32>
    %cst_161 = arith.constant dense<0.000000e+00> : vector<16x32xf32>
    %375 = tpu.matmul %373, %374, %cst_161 {dimension_numbers = #tpu.dot_dimension_numbers<[1], [0], [0], [1], [0, 0, 1, 1], [], []>} : vector<16x128xf32>, vector<128x32xf32>, vector<16x32xf32> -> vector<16x32xf32>
    %c0_162 = arith.constant 0 : index
    %c0_163 = arith.constant 0 : index
    %376 = vector.load %arg8[%c0_162, %c0_163] : memref<1x32xf32, #tpu.memory_space<vmem>>, vector<1x32xf32>
    %377 = vector.broadcast %376 : vector<1x32xf32> to vector<16x32xf32>
    %378 = arith.addf %375, %377 : vector<16x32xf32>
    %379 = arith.addf %366, %378 : vector<16x32xf32>
    %cst_164 = arith.constant dense<0.000000e+00> : vector<16xf32>
    %380 = vector.multi_reduction <add>, %379, %cst_164 [1] : vector<16x32xf32> to vector<16xf32>
    %381 = vector.shape_cast %380 : vector<16xf32> to vector<16x1xf32>
    %cst_165 = arith.constant 3.200000e+01 : f32
    %382 = vector.broadcast %cst_165 : f32 to vector<16x1xf32>
    %383 = arith.divf %381, %382 : vector<16x1xf32>
    %384 = vector.broadcast %383 : vector<16x1xf32> to vector<16x32xf32>
    %385 = arith.subf %379, %384 : vector<16x32xf32>
    %386 = arith.mulf %385, %385 : vector<16x32xf32>
    %cst_166 = arith.constant dense<0.000000e+00> : vector<16xf32>
    %387 = vector.multi_reduction <add>, %386, %cst_166 [1] : vector<16x32xf32> to vector<16xf32>
    %388 = vector.shape_cast %387 : vector<16xf32> to vector<16x1xf32>
    %cst_167 = arith.constant 3.200000e+01 : f32
    %389 = vector.broadcast %cst_167 : f32 to vector<16x1xf32>
    %390 = arith.divf %388, %389 : vector<16x1xf32>
    %391 = vector.broadcast %383 : vector<16x1xf32> to vector<16x32xf32>
    %392 = arith.subf %379, %391 : vector<16x32xf32>
    %cst_168 = arith.constant 9.99999974E-6 : f32
    %393 = vector.broadcast %cst_168 : f32 to vector<16x1xf32>
    %394 = arith.addf %390, %393 : vector<16x1xf32>
    %395 = math.rsqrt %394 : vector<16x1xf32>
    %396 = vector.broadcast %395 : vector<16x1xf32> to vector<16x32xf32>
    %397 = arith.mulf %392, %396 : vector<16x32xf32>
    %c0_169 = arith.constant 0 : index
    %c0_170 = arith.constant 0 : index
    %398 = vector.load %arg30[%c0_169, %c0_170] : memref<1x32xf32, #tpu.memory_space<vmem>>, vector<1x32xf32>
    %399 = vector.broadcast %398 : vector<1x32xf32> to vector<16x32xf32>
    %400 = arith.mulf %397, %399 : vector<16x32xf32>
    %c0_171 = arith.constant 0 : index
    %c0_172 = arith.constant 0 : index
    %401 = vector.load %arg31[%c0_171, %c0_172] : memref<1x32xf32, #tpu.memory_space<vmem>>, vector<1x32xf32>
    %402 = vector.broadcast %401 : vector<1x32xf32> to vector<16x32xf32>
    %403 = arith.addf %400, %402 : vector<16x32xf32>
    %c0_173 = arith.constant 0 : index
    %c0_174 = arith.constant 0 : index
    %404 = vector.load %arg46[%c0_173, %c0_174] : memref<16x8xf32, #tpu.memory_space<vmem>>, vector<16x8xf32>
    %cst_175 = arith.constant dense<0.000000e+00> : vector<16xf32>
    %405 = vector.multi_reduction <add>, %403, %cst_175 [1] : vector<16x32xf32> to vector<16xf32>
    %406 = vector.shape_cast %405 : vector<16xf32> to vector<16x1xf32>
    %cst_176 = arith.constant 3.200000e+01 : f32
    %407 = vector.broadcast %cst_176 : f32 to vector<16x1xf32>
    %408 = arith.divf %406, %407 : vector<16x1xf32>
    %409 = vector.broadcast %408 : vector<16x1xf32> to vector<16x32xf32>
    %410 = arith.subf %403, %409 : vector<16x32xf32>
    %411 = arith.mulf %410, %410 : vector<16x32xf32>
    %cst_177 = arith.constant dense<0.000000e+00> : vector<16xf32>
    %412 = vector.multi_reduction <add>, %411, %cst_177 [1] : vector<16x32xf32> to vector<16xf32>
    %413 = vector.shape_cast %412 : vector<16xf32> to vector<16x1xf32>
    %cst_178 = arith.constant 3.200000e+01 : f32
    %414 = vector.broadcast %cst_178 : f32 to vector<16x1xf32>
    %415 = arith.divf %413, %414 : vector<16x1xf32>
    %416 = vector.broadcast %408 : vector<16x1xf32> to vector<16x32xf32>
    %417 = arith.subf %403, %416 : vector<16x32xf32>
    %cst_179 = arith.constant 9.99999974E-6 : f32
    %418 = vector.broadcast %cst_179 : f32 to vector<16x1xf32>
    %419 = arith.addf %415, %418 : vector<16x1xf32>
    %420 = math.rsqrt %419 : vector<16x1xf32>
    %421 = vector.broadcast %420 : vector<16x1xf32> to vector<16x32xf32>
    %422 = arith.mulf %417, %421 : vector<16x32xf32>
    %c0_180 = arith.constant 0 : index
    %c0_181 = arith.constant 0 : index
    %423 = vector.load %arg36[%c0_180, %c0_181] : memref<1x32xf32, #tpu.memory_space<vmem>>, vector<1x32xf32>
    %424 = vector.broadcast %423 : vector<1x32xf32> to vector<16x32xf32>
    %425 = arith.mulf %422, %424 : vector<16x32xf32>
    %c0_182 = arith.constant 0 : index
    %c0_183 = arith.constant 0 : index
    %426 = vector.load %arg37[%c0_182, %c0_183] : memref<1x32xf32, #tpu.memory_space<vmem>>, vector<1x32xf32>
    %427 = vector.broadcast %426 : vector<1x32xf32> to vector<16x32xf32>
    %428 = arith.addf %425, %427 : vector<16x32xf32>
    %c0_184 = arith.constant 0 : index
    %c0_185 = arith.constant 0 : index
    %429 = vector.load %arg51[%c0_184, %c0_185] : memref<32x32xf32, #tpu.memory_space<vmem>>, vector<32x32xf32>
    %cst_186 = arith.constant dense<0.000000e+00> : vector<16x32xf32>
    %430 = tpu.matmul %428, %429, %cst_186 {dimension_numbers = #tpu.dot_dimension_numbers<[1], [0], [0], [1], [0, 0, 1, 1], [], []>} : vector<16x32xf32>, vector<32x32xf32>, vector<16x32xf32> -> vector<16x32xf32>
    %c0_187 = arith.constant 0 : index
    %c0_188 = arith.constant 0 : index
    %431 = vector.load %arg52[%c0_187, %c0_188] : memref<1x32xf32, #tpu.memory_space<vmem>>, vector<1x32xf32>
    %432 = vector.broadcast %431 : vector<1x32xf32> to vector<16x32xf32>
    %433 = arith.addf %430, %432 : vector<16x32xf32>
    %c0_189 = arith.constant 0 : index
    %c0_190 = arith.constant 0 : index
    %434 = vector.load %arg47[%c0_189, %c0_190] : memref<32x32xf32, #tpu.memory_space<vmem>>, vector<32x32xf32>
    %cst_191 = arith.constant dense<0.000000e+00> : vector<16x32xf32>
    %435 = tpu.matmul %428, %434, %cst_191 {dimension_numbers = #tpu.dot_dimension_numbers<[1], [0], [0], [1], [0, 0, 1, 1], [], []>} : vector<16x32xf32>, vector<32x32xf32>, vector<16x32xf32> -> vector<16x32xf32>
    %c0_192 = arith.constant 0 : index
    %c0_193 = arith.constant 0 : index
    %436 = vector.load %arg48[%c0_192, %c0_193] : memref<1x32xf32, #tpu.memory_space<vmem>>, vector<1x32xf32>
    %437 = vector.broadcast %436 : vector<1x32xf32> to vector<16x32xf32>
    %438 = arith.addf %435, %437 : vector<16x32xf32>
    %c0_194 = arith.constant 0 : index
    %c0_195 = arith.constant 0 : index
    %439 = vector.load %arg53[%c0_194, %c0_195] : memref<32x32xf32, #tpu.memory_space<vmem>>, vector<32x32xf32>
    %cst_196 = arith.constant dense<0.000000e+00> : vector<16x32xf32>
    %440 = tpu.matmul %428, %439, %cst_196 {dimension_numbers = #tpu.dot_dimension_numbers<[1], [0], [0], [1], [0, 0, 1, 1], [], []>} : vector<16x32xf32>, vector<32x32xf32>, vector<16x32xf32> -> vector<16x32xf32>
    %c0_197 = arith.constant 0 : index
    %c0_198 = arith.constant 0 : index
    %441 = vector.load %arg54[%c0_197, %c0_198] : memref<1x32xf32, #tpu.memory_space<vmem>>, vector<1x32xf32>
    %442 = vector.broadcast %441 : vector<1x32xf32> to vector<16x32xf32>
    %443 = arith.addf %440, %442 : vector<16x32xf32>
    %444 = vector.extract_strided_slice %433 {offsets = [0, 0], sizes = [16, 8], strides = [1, 1]} : vector<16x32xf32> to vector<16x8xf32>
    %445 = vector.extract_strided_slice %438 {offsets = [0, 0], sizes = [16, 8], strides = [1, 1]} : vector<16x32xf32> to vector<16x8xf32>
    %446 = vector.extract_strided_slice %443 {offsets = [0, 0], sizes = [16, 8], strides = [1, 1]} : vector<16x32xf32> to vector<16x8xf32>
    %cst_199 = arith.constant 0.594603539 : f32
    %447 = vector.broadcast %cst_199 : f32 to vector<16x8xf32>
    %448 = arith.mulf %444, %447 : vector<16x8xf32>
    %cst_200 = arith.constant dense<0.000000e+00> : vector<16x16xf32>
    %449 = tpu.matmul %448, %404, %cst_200 {dimension_numbers = #tpu.dot_dimension_numbers<[1], [1], [0], [0], [0, 0, 1, 0], [], []>} : vector<16x8xf32>, vector<16x8xf32>, vector<16x16xf32> -> vector<16x16xf32>
    %cst_201 = arith.constant 0.594603539 : f32
    %450 = vector.broadcast %cst_201 : f32 to vector<16x8xf32>
    %451 = arith.mulf %445, %450 : vector<16x8xf32>
    %cst_202 = arith.constant dense<0.000000e+00> : vector<16x16xf32>
    %452 = tpu.matmul %451, %404, %cst_202 {dimension_numbers = #tpu.dot_dimension_numbers<[1], [1], [0], [0], [0, 0, 1, 0], [], []>} : vector<16x8xf32>, vector<16x8xf32>, vector<16x16xf32> -> vector<16x16xf32>
    %453 = arith.mulf %444, %444 : vector<16x8xf32>
    %cst_203 = arith.constant dense<0.000000e+00> : vector<16xf32>
    %454 = vector.multi_reduction <add>, %453, %cst_203 [1] : vector<16x8xf32> to vector<16xf32>
    %455 = vector.shape_cast %454 : vector<16xf32> to vector<16x1xf32>
    %cst_204 = arith.constant 5.000000e-01 : f32
    %456 = vector.broadcast %cst_204 : f32 to vector<16x1xf32>
    %457 = arith.mulf %455, %456 : vector<16x1xf32>
    %cst_205 = arith.constant 0.353553385 : f32
    %458 = vector.broadcast %cst_205 : f32 to vector<16x1xf32>
    %459 = arith.mulf %457, %458 : vector<16x1xf32>
    %460 = arith.mulf %445, %445 : vector<16x8xf32>
    %cst_206 = arith.constant dense<0.000000e+00> : vector<16xf32>
    %461 = vector.multi_reduction <add>, %460, %cst_206 [1] : vector<16x8xf32> to vector<16xf32>
    %462 = vector.shape_cast %461 : vector<16xf32> to vector<16x1xf32>
    %cst_207 = arith.constant 5.000000e-01 : f32
    %463 = vector.broadcast %cst_207 : f32 to vector<16x1xf32>
    %464 = arith.mulf %462, %463 : vector<16x1xf32>
    %cst_208 = arith.constant 0.353553385 : f32
    %465 = vector.broadcast %cst_208 : f32 to vector<16x1xf32>
    %466 = arith.mulf %464, %465 : vector<16x1xf32>
    %467 = vector.broadcast %459 : vector<16x1xf32> to vector<16x16xf32>
    %468 = arith.subf %449, %467 : vector<16x16xf32>
    %cst_209 = arith.constant dense<0xFF800000> : vector<16xf32>
    %469 = vector.multi_reduction <maximumf>, %449, %cst_209 [1] : vector<16x16xf32> to vector<16xf32>
    %470 = vector.shape_cast %469 : vector<16xf32> to vector<16x1xf32>
    %471 = vector.broadcast %470 : vector<16x1xf32> to vector<16x16xf32>
    %472 = arith.subf %468, %471 : vector<16x16xf32>
    %473 = math.exp %472 : vector<16x16xf32>
    %cst_210 = arith.constant 9.99999974E-5 : f32
    %474 = vector.broadcast %cst_210 : f32 to vector<16x16xf32>
    %475 = arith.addf %473, %474 : vector<16x16xf32>
    %cst_211 = arith.constant 2.500000e-01 : f32
    %476 = vector.broadcast %cst_211 : f32 to vector<16x16xf32>
    %477 = arith.mulf %476, %475 : vector<16x16xf32>
    %478 = vector.broadcast %466 : vector<16x1xf32> to vector<16x16xf32>
    %479 = arith.subf %452, %478 : vector<16x16xf32>
    %480 = vector.shape_cast %452 : vector<16x16xf32> to vector<1x16x16xf32>
    %cst_212 = arith.constant dense<0xFF800000> : vector<1xf32>
    %481 = vector.multi_reduction <maximumf>, %480, %cst_212 [1, 2] : vector<1x16x16xf32> to vector<1xf32>
    %482 = vector.shape_cast %481 : vector<1xf32> to vector<1x1x1xf32>
    %483 = vector.extract %482[0, 0, 0] : f32 from vector<1x1x1xf32>
    %484 = vector.broadcast %483 : f32 to vector<1x1xf32>
    %485 = vector.broadcast %484 : vector<1x1xf32> to vector<16x16xf32>
    %486 = arith.subf %479, %485 : vector<16x16xf32>
    %487 = math.exp %486 : vector<16x16xf32>
    %cst_213 = arith.constant 9.99999974E-5 : f32
    %488 = vector.broadcast %cst_213 : f32 to vector<16x16xf32>
    %489 = arith.addf %487, %488 : vector<16x16xf32>
    %cst_214 = arith.constant 2.500000e-01 : f32
    %490 = vector.broadcast %cst_214 : f32 to vector<16x16xf32>
    %491 = arith.mulf %490, %489 : vector<16x16xf32>
    %cst_215 = arith.constant dense<0.000000e+00> : vector<16xf32>
    %492 = vector.multi_reduction <add>, %491, %cst_215 [0] : vector<16x16xf32> to vector<16xf32>
    %493 = vector.shape_cast %492 : vector<16xf32> to vector<1x16xf32>
    %494 = vector.broadcast %493 : vector<1x16xf32> to vector<16x16xf32>
    %495 = arith.mulf %477, %494 : vector<16x16xf32>
    %cst_216 = arith.constant dense<0.000000e+00> : vector<16xf32>
    %496 = vector.multi_reduction <add>, %495, %cst_216 [1] : vector<16x16xf32> to vector<16xf32>
    %497 = vector.shape_cast %496 : vector<16xf32> to vector<16x1xf32>
    %498 = tpu.reciprocal %497 {approx = true} : vector<16x1xf32> -> vector<16x1xf32>
    %cst_217 = arith.constant dense<0.000000e+00> : vector<16x8xf32>
    %499 = tpu.matmul %491, %446, %cst_217 {dimension_numbers = #tpu.dot_dimension_numbers<[0], [0], [1], [1], [0, 1, 1, 1], [], []>} : vector<16x16xf32>, vector<16x8xf32>, vector<16x8xf32> -> vector<16x8xf32>
    %cst_218 = arith.constant dense<0.000000e+00> : vector<16x8xf32>
    %500 = tpu.matmul %477, %499, %cst_218 {dimension_numbers = #tpu.dot_dimension_numbers<[1], [0], [0], [1], [0, 0, 1, 1], [], []>} : vector<16x16xf32>, vector<16x8xf32>, vector<16x8xf32> -> vector<16x8xf32>
    %501 = vector.broadcast %498 : vector<16x1xf32> to vector<16x8xf32>
    %502 = arith.mulf %500, %501 : vector<16x8xf32>
    %503 = vector.extract_strided_slice %433 {offsets = [0, 8], sizes = [16, 8], strides = [1, 1]} : vector<16x32xf32> to vector<16x8xf32>
    %504 = vector.extract_strided_slice %438 {offsets = [0, 8], sizes = [16, 8], strides = [1, 1]} : vector<16x32xf32> to vector<16x8xf32>
    %505 = vector.extract_strided_slice %443 {offsets = [0, 8], sizes = [16, 8], strides = [1, 1]} : vector<16x32xf32> to vector<16x8xf32>
    %cst_219 = arith.constant 0.594603539 : f32
    %506 = vector.broadcast %cst_219 : f32 to vector<16x8xf32>
    %507 = arith.mulf %503, %506 : vector<16x8xf32>
    %cst_220 = arith.constant dense<0.000000e+00> : vector<16x16xf32>
    %508 = tpu.matmul %507, %404, %cst_220 {dimension_numbers = #tpu.dot_dimension_numbers<[1], [1], [0], [0], [0, 0, 1, 0], [], []>} : vector<16x8xf32>, vector<16x8xf32>, vector<16x16xf32> -> vector<16x16xf32>
    %cst_221 = arith.constant 0.594603539 : f32
    %509 = vector.broadcast %cst_221 : f32 to vector<16x8xf32>
    %510 = arith.mulf %504, %509 : vector<16x8xf32>
    %cst_222 = arith.constant dense<0.000000e+00> : vector<16x16xf32>
    %511 = tpu.matmul %510, %404, %cst_222 {dimension_numbers = #tpu.dot_dimension_numbers<[1], [1], [0], [0], [0, 0, 1, 0], [], []>} : vector<16x8xf32>, vector<16x8xf32>, vector<16x16xf32> -> vector<16x16xf32>
    %512 = arith.mulf %503, %503 : vector<16x8xf32>
    %cst_223 = arith.constant dense<0.000000e+00> : vector<16xf32>
    %513 = vector.multi_reduction <add>, %512, %cst_223 [1] : vector<16x8xf32> to vector<16xf32>
    %514 = vector.shape_cast %513 : vector<16xf32> to vector<16x1xf32>
    %cst_224 = arith.constant 5.000000e-01 : f32
    %515 = vector.broadcast %cst_224 : f32 to vector<16x1xf32>
    %516 = arith.mulf %514, %515 : vector<16x1xf32>
    %cst_225 = arith.constant 0.353553385 : f32
    %517 = vector.broadcast %cst_225 : f32 to vector<16x1xf32>
    %518 = arith.mulf %516, %517 : vector<16x1xf32>
    %519 = arith.mulf %504, %504 : vector<16x8xf32>
    %cst_226 = arith.constant dense<0.000000e+00> : vector<16xf32>
    %520 = vector.multi_reduction <add>, %519, %cst_226 [1] : vector<16x8xf32> to vector<16xf32>
    %521 = vector.shape_cast %520 : vector<16xf32> to vector<16x1xf32>
    %cst_227 = arith.constant 5.000000e-01 : f32
    %522 = vector.broadcast %cst_227 : f32 to vector<16x1xf32>
    %523 = arith.mulf %521, %522 : vector<16x1xf32>
    %cst_228 = arith.constant 0.353553385 : f32
    %524 = vector.broadcast %cst_228 : f32 to vector<16x1xf32>
    %525 = arith.mulf %523, %524 : vector<16x1xf32>
    %526 = vector.broadcast %518 : vector<16x1xf32> to vector<16x16xf32>
    %527 = arith.subf %508, %526 : vector<16x16xf32>
    %cst_229 = arith.constant dense<0xFF800000> : vector<16xf32>
    %528 = vector.multi_reduction <maximumf>, %508, %cst_229 [1] : vector<16x16xf32> to vector<16xf32>
    %529 = vector.shape_cast %528 : vector<16xf32> to vector<16x1xf32>
    %530 = vector.broadcast %529 : vector<16x1xf32> to vector<16x16xf32>
    %531 = arith.subf %527, %530 : vector<16x16xf32>
    %532 = math.exp %531 : vector<16x16xf32>
    %cst_230 = arith.constant 9.99999974E-5 : f32
    %533 = vector.broadcast %cst_230 : f32 to vector<16x16xf32>
    %534 = arith.addf %532, %533 : vector<16x16xf32>
    %cst_231 = arith.constant 2.500000e-01 : f32
    %535 = vector.broadcast %cst_231 : f32 to vector<16x16xf32>
    %536 = arith.mulf %535, %534 : vector<16x16xf32>
    %537 = vector.broadcast %525 : vector<16x1xf32> to vector<16x16xf32>
    %538 = arith.subf %511, %537 : vector<16x16xf32>
    %539 = vector.shape_cast %511 : vector<16x16xf32> to vector<1x16x16xf32>
    %cst_232 = arith.constant dense<0xFF800000> : vector<1xf32>
    %540 = vector.multi_reduction <maximumf>, %539, %cst_232 [1, 2] : vector<1x16x16xf32> to vector<1xf32>
    %541 = vector.shape_cast %540 : vector<1xf32> to vector<1x1x1xf32>
    %542 = vector.extract %541[0, 0, 0] : f32 from vector<1x1x1xf32>
    %543 = vector.broadcast %542 : f32 to vector<1x1xf32>
    %544 = vector.broadcast %543 : vector<1x1xf32> to vector<16x16xf32>
    %545 = arith.subf %538, %544 : vector<16x16xf32>
    %546 = math.exp %545 : vector<16x16xf32>
    %cst_233 = arith.constant 9.99999974E-5 : f32
    %547 = vector.broadcast %cst_233 : f32 to vector<16x16xf32>
    %548 = arith.addf %546, %547 : vector<16x16xf32>
    %cst_234 = arith.constant 2.500000e-01 : f32
    %549 = vector.broadcast %cst_234 : f32 to vector<16x16xf32>
    %550 = arith.mulf %549, %548 : vector<16x16xf32>
    %cst_235 = arith.constant dense<0.000000e+00> : vector<16xf32>
    %551 = vector.multi_reduction <add>, %550, %cst_235 [0] : vector<16x16xf32> to vector<16xf32>
    %552 = vector.shape_cast %551 : vector<16xf32> to vector<1x16xf32>
    %553 = vector.broadcast %552 : vector<1x16xf32> to vector<16x16xf32>
    %554 = arith.mulf %536, %553 : vector<16x16xf32>
    %cst_236 = arith.constant dense<0.000000e+00> : vector<16xf32>
    %555 = vector.multi_reduction <add>, %554, %cst_236 [1] : vector<16x16xf32> to vector<16xf32>
    %556 = vector.shape_cast %555 : vector<16xf32> to vector<16x1xf32>
    %557 = tpu.reciprocal %556 {approx = true} : vector<16x1xf32> -> vector<16x1xf32>
    %cst_237 = arith.constant dense<0.000000e+00> : vector<16x8xf32>
    %558 = tpu.matmul %550, %505, %cst_237 {dimension_numbers = #tpu.dot_dimension_numbers<[0], [0], [1], [1], [0, 1, 1, 1], [], []>} : vector<16x16xf32>, vector<16x8xf32>, vector<16x8xf32> -> vector<16x8xf32>
    %cst_238 = arith.constant dense<0.000000e+00> : vector<16x8xf32>
    %559 = tpu.matmul %536, %558, %cst_238 {dimension_numbers = #tpu.dot_dimension_numbers<[1], [0], [0], [1], [0, 0, 1, 1], [], []>} : vector<16x16xf32>, vector<16x8xf32>, vector<16x8xf32> -> vector<16x8xf32>
    %560 = vector.broadcast %557 : vector<16x1xf32> to vector<16x8xf32>
    %561 = arith.mulf %559, %560 : vector<16x8xf32>
    %562 = vector.extract_strided_slice %433 {offsets = [0, 16], sizes = [16, 8], strides = [1, 1]} : vector<16x32xf32> to vector<16x8xf32>
    %563 = vector.extract_strided_slice %438 {offsets = [0, 16], sizes = [16, 8], strides = [1, 1]} : vector<16x32xf32> to vector<16x8xf32>
    %564 = vector.extract_strided_slice %443 {offsets = [0, 16], sizes = [16, 8], strides = [1, 1]} : vector<16x32xf32> to vector<16x8xf32>
    %cst_239 = arith.constant 0.594603539 : f32
    %565 = vector.broadcast %cst_239 : f32 to vector<16x8xf32>
    %566 = arith.mulf %562, %565 : vector<16x8xf32>
    %cst_240 = arith.constant dense<0.000000e+00> : vector<16x16xf32>
    %567 = tpu.matmul %566, %404, %cst_240 {dimension_numbers = #tpu.dot_dimension_numbers<[1], [1], [0], [0], [0, 0, 1, 0], [], []>} : vector<16x8xf32>, vector<16x8xf32>, vector<16x16xf32> -> vector<16x16xf32>
    %cst_241 = arith.constant 0.594603539 : f32
    %568 = vector.broadcast %cst_241 : f32 to vector<16x8xf32>
    %569 = arith.mulf %563, %568 : vector<16x8xf32>
    %cst_242 = arith.constant dense<0.000000e+00> : vector<16x16xf32>
    %570 = tpu.matmul %569, %404, %cst_242 {dimension_numbers = #tpu.dot_dimension_numbers<[1], [1], [0], [0], [0, 0, 1, 0], [], []>} : vector<16x8xf32>, vector<16x8xf32>, vector<16x16xf32> -> vector<16x16xf32>
    %571 = arith.mulf %562, %562 : vector<16x8xf32>
    %cst_243 = arith.constant dense<0.000000e+00> : vector<16xf32>
    %572 = vector.multi_reduction <add>, %571, %cst_243 [1] : vector<16x8xf32> to vector<16xf32>
    %573 = vector.shape_cast %572 : vector<16xf32> to vector<16x1xf32>
    %cst_244 = arith.constant 5.000000e-01 : f32
    %574 = vector.broadcast %cst_244 : f32 to vector<16x1xf32>
    %575 = arith.mulf %573, %574 : vector<16x1xf32>
    %cst_245 = arith.constant 0.353553385 : f32
    %576 = vector.broadcast %cst_245 : f32 to vector<16x1xf32>
    %577 = arith.mulf %575, %576 : vector<16x1xf32>
    %578 = arith.mulf %563, %563 : vector<16x8xf32>
    %cst_246 = arith.constant dense<0.000000e+00> : vector<16xf32>
    %579 = vector.multi_reduction <add>, %578, %cst_246 [1] : vector<16x8xf32> to vector<16xf32>
    %580 = vector.shape_cast %579 : vector<16xf32> to vector<16x1xf32>
    %cst_247 = arith.constant 5.000000e-01 : f32
    %581 = vector.broadcast %cst_247 : f32 to vector<16x1xf32>
    %582 = arith.mulf %580, %581 : vector<16x1xf32>
    %cst_248 = arith.constant 0.353553385 : f32
    %583 = vector.broadcast %cst_248 : f32 to vector<16x1xf32>
    %584 = arith.mulf %582, %583 : vector<16x1xf32>
    %585 = vector.broadcast %577 : vector<16x1xf32> to vector<16x16xf32>
    %586 = arith.subf %567, %585 : vector<16x16xf32>
    %cst_249 = arith.constant dense<0xFF800000> : vector<16xf32>
    %587 = vector.multi_reduction <maximumf>, %567, %cst_249 [1] : vector<16x16xf32> to vector<16xf32>
    %588 = vector.shape_cast %587 : vector<16xf32> to vector<16x1xf32>
    %589 = vector.broadcast %588 : vector<16x1xf32> to vector<16x16xf32>
    %590 = arith.subf %586, %589 : vector<16x16xf32>
    %591 = math.exp %590 : vector<16x16xf32>
    %cst_250 = arith.constant 9.99999974E-5 : f32
    %592 = vector.broadcast %cst_250 : f32 to vector<16x16xf32>
    %593 = arith.addf %591, %592 : vector<16x16xf32>
    %cst_251 = arith.constant 2.500000e-01 : f32
    %594 = vector.broadcast %cst_251 : f32 to vector<16x16xf32>
    %595 = arith.mulf %594, %593 : vector<16x16xf32>
    %596 = vector.broadcast %584 : vector<16x1xf32> to vector<16x16xf32>
    %597 = arith.subf %570, %596 : vector<16x16xf32>
    %598 = vector.shape_cast %570 : vector<16x16xf32> to vector<1x16x16xf32>
    %cst_252 = arith.constant dense<0xFF800000> : vector<1xf32>
    %599 = vector.multi_reduction <maximumf>, %598, %cst_252 [1, 2] : vector<1x16x16xf32> to vector<1xf32>
    %600 = vector.shape_cast %599 : vector<1xf32> to vector<1x1x1xf32>
    %601 = vector.extract %600[0, 0, 0] : f32 from vector<1x1x1xf32>
    %602 = vector.broadcast %601 : f32 to vector<1x1xf32>
    %603 = vector.broadcast %602 : vector<1x1xf32> to vector<16x16xf32>
    %604 = arith.subf %597, %603 : vector<16x16xf32>
    %605 = math.exp %604 : vector<16x16xf32>
    %cst_253 = arith.constant 9.99999974E-5 : f32
    %606 = vector.broadcast %cst_253 : f32 to vector<16x16xf32>
    %607 = arith.addf %605, %606 : vector<16x16xf32>
    %cst_254 = arith.constant 2.500000e-01 : f32
    %608 = vector.broadcast %cst_254 : f32 to vector<16x16xf32>
    %609 = arith.mulf %608, %607 : vector<16x16xf32>
    %cst_255 = arith.constant dense<0.000000e+00> : vector<16xf32>
    %610 = vector.multi_reduction <add>, %609, %cst_255 [0] : vector<16x16xf32> to vector<16xf32>
    %611 = vector.shape_cast %610 : vector<16xf32> to vector<1x16xf32>
    %612 = vector.broadcast %611 : vector<1x16xf32> to vector<16x16xf32>
    %613 = arith.mulf %595, %612 : vector<16x16xf32>
    %cst_256 = arith.constant dense<0.000000e+00> : vector<16xf32>
    %614 = vector.multi_reduction <add>, %613, %cst_256 [1] : vector<16x16xf32> to vector<16xf32>
    %615 = vector.shape_cast %614 : vector<16xf32> to vector<16x1xf32>
    %616 = tpu.reciprocal %615 {approx = true} : vector<16x1xf32> -> vector<16x1xf32>
    %cst_257 = arith.constant dense<0.000000e+00> : vector<16x8xf32>
    %617 = tpu.matmul %609, %564, %cst_257 {dimension_numbers = #tpu.dot_dimension_numbers<[0], [0], [1], [1], [0, 1, 1, 1], [], []>} : vector<16x16xf32>, vector<16x8xf32>, vector<16x8xf32> -> vector<16x8xf32>
    %cst_258 = arith.constant dense<0.000000e+00> : vector<16x8xf32>
    %618 = tpu.matmul %595, %617, %cst_258 {dimension_numbers = #tpu.dot_dimension_numbers<[1], [0], [0], [1], [0, 0, 1, 1], [], []>} : vector<16x16xf32>, vector<16x8xf32>, vector<16x8xf32> -> vector<16x8xf32>
    %619 = vector.broadcast %616 : vector<16x1xf32> to vector<16x8xf32>
    %620 = arith.mulf %618, %619 : vector<16x8xf32>
    %621 = vector.extract_strided_slice %433 {offsets = [0, 24], sizes = [16, 8], strides = [1, 1]} : vector<16x32xf32> to vector<16x8xf32>
    %622 = vector.extract_strided_slice %438 {offsets = [0, 24], sizes = [16, 8], strides = [1, 1]} : vector<16x32xf32> to vector<16x8xf32>
    %623 = vector.extract_strided_slice %443 {offsets = [0, 24], sizes = [16, 8], strides = [1, 1]} : vector<16x32xf32> to vector<16x8xf32>
    %cst_259 = arith.constant 0.594603539 : f32
    %624 = vector.broadcast %cst_259 : f32 to vector<16x8xf32>
    %625 = arith.mulf %621, %624 : vector<16x8xf32>
    %cst_260 = arith.constant dense<0.000000e+00> : vector<16x16xf32>
    %626 = tpu.matmul %625, %404, %cst_260 {dimension_numbers = #tpu.dot_dimension_numbers<[1], [1], [0], [0], [0, 0, 1, 0], [], []>} : vector<16x8xf32>, vector<16x8xf32>, vector<16x16xf32> -> vector<16x16xf32>
    %cst_261 = arith.constant 0.594603539 : f32
    %627 = vector.broadcast %cst_261 : f32 to vector<16x8xf32>
    %628 = arith.mulf %622, %627 : vector<16x8xf32>
    %cst_262 = arith.constant dense<0.000000e+00> : vector<16x16xf32>
    %629 = tpu.matmul %628, %404, %cst_262 {dimension_numbers = #tpu.dot_dimension_numbers<[1], [1], [0], [0], [0, 0, 1, 0], [], []>} : vector<16x8xf32>, vector<16x8xf32>, vector<16x16xf32> -> vector<16x16xf32>
    %630 = arith.mulf %621, %621 : vector<16x8xf32>
    %cst_263 = arith.constant dense<0.000000e+00> : vector<16xf32>
    %631 = vector.multi_reduction <add>, %630, %cst_263 [1] : vector<16x8xf32> to vector<16xf32>
    %632 = vector.shape_cast %631 : vector<16xf32> to vector<16x1xf32>
    %cst_264 = arith.constant 5.000000e-01 : f32
    %633 = vector.broadcast %cst_264 : f32 to vector<16x1xf32>
    %634 = arith.mulf %632, %633 : vector<16x1xf32>
    %cst_265 = arith.constant 0.353553385 : f32
    %635 = vector.broadcast %cst_265 : f32 to vector<16x1xf32>
    %636 = arith.mulf %634, %635 : vector<16x1xf32>
    %637 = arith.mulf %622, %622 : vector<16x8xf32>
    %cst_266 = arith.constant dense<0.000000e+00> : vector<16xf32>
    %638 = vector.multi_reduction <add>, %637, %cst_266 [1] : vector<16x8xf32> to vector<16xf32>
    %639 = vector.shape_cast %638 : vector<16xf32> to vector<16x1xf32>
    %cst_267 = arith.constant 5.000000e-01 : f32
    %640 = vector.broadcast %cst_267 : f32 to vector<16x1xf32>
    %641 = arith.mulf %639, %640 : vector<16x1xf32>
    %cst_268 = arith.constant 0.353553385 : f32
    %642 = vector.broadcast %cst_268 : f32 to vector<16x1xf32>
    %643 = arith.mulf %641, %642 : vector<16x1xf32>
    %644 = vector.broadcast %636 : vector<16x1xf32> to vector<16x16xf32>
    %645 = arith.subf %626, %644 : vector<16x16xf32>
    %cst_269 = arith.constant dense<0xFF800000> : vector<16xf32>
    %646 = vector.multi_reduction <maximumf>, %626, %cst_269 [1] : vector<16x16xf32> to vector<16xf32>
    %647 = vector.shape_cast %646 : vector<16xf32> to vector<16x1xf32>
    %648 = vector.broadcast %647 : vector<16x1xf32> to vector<16x16xf32>
    %649 = arith.subf %645, %648 : vector<16x16xf32>
    %650 = math.exp %649 : vector<16x16xf32>
    %cst_270 = arith.constant 9.99999974E-5 : f32
    %651 = vector.broadcast %cst_270 : f32 to vector<16x16xf32>
    %652 = arith.addf %650, %651 : vector<16x16xf32>
    %cst_271 = arith.constant 2.500000e-01 : f32
    %653 = vector.broadcast %cst_271 : f32 to vector<16x16xf32>
    %654 = arith.mulf %653, %652 : vector<16x16xf32>
    %655 = vector.broadcast %643 : vector<16x1xf32> to vector<16x16xf32>
    %656 = arith.subf %629, %655 : vector<16x16xf32>
    %657 = vector.shape_cast %629 : vector<16x16xf32> to vector<1x16x16xf32>
    %cst_272 = arith.constant dense<0xFF800000> : vector<1xf32>
    %658 = vector.multi_reduction <maximumf>, %657, %cst_272 [1, 2] : vector<1x16x16xf32> to vector<1xf32>
    %659 = vector.shape_cast %658 : vector<1xf32> to vector<1x1x1xf32>
    %660 = vector.extract %659[0, 0, 0] : f32 from vector<1x1x1xf32>
    %661 = vector.broadcast %660 : f32 to vector<1x1xf32>
    %662 = vector.broadcast %661 : vector<1x1xf32> to vector<16x16xf32>
    %663 = arith.subf %656, %662 : vector<16x16xf32>
    %664 = math.exp %663 : vector<16x16xf32>
    %cst_273 = arith.constant 9.99999974E-5 : f32
    %665 = vector.broadcast %cst_273 : f32 to vector<16x16xf32>
    %666 = arith.addf %664, %665 : vector<16x16xf32>
    %cst_274 = arith.constant 2.500000e-01 : f32
    %667 = vector.broadcast %cst_274 : f32 to vector<16x16xf32>
    %668 = arith.mulf %667, %666 : vector<16x16xf32>
    %cst_275 = arith.constant dense<0.000000e+00> : vector<16xf32>
    %669 = vector.multi_reduction <add>, %668, %cst_275 [0] : vector<16x16xf32> to vector<16xf32>
    %670 = vector.shape_cast %669 : vector<16xf32> to vector<1x16xf32>
    %671 = vector.broadcast %670 : vector<1x16xf32> to vector<16x16xf32>
    %672 = arith.mulf %654, %671 : vector<16x16xf32>
    %cst_276 = arith.constant dense<0.000000e+00> : vector<16xf32>
    %673 = vector.multi_reduction <add>, %672, %cst_276 [1] : vector<16x16xf32> to vector<16xf32>
    %674 = vector.shape_cast %673 : vector<16xf32> to vector<16x1xf32>
    %675 = tpu.reciprocal %674 {approx = true} : vector<16x1xf32> -> vector<16x1xf32>
    %cst_277 = arith.constant dense<0.000000e+00> : vector<16x8xf32>
    %676 = tpu.matmul %668, %623, %cst_277 {dimension_numbers = #tpu.dot_dimension_numbers<[0], [0], [1], [1], [0, 1, 1, 1], [], []>} : vector<16x16xf32>, vector<16x8xf32>, vector<16x8xf32> -> vector<16x8xf32>
    %cst_278 = arith.constant dense<0.000000e+00> : vector<16x8xf32>
    %677 = tpu.matmul %654, %676, %cst_278 {dimension_numbers = #tpu.dot_dimension_numbers<[1], [0], [0], [1], [0, 0, 1, 1], [], []>} : vector<16x16xf32>, vector<16x8xf32>, vector<16x8xf32> -> vector<16x8xf32>
    %678 = vector.broadcast %675 : vector<16x1xf32> to vector<16x8xf32>
    %679 = arith.mulf %677, %678 : vector<16x8xf32>
    %680 = tpu.concatenate %502, %561, %620, %679 in 1 : vector<16x8xf32>, vector<16x8xf32>, vector<16x8xf32>, vector<16x8xf32> -> vector<16x32xf32>
    %c0_279 = arith.constant 0 : index
    %c0_280 = arith.constant 0 : index
    %681 = vector.load %arg49[%c0_279, %c0_280] : memref<32x32xf32, #tpu.memory_space<vmem>>, vector<32x32xf32>
    %cst_281 = arith.constant dense<0.000000e+00> : vector<16x32xf32>
    %682 = tpu.matmul %680, %681, %cst_281 {dimension_numbers = #tpu.dot_dimension_numbers<[1], [0], [0], [1], [0, 0, 1, 1], [], []>} : vector<16x32xf32>, vector<32x32xf32>, vector<16x32xf32> -> vector<16x32xf32>
    %c0_282 = arith.constant 0 : index
    %c0_283 = arith.constant 0 : index
    %683 = vector.load %arg50[%c0_282, %c0_283] : memref<1x32xf32, #tpu.memory_space<vmem>>, vector<1x32xf32>
    %684 = vector.broadcast %683 : vector<1x32xf32> to vector<16x32xf32>
    %685 = arith.addf %682, %684 : vector<16x32xf32>
    %686 = arith.addf %403, %685 : vector<16x32xf32>
    %cst_284 = arith.constant dense<0.000000e+00> : vector<16xf32>
    %687 = vector.multi_reduction <add>, %686, %cst_284 [1] : vector<16x32xf32> to vector<16xf32>
    %688 = vector.shape_cast %687 : vector<16xf32> to vector<16x1xf32>
    %cst_285 = arith.constant 3.200000e+01 : f32
    %689 = vector.broadcast %cst_285 : f32 to vector<16x1xf32>
    %690 = arith.divf %688, %689 : vector<16x1xf32>
    %691 = vector.broadcast %690 : vector<16x1xf32> to vector<16x32xf32>
    %692 = arith.subf %686, %691 : vector<16x32xf32>
    %693 = arith.mulf %692, %692 : vector<16x32xf32>
    %cst_286 = arith.constant dense<0.000000e+00> : vector<16xf32>
    %694 = vector.multi_reduction <add>, %693, %cst_286 [1] : vector<16x32xf32> to vector<16xf32>
    %695 = vector.shape_cast %694 : vector<16xf32> to vector<16x1xf32>
    %cst_287 = arith.constant 3.200000e+01 : f32
    %696 = vector.broadcast %cst_287 : f32 to vector<16x1xf32>
    %697 = arith.divf %695, %696 : vector<16x1xf32>
    %698 = vector.broadcast %690 : vector<16x1xf32> to vector<16x32xf32>
    %699 = arith.subf %686, %698 : vector<16x32xf32>
    %cst_288 = arith.constant 9.99999974E-6 : f32
    %700 = vector.broadcast %cst_288 : f32 to vector<16x1xf32>
    %701 = arith.addf %697, %700 : vector<16x1xf32>
    %702 = math.rsqrt %701 : vector<16x1xf32>
    %703 = vector.broadcast %702 : vector<16x1xf32> to vector<16x32xf32>
    %704 = arith.mulf %699, %703 : vector<16x32xf32>
    %c0_289 = arith.constant 0 : index
    %c0_290 = arith.constant 0 : index
    %705 = vector.load %arg38[%c0_289, %c0_290] : memref<1x32xf32, #tpu.memory_space<vmem>>, vector<1x32xf32>
    %706 = vector.broadcast %705 : vector<1x32xf32> to vector<16x32xf32>
    %707 = arith.mulf %704, %706 : vector<16x32xf32>
    %c0_291 = arith.constant 0 : index
    %c0_292 = arith.constant 0 : index
    %708 = vector.load %arg39[%c0_291, %c0_292] : memref<1x32xf32, #tpu.memory_space<vmem>>, vector<1x32xf32>
    %709 = vector.broadcast %708 : vector<1x32xf32> to vector<16x32xf32>
    %710 = arith.addf %707, %709 : vector<16x32xf32>
    %c0_293 = arith.constant 0 : index
    %c0_294 = arith.constant 0 : index
    %711 = vector.load %arg42[%c0_293, %c0_294] : memref<32x128xf32, #tpu.memory_space<vmem>>, vector<32x128xf32>
    %cst_295 = arith.constant dense<0.000000e+00> : vector<16x128xf32>
    %712 = tpu.matmul %710, %711, %cst_295 {dimension_numbers = #tpu.dot_dimension_numbers<[1], [0], [0], [1], [0, 0, 1, 1], [], []>} : vector<16x32xf32>, vector<32x128xf32>, vector<16x128xf32> -> vector<16x128xf32>
    %c0_296 = arith.constant 0 : index
    %c0_297 = arith.constant 0 : index
    %713 = vector.load %arg43[%c0_296, %c0_297] : memref<1x128xf32, #tpu.memory_space<vmem>>, vector<1x128xf32>
    %714 = vector.broadcast %713 : vector<1x128xf32> to vector<16x128xf32>
    %715 = arith.addf %712, %714 : vector<16x128xf32>
    %716 = arith.mulf %715, %715 : vector<16x128xf32>
    %717 = arith.mulf %715, %716 : vector<16x128xf32>
    %cst_298 = arith.constant 4.471500e-02 : f32
    %718 = vector.broadcast %cst_298 : f32 to vector<16x128xf32>
    %719 = arith.mulf %718, %717 : vector<16x128xf32>
    %720 = arith.addf %715, %719 : vector<16x128xf32>
    %cst_299 = arith.constant 0.797884583 : f32
    %721 = vector.broadcast %cst_299 : f32 to vector<16x128xf32>
    %722 = arith.mulf %721, %720 : vector<16x128xf32>
    %723 = math.tanh %722 : vector<16x128xf32>
    %cst_300 = arith.constant 1.000000e+00 : f32
    %724 = vector.broadcast %cst_300 : f32 to vector<16x128xf32>
    %725 = arith.addf %724, %723 : vector<16x128xf32>
    %cst_301 = arith.constant 5.000000e-01 : f32
    %726 = vector.broadcast %cst_301 : f32 to vector<16x128xf32>
    %727 = arith.mulf %726, %725 : vector<16x128xf32>
    %728 = arith.mulf %715, %727 : vector<16x128xf32>
    %c0_302 = arith.constant 0 : index
    %c0_303 = arith.constant 0 : index
    %729 = vector.load %arg44[%c0_302, %c0_303] : memref<128x32xf32, #tpu.memory_space<vmem>>, vector<128x32xf32>
    %cst_304 = arith.constant dense<0.000000e+00> : vector<16x32xf32>
    %730 = tpu.matmul %728, %729, %cst_304 {dimension_numbers = #tpu.dot_dimension_numbers<[1], [0], [0], [1], [0, 0, 1, 1], [], []>} : vector<16x128xf32>, vector<128x32xf32>, vector<16x32xf32> -> vector<16x32xf32>
    %c0_305 = arith.constant 0 : index
    %c0_306 = arith.constant 0 : index
    %731 = vector.load %arg45[%c0_305, %c0_306] : memref<1x32xf32, #tpu.memory_space<vmem>>, vector<1x32xf32>
    %732 = vector.broadcast %731 : vector<1x32xf32> to vector<16x32xf32>
    %733 = arith.addf %730, %732 : vector<16x32xf32>
    %734 = arith.addf %686, %733 : vector<16x32xf32>
    %c0_307 = arith.constant 0 : index
    %c0_308 = arith.constant 0 : index
    %735 = vector.load %arg40[%c0_307, %c0_308] : memref<32x32xf32, #tpu.memory_space<vmem>>, vector<32x32xf32>
    %cst_309 = arith.constant dense<0.000000e+00> : vector<16x32xf32>
    %736 = tpu.matmul %734, %735, %cst_309 {dimension_numbers = #tpu.dot_dimension_numbers<[1], [0], [0], [1], [0, 0, 1, 1], [], []>} : vector<16x32xf32>, vector<32x32xf32>, vector<16x32xf32> -> vector<16x32xf32>
    %c0_310 = arith.constant 0 : index
    %c0_311 = arith.constant 0 : index
    %737 = vector.load %arg41[%c0_310, %c0_311] : memref<1x32xf32, #tpu.memory_space<vmem>>, vector<1x32xf32>
    %738 = vector.broadcast %737 : vector<1x32xf32> to vector<16x32xf32>
    %739 = arith.addf %736, %738 : vector<16x32xf32>
    %740 = arith.addf %403, %739 : vector<16x32xf32>
    %cst_312 = arith.constant dense<0.000000e+00> : vector<16xf32>
    %741 = vector.multi_reduction <add>, %740, %cst_312 [1] : vector<16x32xf32> to vector<16xf32>
    %742 = vector.shape_cast %741 : vector<16xf32> to vector<16x1xf32>
    %cst_313 = arith.constant 3.200000e+01 : f32
    %743 = vector.broadcast %cst_313 : f32 to vector<16x1xf32>
    %744 = arith.divf %742, %743 : vector<16x1xf32>
    %745 = vector.broadcast %744 : vector<16x1xf32> to vector<16x32xf32>
    %746 = arith.subf %740, %745 : vector<16x32xf32>
    %747 = arith.mulf %746, %746 : vector<16x32xf32>
    %cst_314 = arith.constant dense<0.000000e+00> : vector<16xf32>
    %748 = vector.multi_reduction <add>, %747, %cst_314 [1] : vector<16x32xf32> to vector<16xf32>
    %749 = vector.shape_cast %748 : vector<16xf32> to vector<16x1xf32>
    %cst_315 = arith.constant 3.200000e+01 : f32
    %750 = vector.broadcast %cst_315 : f32 to vector<16x1xf32>
    %751 = arith.divf %749, %750 : vector<16x1xf32>
    %752 = vector.broadcast %744 : vector<16x1xf32> to vector<16x32xf32>
    %753 = arith.subf %740, %752 : vector<16x32xf32>
    %cst_316 = arith.constant 9.99999974E-6 : f32
    %754 = vector.broadcast %cst_316 : f32 to vector<16x1xf32>
    %755 = arith.addf %751, %754 : vector<16x1xf32>
    %756 = math.rsqrt %755 : vector<16x1xf32>
    %757 = vector.broadcast %756 : vector<16x1xf32> to vector<16x32xf32>
    %758 = arith.mulf %753, %757 : vector<16x32xf32>
    %c0_317 = arith.constant 0 : index
    %c0_318 = arith.constant 0 : index
    %759 = vector.load %arg55[%c0_317, %c0_318] : memref<1x32xf32, #tpu.memory_space<vmem>>, vector<1x32xf32>
    %760 = vector.broadcast %759 : vector<1x32xf32> to vector<16x32xf32>
    %761 = arith.mulf %758, %760 : vector<16x32xf32>
    %c0_319 = arith.constant 0 : index
    %c0_320 = arith.constant 0 : index
    %762 = vector.load %arg56[%c0_319, %c0_320] : memref<1x32xf32, #tpu.memory_space<vmem>>, vector<1x32xf32>
    %763 = vector.broadcast %762 : vector<1x32xf32> to vector<16x32xf32>
    %764 = arith.addf %761, %763 : vector<16x32xf32>
    %c0_321 = arith.constant 0 : index
    %c0_322 = arith.constant 0 : index
    %765 = vector.load %arg32[%c0_321, %c0_322] : memref<32x128xf32, #tpu.memory_space<vmem>>, vector<32x128xf32>
    %cst_323 = arith.constant dense<0.000000e+00> : vector<16x128xf32>
    %766 = tpu.matmul %764, %765, %cst_323 {dimension_numbers = #tpu.dot_dimension_numbers<[1], [0], [0], [1], [0, 0, 1, 1], [], []>} : vector<16x32xf32>, vector<32x128xf32>, vector<16x128xf32> -> vector<16x128xf32>
    %c0_324 = arith.constant 0 : index
    %c0_325 = arith.constant 0 : index
    %767 = vector.load %arg33[%c0_324, %c0_325] : memref<1x128xf32, #tpu.memory_space<vmem>>, vector<1x128xf32>
    %768 = vector.broadcast %767 : vector<1x128xf32> to vector<16x128xf32>
    %769 = arith.addf %766, %768 : vector<16x128xf32>
    %cst_326 = arith.constant 0.000000e+00 : f32
    %770 = vector.broadcast %cst_326 : f32 to vector<16x128xf32>
    %771 = arith.maximumf %769, %770 : vector<16x128xf32>
    %c0_327 = arith.constant 0 : index
    %c0_328 = arith.constant 0 : index
    %772 = vector.load %arg34[%c0_327, %c0_328] : memref<128x32xf32, #tpu.memory_space<vmem>>, vector<128x32xf32>
    %cst_329 = arith.constant dense<0.000000e+00> : vector<16x32xf32>
    %773 = tpu.matmul %771, %772, %cst_329 {dimension_numbers = #tpu.dot_dimension_numbers<[1], [0], [0], [1], [0, 0, 1, 1], [], []>} : vector<16x128xf32>, vector<128x32xf32>, vector<16x32xf32> -> vector<16x32xf32>
    %c0_330 = arith.constant 0 : index
    %c0_331 = arith.constant 0 : index
    %774 = vector.load %arg35[%c0_330, %c0_331] : memref<1x32xf32, #tpu.memory_space<vmem>>, vector<1x32xf32>
    %775 = vector.broadcast %774 : vector<1x32xf32> to vector<16x32xf32>
    %776 = arith.addf %773, %775 : vector<16x32xf32>
    %777 = arith.addf %764, %776 : vector<16x32xf32>
    %cst_332 = arith.constant dense<0.000000e+00> : vector<16xf32>
    %778 = vector.multi_reduction <add>, %777, %cst_332 [1] : vector<16x32xf32> to vector<16xf32>
    %779 = vector.shape_cast %778 : vector<16xf32> to vector<16x1xf32>
    %cst_333 = arith.constant 3.200000e+01 : f32
    %780 = vector.broadcast %cst_333 : f32 to vector<16x1xf32>
    %781 = arith.divf %779, %780 : vector<16x1xf32>
    %782 = vector.broadcast %781 : vector<16x1xf32> to vector<16x32xf32>
    %783 = arith.subf %777, %782 : vector<16x32xf32>
    %784 = arith.mulf %783, %783 : vector<16x32xf32>
    %cst_334 = arith.constant dense<0.000000e+00> : vector<16xf32>
    %785 = vector.multi_reduction <add>, %784, %cst_334 [1] : vector<16x32xf32> to vector<16xf32>
    %786 = vector.shape_cast %785 : vector<16xf32> to vector<16x1xf32>
    %cst_335 = arith.constant 3.200000e+01 : f32
    %787 = vector.broadcast %cst_335 : f32 to vector<16x1xf32>
    %788 = arith.divf %786, %787 : vector<16x1xf32>
    %789 = vector.broadcast %781 : vector<16x1xf32> to vector<16x32xf32>
    %790 = arith.subf %777, %789 : vector<16x32xf32>
    %cst_336 = arith.constant 9.99999974E-6 : f32
    %791 = vector.broadcast %cst_336 : f32 to vector<16x1xf32>
    %792 = arith.addf %788, %791 : vector<16x1xf32>
    %793 = math.rsqrt %792 : vector<16x1xf32>
    %794 = vector.broadcast %793 : vector<16x1xf32> to vector<16x32xf32>
    %795 = arith.mulf %790, %794 : vector<16x32xf32>
    %c0_337 = arith.constant 0 : index
    %c0_338 = arith.constant 0 : index
    %796 = vector.load %arg57[%c0_337, %c0_338] : memref<1x32xf32, #tpu.memory_space<vmem>>, vector<1x32xf32>
    %797 = vector.broadcast %796 : vector<1x32xf32> to vector<16x32xf32>
    %798 = arith.mulf %795, %797 : vector<16x32xf32>
    %c0_339 = arith.constant 0 : index
    %c0_340 = arith.constant 0 : index
    %799 = vector.load %arg58[%c0_339, %c0_340] : memref<1x32xf32, #tpu.memory_space<vmem>>, vector<1x32xf32>
    %800 = vector.broadcast %799 : vector<1x32xf32> to vector<16x32xf32>
    %801 = arith.addf %798, %800 : vector<16x32xf32>
    %c0_341 = arith.constant 0 : index
    %c0_342 = arith.constant 0 : index
    %802 = vector.load %arg1[%c0_341, %c0_342] : memref<32x1xf32, #tpu.memory_space<vmem>>, vector<32x1xf32>
    %cst_343 = arith.constant dense<0.000000e+00> : vector<16x1xf32>
    %803 = tpu.matmul %801, %802, %cst_343 {dimension_numbers = #tpu.dot_dimension_numbers<[1], [0], [0], [1], [0, 0, 1, 1], [], []>} : vector<16x32xf32>, vector<32x1xf32>, vector<16x1xf32> -> vector<16x1xf32>
    %c0_344 = arith.constant 0 : index
    %c0_345 = arith.constant 0 : index
    %804 = vector.load %arg2[%c0_344, %c0_345] : memref<1x1xf32, #tpu.memory_space<vmem>>, vector<1x1xf32>
    %805 = vector.broadcast %804 : vector<1x1xf32> to vector<16x1xf32>
    %806 = arith.addf %803, %805 : vector<16x1xf32>
    %807 = arith.negf %806 : vector<16x1xf32>
    %808 = math.exp %807 : vector<16x1xf32>
    %cst_346 = arith.constant 1.000000e+00 : f32
    %809 = vector.broadcast %cst_346 : f32 to vector<16x1xf32>
    %810 = arith.addf %809, %808 : vector<16x1xf32>
    %811 = arith.divf %809, %810 : vector<16x1xf32>
    %c0_347 = arith.constant 0 : index
    %c0_348 = arith.constant 0 : index
    %812 = vector.load %arg59[%c0_347, %c0_348] : memref<16x1xf32, #tpu.memory_space<vmem>>, vector<16x1xf32>
    tpu.vector_store %arg59[%c0_347, %c0_348], %811 {strides = array<i32>} : memref<16x1xf32, #tpu.memory_space<vmem>>, vector<16x1xf32>,
    return
  }
}

</mosaic_0001>

<bundles_post_ra>
// kernel: tpu_custom_call.1
= control target key start
LH: loop header
LB: loop body
LE: loop exit
PB: predicated region body
PF: predicated region fallthrough
CT: control target
= control target key end

     0   :  { %s8071_s6 = smov 1   ;;  %s8072_s10 = smov 2   ;;  %s9365_s0 = inlined_call_operand.smem [shape: u32[60], index: -1, kind: input, shape index: {}] }
   0x1   :  { %s8159_s5 = sld [smem:[%s9365_s0]]   ;;  %s8073_s14 = smov 3  }
   0x2   :  { %s8164_s9 = sld [smem:[%s9365_s0 + %s8071_s6]]   ;;  %s8074_s18 = smov 4  }
   0x3   :  { %s6459_s13 = sld [smem:[%s9365_s0 + %s8072_s10]]   ;;  %s8075_s22 = smov 5  }
   0x4   :  { %s8172_s17 = sld [smem:[%s9365_s0 + %s8073_s14]]   ;;  %s8076_s26 = smov 6  }
   0x5   :  { %s8177_s21 = sld [smem:[%s9365_s0 + %s8074_s18]]   ;;  %s8077_s30 = smov 7  }
   0x6   :  { %s8182_s25 = sld [smem:[%s9365_s0 + %s8075_s22]]   ;;  %s8078_s4 = smov 8  }
   0x7   :  { %s8187_s29 = sld [smem:[%s9365_s0 + %s8076_s26]]   ;;  %s8079_s10 = smov 9  }
   0x8   :  { %9387 = sst [smem:[#allocation34_spill]] %s8164_s9  ;;  %s8080_s15 = smov 10  }
   0x9   :  { %s8192_s3 = sld [smem:[%s9365_s0 + %s8077_s30]]   ;;  %v124_v0 = vstv %s6459_s13  ;;  %s8081_s20 = smov 11  }
   0xa   :  { %s8197_s8 = sld [smem:[%s9365_s0 + %s8078_s4]]   ;;  %125 = vst [vmem:[#allocation2] sm:$0x1] %v124_v0  ;;  %s8082_s13 = smov 12  }
   0xb   :  { %9388 = sst [smem:[#allocation35_spill]] %s8177_s21  ;;  %s8083_s30 = smov 13  }
   0xc   :  { %9389 = sst [smem:[#allocation36_spill]] %s8182_s25  ;;  %s8084_s6 = smov 14  }
   0xd   :  { %9390 = sst [smem:[#allocation37_spill]] %s8187_s29  ;;  %s8085_s12 = smov 15  }
   0xe   :  { %s8202_s14 = sld [smem:[%s9365_s0 + %s8079_s10]]   ;;  %s8087_s26 = smov 17  }
   0xf   :  { %9391 = sst [smem:[#allocation38_spill]] %s8192_s3  ;;  %s8088_s2 = smov 18  }
  0x10   :  { %9392 = sst [smem:[#allocation39_spill]] %s8197_s8 }
  0x11   :  { %s8207_s19 = sld [smem:[%s9365_s0 + %s8080_s15]]  }
  0x12   :  { %s8212_s24 = sld [smem:[%s9365_s0 + %s8081_s20]]   ;;  %s8086_s20 = smov 16  }
  0x13   :  { %s8217_s28 = sld [smem:[%s9365_s0 + %s8082_s13]]  }
  0x14   :  { %9393 = sst [smem:[#allocation40_spill]] %s8202_s14 }
  0x15   :  { %s8222_s4 = sld [smem:[%s9365_s0 + %s8083_s30]]  }
  0x16   :  { %s8227_s11 = sld [smem:[%s9365_s0 + %s8084_s6]]  }
  0x17   :  { %9394 = sst [smem:[#allocation41_spill]] %s8207_s19 }
  0x18   :  { %9395 = sst [smem:[#allocation42_spill]] %s8212_s24 }
  0x19   :  { %9396 = sst [smem:[#allocation43_spill]] %s8217_s28 }
  0x1a   :  { %s8232_s18 = sld [smem:[%s9365_s0 + %s8085_s12]]   ;;  %s8089_s12 = smov 19  }
  0x1b   :  { %9397 = sst [smem:[#allocation44_spill]] %s8222_s4 }
  0x1c   :  { %9398 = sst [smem:[#allocation45_spill]] %s8227_s11 }
  0x1d   :  { %s8237_s13 = sld [smem:[%s9365_s0 + %s8086_s20]]   ;;  %s8090_s20 = smov 20  }
  0x1e   :  { %s8242_s1 = sld [smem:[%s9365_s0 + %s8087_s26]]   ;;  %s8091_s26 = smov 21  }
  0x1f   :  { %s8247_s10 = sld [smem:[%s9365_s0 + %s8088_s2]]   ;;  %s8092_s2 = smov 22  }
  0x20   :  { %9399 = sst [smem:[#allocation46_spill]] %s8232_s18 }
  0x21   :  { %s8252_s9 = sld [smem:[%s9365_s0 + %s8089_s12]]   ;;  %s8093_s12 = smov 23  }
  0x22   :  { %s8257_s8 = sld [smem:[%s9365_s0 + %s8090_s20]]   ;;  %s8094_s20 = smov 24  }
  0x23   :  { %9400 = sst [smem:[#allocation47_spill]] %s8237_s13 }
  0x24   :  { %9401 = sst [smem:[#allocation48_spill]] %s8242_s1 }
  0x25   :  { %9402 = sst [smem:[#allocation49_spill]] %s8247_s10 }
  0x26   :  { %s8262_s29 = sld [smem:[%s9365_s0 + %s8091_s26]]   ;;  %s8095_s26 = smov 25  }
  0x27   :  { %9403 = sst [smem:[#allocation50_spill]] %s8252_s9 }
  0x28   :  { %9404 = sst [smem:[#allocation51_spill]] %s8257_s8 }
  0x29   :  { %s8267_s3 = sld [smem:[%s9365_s0 + %s8092_s2]]   ;;  %s8096_s2 = smov 26  }
  0x2a   :  { %s8272_s25 = sld [smem:[%s9365_s0 + %s8093_s12]]   ;;  %s8097_s12 = smov 27  }
  0x2b   :  { %s8277_s11 = sld [smem:[%s9365_s0 + %s8094_s20]]   ;;  %s8098_s20 = smov 28  }
  0x2c   :  { %9405 = sst [smem:[#allocation52_spill]] %s8262_s29 }
  0x2d   :  { %s8282_s10 = sld [smem:[%s9365_s0 + %s8095_s26]]   ;;  %s8099_s26 = smov 29  }
  0x2e   :  { %s8287_s4 = sld [smem:[%s9365_s0 + %s8096_s2]]   ;;  %s8100_s2 = smov 30  }
  0x2f   :  { %9406 = sst [smem:[#allocation53_spill]] %s8267_s3 }
  0x30   :  { %9407 = sst [smem:[#allocation54_spill]] %s8272_s25 }
  0x31   :  { %9408 = sst [smem:[#allocation55_spill]] %s8277_s11 }
  0x32   :  { %s8292_s13 = sld [smem:[%s9365_s0 + %s8097_s12]]   ;;  %s8101_s12 = smov 31  }
  0x33   :  { %9409 = sst [smem:[#allocation56_spill]] %s8282_s10 }
  0x34   :  { %9410 = sst [smem:[#allocation57_spill]] %s8287_s4 }
  0x35   :  { %s8297_s1 = sld [smem:[%s9365_s0 + %s8098_s20]]   ;;  %s8102_s20 = smov 32  }
  0x36   :  { %s8302_s28 = sld [smem:[%s9365_s0 + %s8099_s26]]   ;;  %s8103_s26 = smov 33  }
  0x37   :  { %s8307_s24 = sld [smem:[%s9365_s0 + %s8100_s2]]   ;;  %s8104_s2 = smov 34  }
  0x38   :  { %9411 = sst [smem:[#allocation58_spill]] %s8292_s13 }
  0x39   :  { %s8312_s18 = sld [smem:[%s9365_s0 + %s8101_s12]]   ;;  %s8105_s12 = smov 35  }
  0x3b   :  { %9412 = sst [smem:[#allocation59_spill]] %s8297_s1 }
  0x3c   :  { %9413 = sst [smem:[#allocation60_spill]] %s8302_s28 }
  0x3d   :  { %9414 = sst [smem:[#allocation61_spill]] %s8307_s24 }
  0x3e   :  { %s8317_s1 = sld [smem:[%s9365_s0 + %s8102_s20]]   ;;  %s8106_s20 = smov 36  }
  0x3f   :  { %9415 = sst [smem:[#allocation62_spill]] %s8312_s18 }
  0x40   :  { %s8322_s28 = sld [smem:[%s9365_s0 + %s8103_s26]]   ;;  %s8107_s26 = smov 37  }
  0x41   :  { %s8327_s24 = sld [smem:[%s9365_s0 + %s8104_s2]]   ;;  %s8108_s2 = smov 38  }
  0x42   :  { %s8332_s18 = sld [smem:[%s9365_s0 + %s8105_s12]]   ;;  %s8109_s12 = smov 39  }
  0x44   :  { %9416 = sst [smem:[#allocation63_spill]] %s8317_s1 }
  0x45   :  { %s8337_s1 = sld [smem:[%s9365_s0 + %s8106_s20]]   ;;  %s8110_s20 = smov 40  }
  0x46   :  { %9417 = sst [smem:[#allocation64_spill]] %s8322_s28 }
  0x47   :  { %9418 = sst [smem:[#allocation65_spill]] %s8327_s24 }
  0x48   :  { %9419 = sst [smem:[#allocation66_spill]] %s8332_s18 }
  0x49   :  { %s8342_s28 = sld [smem:[%s9365_s0 + %s8107_s26]]   ;;  %s8111_s26 = smov 41  }
  0x4a   :  { %s8347_s24 = sld [smem:[%s9365_s0 + %s8108_s2]]   ;;  %s8112_s2 = smov 42  }
  0x4b   :  { %s8352_s18 = sld [smem:[%s9365_s0 + %s8109_s12]]   ;;  %s8113_s12 = smov 43  }
  0x4c   :  { %s8357_s25 = sld [smem:[%s9365_s0 + %s8110_s20]]   ;;  %s8114_s20 = smov 44  }
  0x4d   :  { %s8362_s3 = sld [smem:[%s9365_s0 + %s8111_s26]]   ;;  %s8115_s26 = smov 45  }
  0x4e   :  { %s8367_s13 = sld [smem:[%s9365_s0 + %s8112_s2]]   ;;  %s8116_s2 = smov 46  }
  0x4f   :  { %s8372_s29 = sld [smem:[%s9365_s0 + %s8113_s12]]   ;;  %s8117_s12 = smov 47  }
  0x50   :  { %s8382_s10 = sld [smem:[%s9365_s0 + %s8115_s26]]   ;;  %s8119_s26 = smov 49  }
  0x51   :  { %s8392_s9 = sld [smem:[%s9365_s0 + %s8117_s12]]   ;;  %s8121_s12 = smov 51  }
  0x52   :  { %9420 = sst [smem:[#allocation67_spill]] %s8357_s25 }
  0x53   :  { %s8377_s25 = sld [smem:[%s9365_s0 + %s8114_s20]]   ;;  %s8118_s20 = smov 48  }
  0x54   :  { %9421 = sst [smem:[#allocation68_spill]] %s8367_s13 }
  0x55   :  { %s8387_s13 = sld [smem:[%s9365_s0 + %s8116_s2]]   ;;  %s8120_s2 = smov 50  }
  0x56   :  { %s8402_s19 = sld [smem:[%s9365_s0 + %s8119_s26]]   ;;  %s8123_s26 = smov 53  }
  0x57   :  { %9424 = sst [smem:[#allocation71_spill]] %s8392_s9 }
  0x58   :  { %s8412_s9 = sld [smem:[%s9365_s0 + %s8121_s12]]   ;;  %s8125_s12 = smov 55  }
  0x59   :  { %9422 = sst [smem:[#allocation69_spill]] %s8377_s25 }
  0x5a   :  { %s8397_s25 = sld [smem:[%s9365_s0 + %s8118_s20]]   ;;  %s8122_s20 = smov 52  }
  0x5b   :  { %9423 = sst [smem:[#allocation70_spill]] %s8387_s13 }
  0x5c   :  { %9425 = sst [smem:[#allocation72_spill]] %s8402_s19 }
  0x5d   :  { %s8407_s13 = sld [smem:[%s9365_s0 + %s8120_s2]]   ;;  %s8124_s2 = smov 54  }
  0x5e   :  { %9426 = sst [smem:[#allocation73_spill]] %s8412_s9 }
  0x5f   :  { %s8417_s14 = sld [smem:[%s9365_s0 + %s8122_s20]]   ;;  %s8126_s20 = smov 56  }
  0x60   :  { %s8422_s19 = sld [smem:[%s9365_s0 + %s8123_s26]]   ;;  %s8127_s26 = smov 57  }
  0x61   :  { %s8427_s4 = sld [smem:[%s9365_s0 + %s8124_s2]]   ;;  %s8128_s2 = smov 58  }
  0x62   :  { %s8432_s9 = sld [smem:[%s9365_s0 + %s8125_s12]]   ;;  %s8129_s12 = smov 59  }
  0x63   :  { %s8437_s8 = sld [smem:[%s9365_s0 + %s8126_s20]]  }
  0x64   :  { %s8447_s11 = sld [smem:[%s9365_s0 + %s8128_s2]]  }
  0x65   :  { %s8452_s21 = sld [smem:[%s9365_s0 + %s8129_s12]]  }
  0x66   :  { %9427 = sst [smem:[#allocation74_spill]] %s8422_s19 }
  0x67   :  { %s8442_s19 = sld [smem:[%s9365_s0 + %s8127_s26]]  }
  0x68   :  { %126 = vsyncpa [#allocation4], 0 }
  0x69   :  { %127 = vsyncpa [#allocation6], 0 }
  0x6a   :  { %128 = vsyncpa [#allocation9], 0 }
  0x6b   :  { %129 = vsyncpa [#allocation12], 0 }
  0x6c   :  { %130 = vsyncpa [#allocation15], 0 }
  0x6d   :  { %131 = vsyncpa [#allocation18], 0 }
  0x6e   :  { %132 = vsyncpa [#allocation21], 0 }
  0x6f   :  { %133 = vsyncpa [#allocation24], 0  ;;  %s8130_s20 = smov [#allocation5]   ;;  %s8131_s23 = smov [#allocation8]  }
  0x70   :  { %s222_s22 = sshll.u32 %s8130_s20, 4  ;;  %s242_s26 = sshll.u32 %s8131_s23, 4  ;;  %s223_s22 = int_to_ptr.vmem [resolvable:$true] %s222_s22  ;;  %s243_s26 = int_to_ptr.vmem [resolvable:$true] %s242_s26 }
  0x71   :  { %s7763_s27 = scalar_lea.vmem %s223_s22, 16  ;;  %s7767_s30 = scalar_lea.vmem %s223_s22, 32 }
  0x72   :  { %p7764_p0 = scmp.ne.s32.totalorder %s223_s22, %s7763_s27  ;;  %p7768_p1 = scmp.lt.s32.totalorder %s223_s22, %s223_s22 }
  0x73   :  { %p7769_p2 = scmp.lt.s32.totalorder %s7767_s30, %s7763_s27 }
  0x75   :  { %p7770_p3 = por %p7769_p2, %p7768_p1 }
  0x77   :  { %p7771_p4 = pnand %p7770_p3, %p7764_p0 }
  0x79   :  { %7774 = shalt.err (!%p7771_p4)
}
  0x7a   :  { %225 = dma.hbm_to_vmem [thread:$0]  %s8342_s28, 16, %s223_s22, [#allocation6]  }
  0x7b   :  { %s7783_s0 = scalar_lea.vmem %s243_s26, 16  ;;  %s7787_s2 = scalar_lea.vmem %s243_s26, 32 }
  0x7c   :  { %p7784_p5 = scmp.ne.s32.totalorder %s243_s26, %s7783_s0  ;;  %p7788_p6 = scmp.lt.s32.totalorder %s243_s26, %s243_s26 }
  0x7d   :  { %p7789_p7 = scmp.lt.s32.totalorder %s7787_s2, %s7783_s0 }
  0x7f   :  { %p7790_p8 = por %p7789_p7, %p7788_p6 }
  0x81   :  { %p7791_p9 = pnand %p7790_p8, %p7784_p5 }
  0x83   :  { %7794 = shalt.err (!%p7791_p9)
}
  0x84   :  { %245 = dma.hbm_to_vmem [thread:$0]  %s8352_s18, 16, %s243_s26, [#allocation9]  }
  0x85   :  { %s8132_s6 = smov [#allocation11]   ;;  %s8133_s12 = smov [#allocation14]  }
  0x86   :  { %s266_s7 = sshll.u32 %s8132_s6, 4  ;;  %s292_s15 = sshll.u32 %s8133_s12, 4  ;;  %s267_s7 = int_to_ptr.vmem [resolvable:$true] %s266_s7  ;;  %s293_s15 = int_to_ptr.vmem [resolvable:$true] %s292_s15 }
  0x87   :  { %s7803_s16 = scalar_lea.vmem %s267_s7, 16  ;;  %s7807_s20 = scalar_lea.vmem %s267_s7, 32 }
  0x88   :  { %p7804_p10 = scmp.ne.s32.totalorder %s267_s7, %s7803_s16  ;;  %p7808_p11 = scmp.lt.s32.totalorder %s267_s7, %s267_s7 }
  0x89   :  { %p7809_p12 = scmp.lt.s32.totalorder %s7807_s20, %s7803_s16 }
  0x8b   :  { %p7810_p13 = por %p7809_p12, %p7808_p11 }
  0x8d   :  { %p7811_p0 = pnand %p7810_p13, %p7804_p10 }
  0x8f   :  { %7814 = shalt.err (!%p7811_p0)
}
  0x90   :  { %269 = dma.hbm_to_vmem [thread:$0]  %s8372_s29, 16, %s267_s7, [#allocation12]  }
  0x91   :  { %s7823_s28 = scalar_lea.vmem %s293_s15, 16  ;;  %s7827_s22 = scalar_lea.vmem %s293_s15, 32 }
  0x92   :  { %p7824_p1 = scmp.ne.s32.totalorder %s293_s15, %s7823_s28  ;;  %p7828_p2 = scmp.lt.s32.totalorder %s293_s15, %s293_s15 }
  0x93   :  { %p7829_p3 = scmp.lt.s32.totalorder %s7827_s22, %s7823_s28 }
  0x95   :  { %p7830_p4 = por %p7829_p3, %p7828_p2 }
  0x97   :  { %p7831_p5 = pnand %p7830_p4, %p7824_p1 }
  0x99   :  { %7834 = shalt.err (!%p7831_p5)
}
  0x9a   :  { %295 = dma.hbm_to_vmem [thread:$0]  %s8397_s25, 16, %s293_s15, [#allocation15]  }
  0x9b   :  { %s8134_s18 = smov [#allocation17]   ;;  %s8135_s26 = smov [#allocation20]  }
  0x9c   :  { %s316_s23 = sshll.u32 %s8134_s18, 4  ;;  %s338_s27 = sshll.u32 %s8135_s26, 4  ;;  %s317_s23 = int_to_ptr.vmem [resolvable:$true] %s316_s23  ;;  %s339_s27 = int_to_ptr.vmem [resolvable:$true] %s338_s27 }
  0x9d   :  { %s7843_s30 = scalar_lea.vmem %s317_s23, 16  ;;  %s7847_s0 = scalar_lea.vmem %s317_s23, 32 }
  0x9e   :  { %p7844_p6 = scmp.ne.s32.totalorder %s317_s23, %s7843_s30  ;;  %p7848_p7 = scmp.lt.s32.totalorder %s317_s23, %s317_s23 }
  0x9f   :  { %p7849_p8 = scmp.lt.s32.totalorder %s7847_s0, %s7843_s30 }
  0xa1   :  { %p7850_p9 = por %p7849_p8, %p7848_p7 }
  0xa3   :  { %p7851_p10 = pnand %p7850_p9, %p7844_p6 }
  0xa5   :  { %7854 = shalt.err (!%p7851_p10)
}
  0xa6   :  { %319 = dma.hbm_to_vmem [thread:$0]  %s8417_s14, 16, %s317_s23, [#allocation18]  }
  0xa7   :  { %s7863_s29 = scalar_lea.vmem %s339_s27, 16  ;;  %s7867_s2 = scalar_lea.vmem %s339_s27, 32 }
  0xa8   :  { %p7864_p11 = scmp.ne.s32.totalorder %s339_s27, %s7863_s29  ;;  %p7868_p12 = scmp.lt.s32.totalorder %s339_s27, %s339_s27 }
  0xa9   :  { %p7869_p13 = scmp.lt.s32.totalorder %s7867_s2, %s7863_s29 }
  0xab   :  { %p7870_p0 = por %p7869_p13, %p7868_p12 }
  0xad   :  { %p7871_p1 = pnand %p7870_p0, %p7864_p11 }
  0xaf   :  { %7874 = shalt.err (!%p7871_p1)
}
  0xb0   :  { %341 = dma.hbm_to_vmem [thread:$0]  %s8432_s9, 16, %s339_s27, [#allocation21]  }
  0xb1   :  { %s8136_s25 = smov [#allocation23]   ;;  %s8137_s7 = smov [#allocation3]  }
  0xb2   :  { %s358_s6 = sshll.u32 %s8136_s25, 4  ;;  %s212_s12 = sshll.u32 %s8137_s7, 4  ;;  %s359_s6 = int_to_ptr.vmem [resolvable:$true] %s358_s6  ;;  %s213_s12 = int_to_ptr.vmem [resolvable:$true] %s212_s12 }
  0xb3   :  { %s7883_s15 = scalar_lea.vmem %s359_s6, 16  ;;  %s7887_s16 = scalar_lea.vmem %s359_s6, 32 }
  0xb4   :  { %p7884_p2 = scmp.ne.s32.totalorder %s359_s6, %s7883_s15  ;;  %p7888_p3 = scmp.lt.s32.totalorder %s359_s6, %s359_s6 }
  0xb5   :  { %p7889_p4 = scmp.lt.s32.totalorder %s7887_s16, %s7883_s15 }
  0xb7   :  { %p7890_p5 = por %p7889_p4, %p7888_p3 }
  0xb9   :  { %p7891_p6 = pnand %p7890_p5, %p7884_p2 }
  0xbb   :  { %7894 = shalt.err (!%p7891_p6)
}
  0xbc   :  { %361 = dma.hbm_to_vmem [thread:$0]  %s8442_s19, 16, %s359_s6, [#allocation24]  }
  0xbd   :  { %s7903_s14 = scalar_lea.vmem %s213_s12, 16  ;;  %s7907_s20 = scalar_lea.vmem %s213_s12, 32 }
  0xbe   :  { %p7904_p7 = scmp.ne.s32.totalorder %s213_s12, %s7903_s14  ;;  %p7908_p8 = scmp.lt.s32.totalorder %s213_s12, %s213_s12 }
  0xbf   :  { %p7909_p9 = scmp.lt.s32.totalorder %s7907_s20, %s7903_s14 }
  0xc1   :  { %p7910_p10 = por %p7909_p9, %p7908_p8 }
  0xc3   :  { %p7911_p11 = pnand %p7910_p10, %p7904_p7 }
  0xc5   :  { %7914 = shalt.err (!%p7911_p11)
}
  0xc6   :  { %215 = dma.hbm_to_vmem [thread:$0]  %s8337_s1, 16, %s213_s12, [#allocation4]  }
  0xc7   :  { %s8138_s9 = smov [#allocation7]   ;;  %s8139_s22 = smov [#allocation10]  }
  0xc8   :  { %s232_s28 = sshll.u32 %s8138_s9, 4  ;;  %s254_s18 = sshll.u32 %s8139_s22, 4  ;;  %s233_s28 = int_to_ptr.vmem [resolvable:$true] %s232_s28  ;;  %s255_s18 = int_to_ptr.vmem [resolvable:$true] %s254_s18 }
  0xc9   :  { %s7923_s23 = scalar_lea.vmem %s233_s28, 16  ;;  %s7927_s26 = scalar_lea.vmem %s233_s28, 32 }
  0xca   :  { %p7924_p12 = scmp.ne.s32.totalorder %s233_s28, %s7923_s23  ;;  %p7928_p13 = scmp.lt.s32.totalorder %s233_s28, %s233_s28 }
  0xcb   :  { %p7929_p0 = scmp.lt.s32.totalorder %s7927_s26, %s7923_s23 }
  0xcd   :  { %p7930_p1 = por %p7929_p0, %p7928_p13 }
  0xcf   :  { %p7931_p2 = pnand %p7930_p1, %p7924_p12 }
  0xd1   :  { %7934 = shalt.err (!%p7931_p2)
}
  0xd2   :  { %235 = dma.hbm_to_vmem [thread:$0]  %s8347_s24, 16, %s233_s28, [#allocation6]  }
  0xd3   :  { %s7943_s19 = scalar_lea.vmem %s255_s18, 16  ;;  %s7947_s27 = scalar_lea.vmem %s255_s18, 32 }
  0xd4   :  { %p7944_p3 = scmp.ne.s32.totalorder %s255_s18, %s7943_s19  ;;  %p7948_p4 = scmp.lt.s32.totalorder %s255_s18, %s255_s18 }
  0xd5   :  { %p7949_p5 = scmp.lt.s32.totalorder %s7947_s27, %s7943_s19 }
  0xd7   :  { %p7950_p6 = por %p7949_p5, %p7948_p4 }
  0xd9   :  { %p7951_p7 = pnand %p7950_p6, %p7944_p3 }
  0xdb   :  { %7954 = shalt.err (!%p7951_p7)
}
  0xdc   :  { %257 = dma.hbm_to_vmem [thread:$0]  %s8362_s3, 16, %s255_s18, [#allocation9]  }
  0xdd   :  { %s8140_s1 = smov [#allocation13]   ;;  %s8141_s0 = smov [#allocation16]  }
  0xde   :  { %s278_s30 = sshll.u32 %s8140_s1, 4  ;;  %s304_s29 = sshll.u32 %s8141_s0, 4  ;;  %s279_s30 = int_to_ptr.vmem [resolvable:$true] %s278_s30  ;;  %s305_s29 = int_to_ptr.vmem [resolvable:$true] %s304_s29 }
  0xdf   :  { %s7963_s2 = scalar_lea.vmem %s279_s30, 16  ;;  %s7967_s25 = scalar_lea.vmem %s279_s30, 32 }
  0xe0   :  { %p7964_p8 = scmp.ne.s32.totalorder %s279_s30, %s7963_s2  ;;  %p7968_p9 = scmp.lt.s32.totalorder %s279_s30, %s279_s30 }
  0xe1   :  { %p7969_p10 = scmp.lt.s32.totalorder %s7967_s25, %s7963_s2 }
  0xe3   :  { %p7970_p11 = por %p7969_p10, %p7968_p9 }
  0xe5   :  { %p7971_p12 = pnand %p7970_p11, %p7964_p8 }
  0xe7   :  { %7974 = shalt.err (!%p7971_p12)
}
  0xe8   :  { %281 = dma.hbm_to_vmem [thread:$0]  %s8382_s10, 16, %s279_s30, [#allocation12]  }
  0xe9   :  { %s7983_s24 = scalar_lea.vmem %s305_s29, 16  ;;  %s7987_s6 = scalar_lea.vmem %s305_s29, 32 }
  0xea   :  { %p7984_p13 = scmp.ne.s32.totalorder %s305_s29, %s7983_s24  ;;  %p7988_p0 = scmp.lt.s32.totalorder %s305_s29, %s305_s29 }
  0xeb   :  { %p7989_p1 = scmp.lt.s32.totalorder %s7987_s6, %s7983_s24 }
  0xed   :  { %p7990_p2 = por %p7989_p1, %p7988_p0 }
  0xef   :  { %p7991_p3 = pnand %p7990_p2, %p7984_p13 }
  0xf1   :  { %7994 = shalt.err (!%p7991_p3)
}
  0xf2   :  { %307 = dma.hbm_to_vmem [thread:$0]  %s8407_s13, 16, %s305_s29, [#allocation15]  }
  0xf3   :  { %s8142_s3 = smov [#allocation19]   ;;  %s8143_s12 = smov [#allocation22]  }
  0xf4   :  { %s328_s7 = sshll.u32 %s8142_s3, 4  ;;  %s348_s15 = sshll.u32 %s8143_s12, 4  ;;  %s329_s7 = int_to_ptr.vmem [resolvable:$true] %s328_s7  ;;  %s349_s15 = int_to_ptr.vmem [resolvable:$true] %s348_s15 }
  0xf5   :  { %s8003_s16 = scalar_lea.vmem %s329_s7, 16  ;;  %s8007_s14 = scalar_lea.vmem %s329_s7, 32 }
  0xf6   :  { %p8004_p4 = scmp.ne.s32.totalorder %s329_s7, %s8003_s16  ;;  %p8008_p5 = scmp.lt.s32.totalorder %s329_s7, %s329_s7 }
  0xf7   :  { %p8009_p6 = scmp.lt.s32.totalorder %s8007_s14, %s8003_s16 }
  0xf9   :  { %p8010_p7 = por %p8009_p6, %p8008_p5 }
  0xfb   :  { %p8011_p8 = pnand %p8010_p7, %p8004_p4 }
  0xfd   :  { %8014 = shalt.err (!%p8011_p8)
}
  0xfe   :  { %331 = dma.hbm_to_vmem [thread:$0]  %s8427_s4, 16, %s329_s7, [#allocation18]  }
  0xff   :  { %s8023_s10 = scalar_lea.vmem %s349_s15, 16  ;;  %s8027_s20 = scalar_lea.vmem %s349_s15, 32 }
 0x100   :  { %p8024_p9 = scmp.ne.s32.totalorder %s349_s15, %s8023_s10  ;;  %p8028_p10 = scmp.lt.s32.totalorder %s349_s15, %s349_s15 }
 0x101   :  { %p8029_p11 = scmp.lt.s32.totalorder %s8027_s20, %s8023_s10 }
 0x103   :  { %p8030_p12 = por %p8029_p11, %p8028_p10 }
 0x105   :  { %p8031_p13 = pnand %p8030_p12, %p8024_p9 }
 0x107   :  { %8034 = shalt.err (!%p8031_p13)
}
 0x108   :  { %351 = dma.hbm_to_vmem [thread:$0]  %s8437_s8, 16, %s349_s15, [#allocation21]  }
 0x109   :  { %s8144_s13 = smov [#allocation25]  }
 0x10a   :  { %s368_s9 = sshll.u32 %s8144_s13, 4  ;;  %s369_s9 = int_to_ptr.vmem [resolvable:$true] %s368_s9 }
 0x10b   :  { %s8043_s28 = scalar_lea.vmem %s369_s9, 16  ;;  %s8047_s22 = scalar_lea.vmem %s369_s9, 32 }
 0x10c   :  { %p8044_p0 = scmp.ne.s32.totalorder %s369_s9, %s8043_s28  ;;  %p8048_p1 = scmp.lt.s32.totalorder %s369_s9, %s369_s9 }
 0x10d   :  { %p8049_p2 = scmp.lt.s32.totalorder %s8047_s22, %s8043_s28 }
 0x10f   :  { %p8050_p3 = por %p8049_p2, %p8048_p1 }
 0x111   :  { %p8051_p4 = pnand %p8050_p3, %p8044_p0 }
 0x113   :  { %8054 = shalt.err (!%p8051_p4)
}
 0x114   :  { %371 = dma.hbm_to_vmem [thread:$0]  %s8447_s11, 16, %s369_s9, [#allocation24]  }
 0x115   :  { %8055 = dma.done.wait [#allocation4], 16  }
 0x116   :  { %8056 = vsyncadd [#allocation4], 4294967280 }
 0x117   :  { %8057 = dma.done.wait [#allocation6], 32  }
 0x118   :  { %8058 = vsyncadd [#allocation6], 4294967264 }
 0x119   :  { %8059 = dma.done.wait [#allocation9], 32  }
 0x11a   :  { %8060 = vsyncadd [#allocation9], 4294967264 }
 0x11b   :  { %8061 = dma.done.wait [#allocation12], 32  }
 0x11c   :  { %8062 = vsyncadd [#allocation12], 4294967264 }
 0x11d   :  { %8063 = dma.done.wait [#allocation15], 32  }
 0x11e   :  { %8064 = vsyncadd [#allocation15], 4294967264 }
 0x11f   :  { %8065 = dma.done.wait [#allocation18], 32  }
 0x120   :  { %8066 = vsyncadd [#allocation18], 4294967264 }
 0x121   :  { %8067 = dma.done.wait [#allocation21], 32  }
 0x122   :  { %8068 = vsyncadd [#allocation21], 4294967264 }
 0x123   :  { %8069 = dma.done.wait [#allocation24], 32  }
 0x124   :  { %8070 = vsyncadd [#allocation24], 4294967264  ;;  %s9428_s8 = sld [smem:[#allocation35_spill]]  ;;  %vm435_vm0 = vcmask 1043456   ;;  %vm428_vm1 = vcmask 97280   ;;  %v419_v2 = vld [vmem:[%s8172_s17] sm:$0xff] }
 0x125   :  { %v420_v1 = vld [vmem:[%s8172_s17 + $0x8] sm:$0xf]  ;;  %v417_v3 = vld [vmem:[%s8159_s5] sm:$0xff]  ;;  %vm516_vm2 = vcmask 261120   ;;  %s9429_s17 = sld [smem:[#allocation55_spill]]  ;;  %vm828_vm3 = vcmask 64512  }
 0x126   :  { %6978 = vmatprep.subr.msk.mxu1 %vm435_vm0, %v420_v1  ;;  %6982 = vmatprep.mubr.msk.f32.mxu1 %vm428_vm1, %v417_v3  ;;  %v418_v4 = vld [vmem:[%s8159_s5 + $0x8] sm:$0xff]  ;;  %s9430_s4 = sld [smem:[#allocation51_spill]]  ;;  %vm1025_vm4 = vcmask 130048   ;;  %s8145_s1 = smov 120   ;;  %vm2702_vm5 = vcmask 195584   ;;  %vm6443_vm6 = vcmask 7168  }
 0x127   :  { %6979 = vmatpush3.msk.msra.mxu1 %vm435_vm0, %v420_v1  ;;  %s9431_s5 = sld [smem:[#allocation57_spill]]  ;;  %s8146_s29 = smov 112  }
 0x128   :  { %6980 = vmatprep.subr.mxu1 %v419_v2  ;;  %s9432_s11 = sld [smem:[#allocation40_spill]]  ;;  %s8147_s2 = smov 104  }
 0x129   :  { %6981 = vmatpush3.msra.mxu1 %v419_v2  ;;  %s9433_s18 = sld [smem:[#allocation41_spill]]  ;;  %s8148_s6 = smov 8  }
 0x12a   :  { %6983 = vmatmul.mubr.msk.f32.vlgmr.msra.gmra.mxu1 %vm428_vm1, %v418_v4  ;;  %v6517_v6 = vld [vmem:[%s9428_s8] ss:$0 sm:$0xff]  ;;  %s9434_s23 = sld [smem:[#allocation50_spill]]  ;;  %s8149_s3 = smov 16  }
 0x12b   :  { %v565_v22 = vld [vmem:[%s9429_s17 + $0x18] sm:$0xff]  ;;  %v564_v24 = vld [vmem:[%s9429_s17 + $0x10] sm:$0xff]  ;;  %v563_v26 = vld [vmem:[%s9429_s17 + $0x8] sm:$0xff]  ;;  %s9435_s26 = sld [smem:[#allocation56_spill]]  ;;  %s8150_s12 = smov 24  }
 0x12c   :  { %v657_v23 = vld [vmem:[%s9430_s4 + $0x18] sm:$0xff]  ;;  %6985 = vmatprep.subr.mxu1 %v565_v22  ;;  %v656_v25 = vld [vmem:[%s9430_s4 + $0x10] sm:$0xff]  ;;  %v655_v27 = vld [vmem:[%s9430_s4 + $0x8] sm:$0xff]  ;;  %s9436_s19 = sld [smem:[#allocation52_spill]] }
 0x12d   :  { %6996 = vmatprep.subr.mxu0 %v657_v23  ;;  %6986 = vmatpush3.msra.mxu1 %v565_v22  ;;  %v562_v28 = vld [vmem:[%s9429_s17] sm:$0xff]  ;;  %v743_v30 = vld [vmem:[%s9431_s5 + $0x18] sm:$0xff]  ;;  %v742_v47 = vld [vmem:[%s9431_s5 + $0x10] sm:$0xff]  ;;  %s9437_s27 = sld [smem:[#allocation58_spill]] }
 0x12e   :  { %6997 = vmatpush3.msra.mxu0 %v657_v23  ;;  %6987 = vmatprep.subr.mxu1 %v564_v24  ;;  %v654_v29 = vld [vmem:[%s9430_s4] sm:$0xff]  ;;  %v741_v48 = vld [vmem:[%s9431_s5 + $0x8] sm:$0xff]  ;;  %s9438_s7 = sld [smem:[#allocation53_spill]] }
 0x12f   :  { %6998 = vmatprep.subr.mxu0 %v656_v25  ;;  %6988 = vmatpush3.msra.mxu1 %v564_v24  ;;  %v6521_v38 = vld [vmem:[%s9432_s11] ss:$0 sm:$0xff]  ;;  %s9439_s15 = sld [smem:[#allocation54_spill]] }
 0x130   :  { %6999 = vmatpush3.msra.mxu0 %v656_v25  ;;  %6989 = vmatprep.subr.mxu1 %v563_v26  ;;  %v6522_v40 = vld [vmem:[%s9433_s18] ss:$0 sm:$0xff]  ;;  %v8507_v50 = vld [vmem:[%s9434_s23 + $0x8] sm:$0xff]  ;;  %s9440_s16 = sld [smem:[#allocation46_spill]] }
 0x131   :  { %6990 = vmatpush3.msra.mxu1 %v563_v26  ;;  %7000 = vmatprep.subr.mxu0 %v655_v27  ;;  %v740_v49 = vld [vmem:[%s9431_s5] sm:$0xff]  ;;  %s9441_s14 = sld [smem:[#allocation42_spill]] }
 0x132   :  { %6991 = vmatprep.subr.mxu1 %v562_v28  ;;  %7001 = vmatpush3.msra.mxu0 %v655_v27  ;;  %v8518_v51 = vld [vmem:[%s9434_s23] sm:$0xff]  ;;  %s9442_s10 = sld [smem:[#allocation43_spill]] }
 0x133   :  { %6992 = vmatpush3.msra.mxu1 %v562_v28  ;;  %7002 = vmatprep.subr.mxu0 %v654_v29  ;;  %v6523_v53 = vld [vmem:[%s9435_s26] ss:$0 sm:$0xff]  ;;  %s9443_s20 = sld [smem:[#allocation48_spill]] }
 0x134   :  { %7003 = vmatpush3.msra.mxu0 %v654_v29  ;;  %7007 = vmatprep.subr.mxu1 %v743_v30  ;;  %v6526_v55 = vld [vmem:[%s9436_s19] ss:$0 sm:$0xff]  ;;  %s9444_s13 = sld [smem:[#allocation47_spill]] }
 0x135   :  { %7018 = vmatprep.subr.msk.mxu0 %vm828_vm3, %v8507_v50  ;;  %v6529_v1 = vld [vmem:[%s9437_s27] ss:$0 sm:$0xff]  ;;  %s9445_s9 = sld [smem:[#allocation44_spill]] }
 0x136   :  { %s9446_s28 = sld [smem:[#allocation49_spill]] }
 0x137   :  { %s9447_s22 = sld [smem:[#allocation45_spill]] }
 0x138   :  { %s9448_s8 = sld [smem:[#allocation36_spill]] }
 0x139   :  { %s9449_s17 = sld [smem:[#allocation38_spill]] }
 0x13a   :  { %s9450_s4 = sld [smem:[#allocation59_spill]] }
 0x13b   :  { %s9451_s5 = sld [smem:[#allocation60_spill]] }
 0x13c   :  { %s9452_s11 = sld [smem:[#allocation37_spill]] }
 0x13d   :  { %s9453_s18 = sld [smem:[#allocation39_spill]] }
 0x13e   :  { %s9454_s23 = sld [smem:[#allocation61_spill]] }
 0x13f   :  { %s9455_s26 = sld [smem:[#allocation62_spill]] }
 0x140   :  { %s9456_s19 = sld [smem:[#allocation73_spill]] }
 0x141   :  { %s9457_s27 = sld [smem:[#allocation71_spill]] }
 0x1ea   :  { %v6984_v5 = vpop.f32.mrf.mxu1 }
 0x1eb   :  { %v8476_v9 = vadd.f32 %v6984_v5, %v6517_v6 }
 0x1ec   :  { %v505_v7 = vpop.f32.mrf.mxu1 }
 0x1ed   :  { %v8474_v8 = vadd.f32 %v6517_v6, %v505_v7  ;;  %v520_v11 = vsel %vm516_vm2, %v8476_v9, 0.0 }
 0x1ef   :  { %v517_v10 = vsel %vm516_vm2, %v8474_v8, 0.0 }
 0x1f0   :  { %518 = vadd.xlane.f32.xlu0 %v517_v10 }
 0x1f4   :  { %521 = vadd.xlane.f32.xlu0 %v520_v11 }
 0x279   :  { %v519_v12 = vpop.xlane.xlu0 %518 }
 0x27a   :  { %v524_v13 = vmul.f32 0.03125, %v519_v12 }
 0x27c   :  { %v526_v14 = vsub.f32 %v8474_v8, %v524_v13 }
 0x27d   :  { %v522_v15 = vpop.xlane.xlu0 %521 }
 0x27e   :  { %v525_v16 = vmul.f32 0.03125, %v522_v15  ;;  %v528_v17 = vmul.f32 %v526_v14, %v526_v14 }
 0x280   :  { %v527_v18 = vsub.f32 %v8476_v9, %v525_v16  ;;  %v530_v19 = vsel %vm516_vm2, %v528_v17, 0.0 }
 0x281   :  { %531 = vadd.xlane.f32.xlu1 %v530_v19 }
 0x282   :  { %v529_v20 = vmul.f32 %v527_v18, %v527_v18 }
 0x284   :  { %v533_v21 = vsel %vm516_vm2, %v529_v20, 0.0 }
 0x285   :  { %534 = vadd.xlane.f32.xlu1 %v533_v21 }
 0x30a   :  { %v532_v31 = vpop.xlane.xlu1 %531 }
 0x30b   :  { %v536_v32 = vmul.f32 0.03125, %v532_v31 }
 0x30d   :  { %v538_v33 = vadd.f32 1e-05, %v536_v32 }
 0x30e   :  { %v535_v34 = vpop.xlane.xlu1 %534 }
 0x30f   :  { %7611 = vrsqrt.f32 %v538_v33  ;;  %v537_v35 = vmul.f32 0.03125, %v535_v34 }
 0x311   :  { %v539_v36 = vadd.f32 1e-05, %v537_v35 }
 0x313   :  { %7613 = vrsqrt.f32 %v539_v36 }
 0x31c   :  { %v7612_v37 = vpop.eup %7611 }
 0x31d   :  { %v542_v39 = vmul.f32 %v7612_v37, %v526_v14 }
 0x31f   :  { %v551_v41 = vmul.f32 %v6521_v38, %v542_v39 }
 0x320   :  { %v7614_v42 = vpop.eup %7613 }
 0x321   :  { %v543_v43 = vmul.f32 %v7614_v42, %v527_v18  ;;  %v560_v44 = vadd.f32 %v6522_v40, %v551_v41 }
 0x323   :  { %v552_v45 = vmul.f32 %v6521_v38, %v543_v43  ;;  %6993 = vmatprep.mubr.msk.f32.mxu1 %vm516_vm2, %v560_v44  ;;  %7004 = vmatprep.mubr.msk.f32.mxu0 %vm516_vm2, %v560_v44 }
 0x325   :  { %v561_v46 = vadd.f32 %v6522_v40, %v552_v45 }
 0x327   :  { %6994 = vmatmul.mubr.msk.f32.vlgmr.msra.gmra.mxu1 %vm516_vm2, %v561_v46  ;;  %7005 = vmatmul.mubr.msk.f32.vlgmr.msra.gmra.mxu0 %vm516_vm2, %v561_v46 }
 0x328   :  { %7008 = vmatpush3.msra.mxu1 %v743_v30  ;;  %7015 = vmatprep.mubr.msk.f32.mxu1 %vm516_vm2, %v560_v44 }
 0x329   :  { %7009 = vmatprep.subr.mxu1 %v742_v47  ;;  %7019 = vmatpush3.xpose.msk.msra.mxu0 %vm828_vm3, %v8507_v50 }
 0x32a   :  { %7010 = vmatpush3.msra.mxu1 %v742_v47  ;;  %7020 = vmatprep.subr.msk.mxu0 %vm828_vm3, %v8518_v51 }
 0x32b   :  { %7011 = vmatprep.subr.mxu1 %v741_v48 }
 0x32c   :  { %7012 = vmatpush3.msra.mxu1 %v741_v48 }
 0x32d   :  { %7013 = vmatprep.subr.mxu1 %v740_v49  ;;  %7021 = vmatpush3.xpose.msk.msra.mxu0 %vm828_vm3, %v8518_v51 }
 0x32e   :  { %7014 = vmatpush3.msra.mxu1 %v740_v49 }
 0x32f   :  { %7016 = vmatmul.mubr.msk.f32.vlgmr.msra.gmra.mxu1 %vm516_vm2, %v561_v46  ;;  %7025 = vmatprep.subr.msk.mxu1 %vm828_vm3, %v8507_v50 }
 0x330   :  { %7026 = vmatpush3.xpose.msk.msra.mxu1 %vm828_vm3, %v8507_v50 }
 0x331   :  { %7027 = vmatprep.subr.msk.mxu1 %vm828_vm3, %v8518_v51 }
 0x334   :  { %7028 = vmatpush3.xpose.msk.msra.mxu1 %vm828_vm3, %v8518_v51 }
 0x335   :  { %7046 = vmatprep.subr.msk.mxu1 %vm828_vm3, %v8507_v50 }
 0x3e7   :  { %v6995_v52 = vpop.f32.mrf.mxu1  ;;  %v7006_v54 = vpop.f32.mrf.mxu0 }
 0x3e8   :  { %v651_v58 = vadd.f32 %v6995_v52, %v6523_v53  ;;  %v737_v59 = vadd.f32 %v7006_v54, %v6526_v55 }
 0x3e9   :  { %v645_v56 = vpop.f32.mrf.mxu1  ;;  %v731_v57 = vpop.f32.mrf.mxu0 }
 0x3ea   :  { %v646_v60 = vadd.f32 %v6523_v53, %v645_v56  ;;  %v732_v61 = vadd.f32 %v6526_v55, %v731_v57  ;;  %v8539_v2 = vmul.f32 0.59460354, %v651_v58  ;;  %v8541_v3 = vmul.f32 0.59460354, %v737_v59 }
 0x3eb   :  { %v8569_v16 = vmul.f32 %v737_v59, %v737_v59  ;;  %v8575_v19 = vmul.f32 %v651_v58, %v651_v58 }
 0x3ec   :  { %v8532_v62 = vmul.f32 0.59460354, %v646_v60  ;;  %v8534_v63 = vmul.f32 0.59460354, %v732_v61  ;;  %v8536_v0 = vmul.f32 %v732_v61, %v732_v61  ;;  %v8571_v17 = vmul.f32 %v646_v60, %v646_v60 }
 0x3ed   :  { %v1016_v18 = vsel %vm828_vm3, %v8569_v16, 0.0  ;;  %v1004_v22 = vsel %vm828_vm3, %v8575_v19, 0.0 }
 0x3ee   :  { %7022 = vmatprep.mubr.msk.f32.mxu0 %vm828_vm3, %v8532_v62  ;;  %7029 = vmatprep.mubr.msk.f32.mxu1 %vm828_vm3, %v8534_v63  ;;  %v1013_v5 = vsel %vm828_vm3, %v8536_v0, 0.0  ;;  %v1001_v20 = vsel %vm828_vm3, %v8571_v17, 0.0 }
 0x3ef   :  { %v7017_v4 = vpop.f32.mrf.mxu1  ;;  %1014 = vadd.xlane.f32.xlu1 %v1013_v5  ;;  %7023 = vmatmul.mubr.msk.f32.vlgmr.msra.gmra.mxu0 %vm828_vm3, %v8539_v2 }
 0x3f0   :  { %v8549_v6 = vadd.f32 %v7017_v4, %v6529_v1  ;;  %7030 = vmatmul.mubr.msk.f32.vlgmr.msra.gmra.mxu1 %vm828_vm3, %v8541_v3 }
 0x3f1   :  { %v817_v7 = vpop.f32.mrf.mxu1  ;;  %7047 = vmatpush3.xpose.msk.msra.mxu1 %vm828_vm3, %v8507_v50 }
 0x3f2   :  { %v8555_v10 = vadd.f32 %v6529_v1, %v817_v7  ;;  %7032 = vmatprep.subr.mxu0 %v8549_v6  ;;  %7048 = vmatprep.subr.msk.mxu1 %vm828_vm3, %v8518_v51 }
 0x3f3   :  { %7033 = vmatpush3.msra.mxu0 %v8549_v6 }
 0x3f4   :  { %7034 = vmatprep.subr.mxu0 %v8555_v10 }
 0x3f5   :  { %7035 = vmatpush3.msra.mxu0 %v8555_v10  ;;  %7049 = vmatpush3.xpose.msk.msra.mxu1 %vm828_vm3, %v8518_v51 }
 0x478   :  { %v1015_v34 = vpop.xlane.xlu1 %1014 }
 0x479   :  { %v1019_v36 = vmul.f32 0.5, %v1015_v34 }
 0x47b   :  { %v1021_v38 = vmul.f32 0.35355338, %v1019_v36 }
 0x4af   :  { %v8579_v21 = vpop.f32.mrf.mxu0 }
 0x4b0   :  { %v7031_v11 = vpop.f32.mrf.mxu1  ;;  %v1029_v25 = vsel %vm1025_vm4, %v8579_v21, -inf }
 0x4b1   :  { %v1045_v13 = vsel %vm1025_vm4, %v7031_v11, -inf  ;;  %v907_v23 = vpop.f32.mrf.mxu0 }
 0x4b2   :  { %v990_v12 = vpop.f32.mrf.mxu1  ;;  %v1026_v24 = vsel %vm1025_vm4, %v907_v23, -inf }
 0x4b3   :  { %v1044_v14 = vsel %vm1025_vm4, %v990_v12, -inf  ;;  %v1042_v39 = vsub.f32 %v990_v12, %v1021_v38 }
 0x4b4   :  { %v1046_v15 = vmax.f32 %v1044_v14, %v1045_v13 }
 0x4b6   :  { %1047 = vmax.xlane.f32.xlu0 %v1046_v15 }
 0x4ba   :  { %1017 = vadd.xlane.f32.xlu0 %v1016_v18 }
 0x4be   :  { %1002 = vadd.xlane.f32.xlu0 %v1001_v20 }
 0x4c2   :  { %1005 = vadd.xlane.f32.xlu0 %v1004_v22 }
 0x4c6   :  { %1027 = vmax.xlane.f32.xlu0 %v1026_v24 }
 0x4ca   :  { %1030 = vmax.xlane.f32.xlu0 %v1029_v25 }
 0x4e0   :  { %1365 = vrot.lane.b32.xlu0 %v8534_v63, %s8145_s1 }
 0x4e4   :  { %1367 = vrot.lane.b32.xlu0 %v8541_v3, %s8145_s1 }
 0x4e8   :  { %1468 = vrot.lane.b32.xlu0 %v8536_v0, %s8145_s1 }
 0x4ec   :  { %1470 = vrot.lane.b32.xlu0 %v8569_v16, %s8145_s1 }
 0x53f   :  { %v1048_v26 = vpop.xlane.xlu0 %1047 }
 0x540   :  { %v1049_v27 = vrot.slane %v1048_v26, 4 }
 0x542   :  { %v1050_v28 = vmax.f32 %v1048_v26, %v1049_v27 }
 0x543   :  { %v1018_v33 = vpop.xlane.xlu0 %1017 }
 0x544   :  { %v1051_v29 = vrot.slane %v1050_v28, 2  ;;  %v1020_v35 = vmul.f32 0.5, %v1018_v33 }
 0x546   :  { %v1052_v30 = vmax.f32 %v1050_v28, %v1051_v29  ;;  %v1022_v37 = vmul.f32 0.35355338, %v1020_v35 }
 0x547   :  { %v1003_v57 = vpop.xlane.xlu0 %1002 }
 0x548   :  { %v1053_v31 = vrot.slane %v1052_v30, 1  ;;  %v1043_v40 = vsub.f32 %v7031_v11, %v1022_v37  ;;  %v1007_v7 = vmul.f32 0.5, %v1003_v57 }
 0x54a   :  { %v1054_v32 = vmax.f32 %v1052_v30, %v1053_v31  ;;  %v1009_v11 = vmul.f32 0.35355338, %v1007_v7 }
 0x54b   :  { %v1006_v58 = vpop.xlane.xlu0 %1005 }
 0x54c   :  { %7514 = vpush %v1054_v32  ;;  %v1023_v12 = vsub.f32 %v907_v23, %v1009_v11  ;;  %v1008_v27 = vmul.f32 0.5, %v1006_v58 }
 0x54e   :  { %v1010_v28 = vmul.f32 0.35355338, %v1008_v27 }
 0x54f   :  { %v1028_v59 = vpop.xlane.xlu0 %1027 }
 0x550   :  { %v1032_v13 = vsub.f32 %v1023_v12, %v1028_v59  ;;  %v1024_v29 = vsub.f32 %v8579_v21, %v1010_v28 }
 0x552   :  { %v1034_v14 = vmul.f32 1.442695, %v1032_v13 }
 0x553   :  { %v1031_v60 = vpop.xlane.xlu0 %1030 }
 0x554   :  { %v1033_v30 = vsub.f32 %v1024_v29, %v1031_v60 }
 0x556   :  { %v1036_v31 = vmul.f32 1.442695, %v1033_v30 }
 0x557   :  { %v1366_v61 = vpop.permute.xlu0 %1365 }
 0x55b   :  { %v1368_v1 = vpop.permute.xlu0 %1367 }
 0x55f   :  { %v1469_v4 = vpop.permute.xlu0 %1468 }
 0x560   :  { %v1474_v5 = vsel %vm828_vm3, %v1469_v4, 0.0 }
 0x57d   :  { %s7515_s30 = spop %7514 }
 0x57e   :  { %v1056_v41 = vstv %s7515_s30  ;;  %s9458_s30 = sld [smem:[#allocation74_spill]] }
 0x57f   :  { %v1057_v42 = vsub.f32 %v1042_v39, %v1056_v41  ;;  %v1058_v43 = vsub.f32 %v1043_v40, %v1056_v41 }
 0x581   :  { %v1059_v44 = vmul.f32 1.442695, %v1057_v42  ;;  %v1061_v45 = vmul.f32 1.442695, %v1058_v43  ;;  %v1471_v43 = vpop.permute.xlu0 %1470 }
 0x583   :  { %7615 = vpow2.f32 %v1059_v44  ;;  %v1477_v44 = vsel %vm828_vm3, %v1471_v43, 0.0 }
 0x584   :  { %7617 = vpow2.f32 %v1061_v45 }
 0x585   :  { %7619 = vpow2.f32 %v1034_v14 }
 0x586   :  { %7621 = vpow2.f32 %v1036_v31 }
 0x590   :  { %v7616_v46 = vpop.eup %7615 }
 0x591   :  { %v7618_v47 = vpop.eup %7617  ;;  %v1063_v48 = vadd.f32 0.0001, %v7616_v46 }
 0x592   :  { %v1064_v49 = vadd.f32 0.0001, %v7618_v47  ;;  %v7620_v15 = vpop.eup %7619 }
 0x593   :  { %v1065_v52 = vmul.f32 0.25, %v1063_v48  ;;  %v1038_v18 = vadd.f32 0.0001, %v7620_v15  ;;  %v7622_v32 = vpop.eup %7621 }
 0x594   :  { %v1066_v53 = vmul.f32 0.25, %v1064_v49  ;;  %v1039_v33 = vadd.f32 0.0001, %v7622_v32 }
 0x595   :  { %1086 = vxpose.xlu1.b32.start [1/2] (short) (narrow) %v1065_v52, 16  ;;  %v1067_v54 = vsel %vm1025_vm4, %v1065_v52, 0.0  ;;  %v8604_v22 = vmul.f32 0.25, %v1038_v18 }
 0x596   :  { %v1068_v55 = vsel %vm1025_vm4, %v1066_v53, 0.0  ;;  %v8611_v36 = vmul.f32 0.25, %v1039_v33 }
 0x597   :  { %v8596_v56 = vadd.f32 %v1068_v55, %v1067_v54 }
 0x599   :  { %1087 = vxpose.xlu1.b32.end [2/2] (short) (narrow) %v1066_v53, 16 }
 0x5b7   :  { %1282 = vrot.lane.b32.xlu1 %v8532_v62, %s8145_s1 }
 0x5db   :  { %1475 = vadd.xlane.f32.xlu1 %v1474_v5 }
 0x5ec   :  { %1582 = vrot.lane.b32.xlu1 %v8549_v6, %s8145_s1 }
 0x611   :  { %v1102_v20 = vpop.trf.xlu1 }
 0x612   :  { %7036 = vmatprep.mubr.msk.f32.mxu0 %vm1025_vm4, %v1102_v20 }
 0x615   :  { %v1103_v24 = vpop.trf.xlu1 }
 0x616   :  { %7037 = vmatmul.mubr.msk.f32.vlgmr.msra.gmra.mxu0 %vm1025_vm4, %v1103_v24 }
 0x617   :  { %7043 = vmatprep.mubr.msk.f32.mxu0 %vm1025_vm4, %v8604_v22 }
 0x629   :  { %v1283_v25 = vpop.permute.xlu1 %1282 }
 0x62a   :  { %7050 = vmatprep.mubr.msk.f32.mxu1 %vm828_vm3, %v1283_v25 }
 0x664   :  { %v1476_v23 = vpop.xlane.xlu1 %1475 }
 0x665   :  { %v1480_v58 = vmul.f32 0.5, %v1476_v23 }
 0x668   :  { %v1583_v26 = vpop.permute.xlu1 %1582 }
 0x669   :  { %7060 = vmatprep.subr.mxu1 %v1583_v26 }
 0x6d6   :  { %v7038_v34 = vpop.f32.mrf.mxu0 }
 0x6d7   :  { %7039 = vmatprep.subr.mxu0 %v7038_v34 }
 0x6d8   :  { %v1190_v35 = vpop.f32.mrf.mxu0  ;;  %7040 = vmatpush3.msra.mxu0 %v7038_v34 }
 0x6d9   :  { %7041 = vmatprep.subr.mxu0 %v1190_v35 }
 0x6da   :  { %7042 = vmatpush3.msra.mxu0 %v1190_v35 }
 0x6db   :  { %7044 = vmatmul.mubr.msk.f32.vlgmr.msra.gmra.mxu0 %vm1025_vm4, %v8611_v36  ;;  %7053 = vmatprep.subr.msk.mxu0 %vm828_vm3, %v8507_v50 }
 0x6dc   :  { %7054 = vmatpush3.xpose.msk.msra.mxu0 %vm828_vm3, %v8507_v50  ;;  %7057 = vmatprep.mubr.msk.f32.mxu0 %vm828_vm3, %v1366_v61  ;;  %v1482_v61 = vmul.f32 0.35355338, %v1480_v58 }
 0x6dd   :  { %7055 = vmatprep.subr.msk.mxu0 %vm828_vm3, %v8518_v51 }
 0x6e0   :  { %7056 = vmatpush3.xpose.msk.msra.mxu0 %vm828_vm3, %v8518_v51 }
 0x6e3   :  { %7058 = vmatmul.mubr.msk.f32.vlgmr.msra.gmra.mxu0 %vm828_vm3, %v1368_v1 }
 0x79b   :  { %v8625_v21 = vpop.f32.mrf.mxu0 }
 0x79d   :  { %v8627_v37 = vpop.f32.mrf.mxu0 }
 0x7a3   :  { %v7059_v38 = vpop.f32.mrf.mxu0 }
 0x7a4   :  { %v1505_v40 = vsel %vm1025_vm4, %v7059_v38, -inf }
 0x7a5   :  { %v1439_v39 = vpop.f32.mrf.mxu0 }
 0x7a6   :  { %v1504_v41 = vsel %vm1025_vm4, %v1439_v39, -inf  ;;  %v1502_v4 = vsub.f32 %v1439_v39, %v1482_v61 }
 0x7a7   :  { %v1506_v42 = vmax.f32 %v1504_v41, %v1505_v40 }
 0x7a9   :  { %1507 = vmax.xlane.f32.xlu0 %v1506_v42 }
 0x7bf   :  { %1284 = vrot.lane.b32.xlu0 %v8539_v2, %s8145_s1 }
 0x7de   :  { %1478 = vadd.xlane.f32.xlu0 %v1477_v44 }
 0x7f4   :  { %1580 = vrot.lane.b32.xlu0 %v8555_v10, %s8145_s1 }
 0x7f8   :  { %1450 = vrot.lane.b32.xlu0 %v8571_v17, %s8145_s1 }
 0x7fc   :  { %1452 = vrot.lane.b32.xlu0 %v8575_v19, %s8145_s1 }
 0x832   :  { %v1508_v45 = vpop.xlane.xlu0 %1507 }
 0x833   :  { %v1509_v46 = vrot.slane %v1508_v45, 4 }
 0x835   :  { %v1510_v47 = vmax.f32 %v1508_v45, %v1509_v46 }
 0x836   :  { %v1285_v48 = vpop.permute.xlu0 %1284 }
 0x837   :  { %7051 = vmatmul.mubr.msk.f32.vlgmr.msra.gmra.mxu1 %vm828_vm3, %v1285_v48  ;;  %v1511_v49 = vrot.slane %v1510_v47, 2 }
 0x838   :  { %7061 = vmatpush3.msra.mxu1 %v1583_v26 }
 0x839   :  { %v1512_v52 = vmax.f32 %v1510_v47, %v1511_v49 }
 0x83b   :  { %v1513_v53 = vrot.slane %v1512_v52, 1 }
 0x83d   :  { %v1514_v54 = vmax.f32 %v1512_v52, %v1513_v53 }
 0x83f   :  { %7516 = vpush %v1514_v54 }
 0x867   :  { %v1479_v55 = vpop.xlane.xlu0 %1478 }
 0x868   :  { %v1481_v57 = vmul.f32 0.5, %v1479_v55 }
 0x86a   :  { %v1483_v60 = vmul.f32 0.35355338, %v1481_v57 }
 0x86b   :  { %v1581_v59 = vpop.permute.xlu0 %1580 }
 0x86c   :  { %7062 = vmatprep.subr.mxu1 %v1581_v59  ;;  %v1503_v5 = vsub.f32 %v7059_v38, %v1483_v60 }
 0x86d   :  { %7063 = vmatpush3.msra.mxu1 %v1581_v59 }
 0x86e   :  { %7074 = vmatprep.subr.msk.mxu1 %vm828_vm3, %v8507_v50 }
 0x86f   :  { %v1451_v1 = vpop.permute.xlu0 %1450 }
 0x870   :  { %s7517_s0 = spop %7516  ;;  %v1456_v7 = vsel %vm828_vm3, %v1451_v1, 0.0 }
 0x871   :  { %v1516_v11 = vstv %s7517_s0  ;;  %1457 = vadd.xlane.f32.xlu0 %v1456_v7  ;;  %s9459_s0 = sld [smem:[#allocation70_spill]] }
 0x872   :  { %v1517_v12 = vsub.f32 %v1502_v4, %v1516_v11  ;;  %v1518_v13 = vsub.f32 %v1503_v5, %v1516_v11 }
 0x873   :  { %v1453_v30 = vpop.permute.xlu0 %1452 }
 0x874   :  { %v1519_v14 = vmul.f32 1.442695, %v1517_v12  ;;  %v1521_v15 = vmul.f32 1.442695, %v1518_v13  ;;  %v1459_v31 = vsel %vm828_vm3, %v1453_v30, 0.0 }
 0x876   :  { %7623 = vpow2.f32 %v1519_v14 }
 0x877   :  { %7625 = vpow2.f32 %v1521_v15 }
 0x883   :  { %v7624_v18 = vpop.eup %7623 }
 0x884   :  { %v7626_v20 = vpop.eup %7625  ;;  %v1523_v24 = vadd.f32 0.0001, %v7624_v18 }
 0x885   :  { %v1524_v25 = vadd.f32 0.0001, %v7626_v20 }
 0x886   :  { %v1525_v23 = vmul.f32 0.25, %v1523_v24 }
 0x887   :  { %v1526_v26 = vmul.f32 0.25, %v1524_v25 }
 0x888   :  { %1546 = vxpose.xlu1.b32.start [1/2] (short) (narrow) %v1525_v23, 16  ;;  %v1527_v27 = vsel %vm1025_vm4, %v1525_v23, 0.0 }
 0x889   :  { %v1528_v28 = vsel %vm1025_vm4, %v1526_v26, 0.0 }
 0x88a   :  { %v1529_v29 = vadd.f32 %v1528_v28, %v1527_v27 }
 0x88c   :  { %1547 = vxpose.xlu1.b32.end [2/2] (short) (narrow) %v1526_v26, 16  ;;  %v1530_v53 = vrot.slane %v1529_v29, 4 }
 0x88e   :  { %v1531_v60 = vadd.f32 %v1530_v53, %v1529_v29 }
 0x890   :  { %v1532_v4 = vrot.slane %v1531_v60, 2 }
 0x892   :  { %v1533_v11 = vadd.f32 %v1532_v4, %v1531_v60 }
 0x894   :  { %v1534_v12 = vrot.slane %v1533_v11, 1 }
 0x896   :  { %v1535_v18 = vadd.f32 %v1534_v12, %v1533_v11 }
 0x8b3   :  { %1460 = vadd.xlane.f32.xlu1 %v1459_v31 }
 0x8c4   :  { %1835 = vrot.lane.b32.xlu1 %v8541_v3, %s8146_s29 }
 0x8c8   :  { %1750 = vrot.lane.b32.xlu1 %v8532_v62, %s8146_s29 }
 0x8cc   :  { %1752 = vrot.lane.b32.xlu1 %v8539_v2, %s8146_s29 }
 0x8f7   :  { %v7052_v32 = vpop.f32.mrf.mxu1 }
 0x8f8   :  { %v1489_v35 = vsel %vm1025_vm4, %v7052_v32, -inf }
 0x8f9   :  { %v1356_v33 = vpop.f32.mrf.mxu1 }
 0x8fa   :  { %v1486_v34 = vsel %vm1025_vm4, %v1356_v33, -inf  ;;  %v1458_v44 = vpop.xlane.xlu0 %1457 }
 0x8fb   :  { %1487 = vmax.xlane.f32.xlu0 %v1486_v34  ;;  %v1462_v45 = vmul.f32 0.5, %v1458_v44 }
 0x8fd   :  { %v1464_v46 = vmul.f32 0.35355338, %v1462_v45 }
 0x8ff   :  { %1490 = vmax.xlane.f32.xlu0 %v1489_v35  ;;  %v1484_v49 = vsub.f32 %v1356_v33, %v1464_v46 }
 0x904   :  { %v1562_v38 = vpop.trf.xlu1 }
 0x905   :  { %7064 = vmatprep.mubr.msk.f32.mxu1 %vm1025_vm4, %v1562_v38 }
 0x908   :  { %v1563_v39 = vpop.trf.xlu1 }
 0x909   :  { %7065 = vmatmul.mubr.msk.f32.vlgmr.msra.gmra.mxu1 %vm1025_vm4, %v1563_v39 }
 0x90a   :  { %7075 = vmatpush3.xpose.msk.msra.mxu1 %vm828_vm3, %v8507_v50 }
 0x90b   :  { %7076 = vmatprep.subr.msk.mxu1 %vm828_vm3, %v8518_v51 }
 0x90e   :  { %7077 = vmatpush3.xpose.msk.msra.mxu1 %vm828_vm3, %v8518_v51 }
 0x915   :  { %1833 = vrot.lane.b32.xlu0 %v8534_v63, %s8146_s29 }
 0x919   :  { %1932 = vrot.lane.b32.xlu0 %v8536_v0, %s8146_s29 }
 0x91d   :  { %1934 = vrot.lane.b32.xlu0 %v8569_v16, %s8146_s29 }
 0x93c   :  { %v1461_v40 = vpop.xlane.xlu1 %1460 }
 0x93d   :  { %v1463_v47 = vmul.f32 0.5, %v1461_v40 }
 0x93f   :  { %v1465_v48 = vmul.f32 0.35355338, %v1463_v47 }
 0x940   :  { %v1836_v41 = vpop.permute.xlu1 %1835 }
 0x941   :  { %v1485_v57 = vsub.f32 %v7052_v32, %v1465_v48 }
 0x944   :  { %v1751_v42 = vpop.permute.xlu1 %1750 }
 0x945   :  { %7078 = vmatprep.mubr.msk.f32.mxu1 %vm828_vm3, %v1751_v42 }
 0x948   :  { %v1753_v43 = vpop.permute.xlu1 %1752 }
 0x949   :  { %7079 = vmatmul.mubr.msk.f32.vlgmr.msra.gmra.mxu1 %vm828_vm3, %v1753_v43 }
 0x984   :  { %v1488_v52 = vpop.xlane.xlu0 %1487 }
 0x985   :  { %v1492_v54 = vsub.f32 %v1484_v49, %v1488_v52 }
 0x987   :  { %v1494_v55 = vmul.f32 1.442695, %v1492_v54 }
 0x988   :  { %v1491_v58 = vpop.xlane.xlu0 %1490 }
 0x989   :  { %7627 = vpow2.f32 %v1494_v55  ;;  %v1493_v59 = vsub.f32 %v1485_v57, %v1491_v58 }
 0x98b   :  { %v1496_v61 = vmul.f32 1.442695, %v1493_v59 }
 0x98c   :  { %v1834_v1 = vpop.permute.xlu0 %1833 }
 0x98d   :  { %7629 = vpow2.f32 %v1496_v61 }
 0x990   :  { %v1933_v5 = vpop.permute.xlu0 %1932 }
 0x991   :  { %v1938_v7 = vsel %vm828_vm3, %v1933_v5, 0.0 }
 0x992   :  { %1939 = vadd.xlane.f32.xlu1 %v1938_v7 }
 0x994   :  { %v1935_v46 = vpop.permute.xlu0 %1934 }
 0x996   :  { %v7628_v13 = vpop.eup %7627 }
 0x997   :  { %v1498_v14 = vadd.f32 0.0001, %v7628_v13 }
 0x999   :  { %v1500_v15 = vmul.f32 0.25, %v1498_v14 }
 0x99a   :  { %v7630_v20 = vpop.eup %7629 }
 0x99b   :  { %v1499_v24 = vadd.f32 0.0001, %v7630_v20  ;;  %7071 = vmatprep.mubr.msk.f32.mxu0 %vm1025_vm4, %v1500_v15  ;;  %v8673_v25 = vmul.f32 %v1535_v18, %v1500_v15 }
 0x99d   :  { %v1501_v23 = vmul.f32 0.25, %v1499_v24 }
 0x99f   :  { %v8675_v26 = vmul.f32 %v1535_v18, %v1501_v23 }
 0x9a3   :  { %2042 = vrot.lane.b32.xlu1 %v8555_v10, %s8146_s29 }
 0x9a7   :  { %1916 = vrot.lane.b32.xlu1 %v8571_v17, %s8146_s29 }
 0x9ab   :  { %1918 = vrot.lane.b32.xlu1 %v8575_v19, %s8146_s29 }
 0x9c9   :  { %v7066_v27 = vpop.f32.mrf.mxu1 }
 0x9ca   :  { %7067 = vmatprep.subr.mxu0 %v7066_v27 }
 0x9cb   :  { %v1658_v28 = vpop.f32.mrf.mxu1  ;;  %7068 = vmatpush3.msra.mxu0 %v7066_v27 }
 0x9cc   :  { %7069 = vmatprep.subr.mxu0 %v1658_v28 }
 0x9cd   :  { %7070 = vmatpush3.msra.mxu0 %v1658_v28 }
 0x9ce   :  { %7072 = vmatmul.mubr.msk.f32.vlgmr.msra.gmra.mxu0 %vm1025_vm4, %v1501_v23  ;;  %7081 = vmatprep.subr.msk.mxu0 %vm828_vm3, %v8507_v50 }
 0x9cf   :  { %7082 = vmatpush3.xpose.msk.msra.mxu0 %vm828_vm3, %v8507_v50  ;;  %7085 = vmatprep.mubr.msk.f32.mxu0 %vm828_vm3, %v1834_v1 }
 0x9d0   :  { %7083 = vmatprep.subr.msk.mxu0 %vm828_vm3, %v8518_v51 }
 0x9d3   :  { %7084 = vmatpush3.xpose.msk.msra.mxu0 %vm828_vm3, %v8518_v51 }
 0x9d6   :  { %7086 = vmatmul.mubr.msk.f32.vlgmr.msra.gmra.mxu0 %vm828_vm3, %v1836_v41 }
 0xa09   :  { %v8694_v31 = vpop.f32.mrf.mxu1 }
 0xa0a   :  { %v1953_v38 = vsel %vm1025_vm4, %v8694_v31, -inf }
 0xa0b   :  { %v1824_v34 = vpop.f32.mrf.mxu1 }
 0xa0c   :  { %v1950_v35 = vsel %vm1025_vm4, %v1824_v34, -inf }
 0xa1b   :  { %v1940_v29 = vpop.xlane.xlu1 %1939 }
 0xa1c   :  { %v1944_v14 = vmul.f32 0.5, %v1940_v29 }
 0xa1e   :  { %v1946_v18 = vmul.f32 0.35355338, %v1944_v14 }
 0xa1f   :  { %v2043_v30 = vpop.permute.xlu1 %2042 }
 0xa23   :  { %v1917_v32 = vpop.permute.xlu1 %1916 }
 0xa24   :  { %v1922_v33 = vsel %vm828_vm3, %v1917_v32, 0.0 }
 0xa25   :  { %1923 = vadd.xlane.f32.xlu1 %v1922_v33 }
 0xa29   :  { %1951 = vmax.xlane.f32.xlu1 %v1950_v35 }
 0xa2d   :  { %1954 = vmax.xlane.f32.xlu1 %v1953_v38 }
 0xa3e   :  { %2295 = vrot.lane.b32.xlu1 %v8534_v63, %s8147_s2  ;;  %v1941_v63 = vsel %vm828_vm3, %v1935_v46, 0.0 }
 0xa42   :  { %2297 = vrot.lane.b32.xlu1 %v8541_v3, %s8147_s2  ;;  %v1919_v3 = vpop.permute.xlu1 %1918 }
 0xa46   :  { %2396 = vrot.lane.b32.xlu1 %v8569_v16, %s8147_s2 }
 0xa8e   :  { %v8706_v39 = vpop.f32.mrf.mxu0 }
 0xa90   :  { %v8708_v40 = vpop.f32.mrf.mxu0 }
 0xa96   :  { %v7087_v41 = vpop.f32.mrf.mxu0 }
 0xa97   :  { %v1969_v43 = vsel %vm1025_vm4, %v7087_v41, -inf }
 0xa98   :  { %v1907_v42 = vpop.f32.mrf.mxu0 }
 0xa99   :  { %v1968_v44 = vsel %vm1025_vm4, %v1907_v42, -inf  ;;  %v1966_v20 = vsub.f32 %v1907_v42, %v1946_v18  ;;  %v1538_v18 = vsel %vm1025_vm4, %v8673_v25, 0.0 }
 0xa9a   :  { %v1970_v45 = vmax.f32 %v1968_v44, %v1969_v43 }
 0xa9c   :  { %1971 = vmax.xlane.f32.xlu0 %v1970_v45  ;;  %v1925_v45 = vsel %vm828_vm3, %v1919_v3, 0.0 }
 0xaa0   :  { %1942 = vadd.xlane.f32.xlu0 %v1941_v63 }
 0xaae   :  { %v1924_v47 = vpop.xlane.xlu1 %1923 }
 0xaaf   :  { %v1928_v48 = vmul.f32 0.5, %v1924_v47 }
 0xab1   :  { %v1930_v16 = vmul.f32 0.35355338, %v1928_v48 }
 0xab2   :  { %v1952_v52 = vpop.xlane.xlu1 %1951 }
 0xab3   :  { %v1948_v49 = vsub.f32 %v1824_v34, %v1930_v16 }
 0xab5   :  { %v1956_v53 = vsub.f32 %v1948_v49, %v1952_v52 }
 0xab6   :  { %2044 = vrot.lane.b32.xlu0 %v8549_v6, %s8146_s29  ;;  %v1955_v52 = vpop.xlane.xlu1 %1954 }
 0xab7   :  { %v1958_v54 = vmul.f32 1.442695, %v1956_v53 }
 0xab9   :  { %7631 = vpow2.f32 %v1958_v54 }
 0xac6   :  { %v7632_v55 = vpop.eup %7631 }
 0xac7   :  { %v1962_v57 = vadd.f32 0.0001, %v7632_v55 }
 0xac9   :  { %v8715_v58 = vmul.f32 0.25, %v1962_v57 }
 0xacb   :  { %7099 = vmatprep.mubr.msk.f32.mxu0 %vm1025_vm4, %v8715_v58 }
 0xb25   :  { %v1972_v59 = vpop.xlane.xlu0 %1971 }
 0xb26   :  { %v1973_v60 = vrot.slane %v1972_v59, 4 }
 0xb28   :  { %v1974_v61 = vmax.f32 %v1972_v59, %v1973_v60 }
 0xb29   :  { %v1943_v1 = vpop.xlane.xlu0 %1942 }
 0xb2a   :  { %v1975_v4 = vrot.slane %v1974_v61, 2  ;;  %v1945_v13 = vmul.f32 0.5, %v1943_v1 }
 0xb2c   :  { %v1976_v5 = vmax.f32 %v1974_v61, %v1975_v4  ;;  %v1947_v15 = vmul.f32 0.35355338, %v1945_v13 }
 0xb2d   :  { %v2045_v7 = vpop.permute.xlu0 %2044 }
 0xb2e   :  { %7088 = vmatprep.subr.mxu1 %v2045_v7  ;;  %v1977_v11 = vrot.slane %v1976_v5, 1  ;;  %v1967_v24 = vsub.f32 %v7087_v41, %v1947_v15 }
 0xb2f   :  { %7089 = vmatpush3.msra.mxu1 %v2045_v7 }
 0xb30   :  { %7090 = vmatprep.subr.mxu1 %v2043_v30  ;;  %v1978_v12 = vmax.f32 %v1976_v5, %v1977_v11 }
 0xb31   :  { %7091 = vmatpush3.msra.mxu1 %v2043_v30 }
 0xb32   :  { %7518 = vpush %v1978_v12  ;;  %7102 = vmatprep.subr.msk.mxu1 %vm828_vm3, %v8507_v50 }
 0xb63   :  { %s7519_s25 = spop %7518 }
 0xb64   :  { %v1980_v23 = vstv %s7519_s25 }
 0xb65   :  { %v1981_v27 = vsub.f32 %v1966_v20, %v1980_v23  ;;  %v1982_v28 = vsub.f32 %v1967_v24, %v1980_v23  ;;  %v1541_v24 = vsel %vm1025_vm4, %v8675_v26, 0.0 }
 0xb67   :  { %v1983_v32 = vmul.f32 1.442695, %v1981_v27  ;;  %v1985_v33 = vmul.f32 1.442695, %v1982_v28 }
 0xb69   :  { %7633 = vpow2.f32 %v1983_v32 }
 0xb6a   :  { %7635 = vpow2.f32 %v1985_v33 }
 0xb76   :  { %v7634_v34 = vpop.eup %7633 }
 0xb77   :  { %v7636_v30 = vpop.eup %7635  ;;  %v1987_v35 = vadd.f32 0.0001, %v7634_v34 }
 0xb78   :  { %v1988_v38 = vadd.f32 0.0001, %v7636_v30 }
 0xb79   :  { %v1989_v43 = vmul.f32 0.25, %v1987_v35 }
 0xb7a   :  { %v1990_v44 = vmul.f32 0.25, %v1988_v38 }
 0xb7b   :  { %2010 = vxpose.xlu0.b32.start [1/2] (short) (narrow) %v1989_v43, 16  ;;  %v1991_v29 = vsel %vm1025_vm4, %v1989_v43, 0.0 }
 0xb7c   :  { %v1992_v42 = vsel %vm1025_vm4, %v1990_v44, 0.0 }
 0xb7d   :  { %v1993_v41 = vadd.f32 %v1992_v42, %v1991_v29 }
 0xb7f   :  { %2011 = vxpose.xlu0.b32.end [2/2] (short) (narrow) %v1990_v44, 16 }
 0xbac   :  { %1926 = vadd.xlane.f32.xlu0 %v1925_v45 }
 0xbc2   :  { %2394 = vrot.lane.b32.xlu0 %v8536_v0, %s8147_s2 }
 0xbc6   :  { %2212 = vrot.lane.b32.xlu0 %v8532_v62, %s8147_s2 }
 0xbca   :  { %2214 = vrot.lane.b32.xlu0 %v8539_v2, %s8147_s2 }
 0xbf7   :  { %v2026_v46 = vpop.trf.xlu0 }
 0xbf8   :  { %7092 = vmatprep.mubr.msk.f32.mxu1 %vm1025_vm4, %v2026_v46 }
 0xbfb   :  { %v2027_v63 = vpop.trf.xlu0 }
 0xbfc   :  { %7093 = vmatmul.mubr.msk.f32.vlgmr.msra.gmra.mxu1 %vm1025_vm4, %v2027_v63 }
 0xbfd   :  { %7103 = vmatpush3.xpose.msk.msra.mxu1 %vm828_vm3, %v8507_v50 }
 0xbfe   :  { %7104 = vmatprep.subr.msk.mxu1 %vm828_vm3, %v8518_v51 }
 0xc01   :  { %7105 = vmatpush3.xpose.msk.msra.mxu1 %vm828_vm3, %v8518_v51 }
 0xc35   :  { %v1927_v0 = vpop.xlane.xlu0 %1926 }
 0xc36   :  { %v1929_v48 = vmul.f32 0.5, %v1927_v0 }
 0xc38   :  { %v1931_v16 = vmul.f32 0.35355338, %v1929_v48 }
 0xc39   :  { %v2395_v62 = vpop.permute.xlu0 %2394 }
 0xc3a   :  { %v2400_v3 = vsel %vm828_vm3, %v2395_v62, 0.0  ;;  %v1949_v49 = vsub.f32 %v8694_v31, %v1931_v16 }
 0xc3b   :  { %2401 = vadd.xlane.f32.xlu0 %v2400_v3 }
 0xc3c   :  { %v1957_v53 = vsub.f32 %v1949_v49, %v1955_v52 }
 0xc3d   :  { %v2213_v2 = vpop.permute.xlu0 %2212 }
 0xc3e   :  { %7106 = vmatprep.mubr.msk.f32.mxu1 %vm828_vm3, %v2213_v2  ;;  %v1960_v54 = vmul.f32 1.442695, %v1957_v53 }
 0xc40   :  { %7637 = vpow2.f32 %v1960_v54 }
 0xc41   :  { %v2215_v47 = vpop.permute.xlu0 %2214 }
 0xc42   :  { %7107 = vmatmul.mubr.msk.f32.vlgmr.msra.gmra.mxu1 %vm828_vm3, %v2215_v47 }
 0xc4d   :  { %v7638_v55 = vpop.eup %7637 }
 0xc4e   :  { %v1963_v57 = vadd.f32 0.0001, %v7638_v55 }
 0xc51   :  { %2504 = vrot.lane.b32.xlu0 %v8555_v10, %s8147_s2  ;;  %v1965_v10 = vmul.f32 0.25, %v1963_v57 }
 0xc55   :  { %2378 = vrot.lane.b32.xlu0 %v8571_v17, %s8147_s2  ;;  %v2296_v17 = vpop.permute.xlu1 %2295 }
 0xc59   :  { %2380 = vrot.lane.b32.xlu0 %v8575_v19, %s8147_s2  ;;  %v2298_v31 = vpop.permute.xlu1 %2297 }
 0xcbc   :  { %v7094_v59 = vpop.f32.mrf.mxu1 }
 0xcbd   :  { %7095 = vmatprep.subr.mxu0 %v7094_v59 }
 0xcbe   :  { %v2120_v60 = vpop.f32.mrf.mxu1  ;;  %7096 = vmatpush3.msra.mxu0 %v7094_v59 }
 0xcbf   :  { %7097 = vmatprep.subr.mxu0 %v2120_v60 }
 0xcc0   :  { %7098 = vmatpush3.msra.mxu0 %v2120_v60 }
 0xcc1   :  { %7100 = vmatmul.mubr.msk.f32.vlgmr.msra.gmra.mxu0 %vm1025_vm4, %v1965_v10  ;;  %7109 = vmatprep.subr.msk.mxu0 %vm828_vm3, %v8507_v50 }
 0xcc2   :  { %7110 = vmatpush3.xpose.msk.msra.mxu0 %vm828_vm3, %v8507_v50  ;;  %7113 = vmatprep.mubr.msk.f32.mxu0 %vm828_vm3, %v2296_v17  ;;  %v1994_v50 = vrot.slane %v1993_v41, 4 }
 0xcc3   :  { %7111 = vmatprep.subr.msk.mxu0 %vm828_vm3, %v8518_v51 }
 0xcc4   :  { %v8756_v19 = vpop.xlane.xlu0 %2401  ;;  %v1995_v5 = vadd.f32 %v1994_v50, %v1993_v41  ;;  %v2397_v41 = vpop.permute.xlu1 %2396 }
 0xcc5   :  { %v2403_v0 = vsel %vm828_vm3, %v2397_v41, 0.0 }
 0xcc6   :  { %7112 = vmatpush3.xpose.msk.msra.mxu0 %vm828_vm3, %v8518_v51  ;;  %v1996_v7 = vrot.slane %v1995_v5, 2 }
 0xcc8   :  { %v8760_v61 = vpop.permute.xlu0 %2504  ;;  %v1997_v14 = vadd.f32 %v1996_v7, %v1995_v5 }
 0xcc9   :  { %7114 = vmatmul.mubr.msk.f32.vlgmr.msra.gmra.mxu0 %vm828_vm3, %v2298_v31 }
 0xcca   :  { %v1998_v15 = vrot.slane %v1997_v14, 1 }
 0xccc   :  { %v2379_v1 = vpop.permute.xlu0 %2378  ;;  %v1999_v20 = vadd.f32 %v1998_v15, %v1997_v14 }
 0xccd   :  { %v2384_v4 = vsel %vm828_vm3, %v2379_v1, 0.0 }
 0xcce   :  { %2385 = vadd.xlane.f32.xlu0 %v2384_v4  ;;  %v2000_v23 = vmul.f32 %v1999_v20, %v8715_v58  ;;  %v2001_v28 = vmul.f32 %v1999_v20, %v1965_v10 }
 0xcd0   :  { %v2002_v27 = vsel %vm1025_vm4, %v2000_v23, 0.0  ;;  %v2005_v32 = vsel %vm1025_vm4, %v2001_v28, 0.0  ;;  %v8776_v33 = vpop.permute.xlu0 %2380  ;;  %v1070_v23 = vrot.slane %v8596_v56, 4 }
 0xd02   :  { %v8764_v11 = vpop.f32.mrf.mxu1 }
 0xd03   :  { %v2415_v51 = vsel %vm1025_vm4, %v8764_v11, -inf }
 0xd04   :  { %v2286_v12 = vpop.f32.mrf.mxu1 }
 0xd05   :  { %v2412_v13 = vsel %vm1025_vm4, %v2286_v12, -inf }
 0xd06   :  { %2413 = vmax.xlane.f32.xlu0 %v2412_v13 }
 0xd0a   :  { %2416 = vmax.xlane.f32.xlu0 %v2415_v51 }
 0xd0e   :  { %1539 = vadd.xlane.f32.xlu0 %v1538_v18 }
 0xd12   :  { %1542 = vadd.xlane.f32.xlu0 %v1541_v24 }
 0xd16   :  { %2003 = vadd.xlane.f32.xlu0 %v2002_v27 }
 0xd1a   :  { %2006 = vadd.xlane.f32.xlu0 %v2005_v32  ;;  %v1071_v32 = vadd.f32 %v1070_v23, %v8596_v56 }
 0xd57   :  { %v2386_v34 = vpop.xlane.xlu0 %2385 }
 0xd58   :  { %v2390_v25 = vmul.f32 0.5, %v2386_v34 }
 0xd5a   :  { %v2392_v26 = vmul.f32 0.35355338, %v2390_v25  ;;  %v1072_v25 = vrot.slane %v1071_v32, 2 }
 0xd5c   :  { %v2410_v42 = vsub.f32 %v2286_v12, %v2392_v26 }
 0xd81   :  { %v8778_v30 = vpop.f32.mrf.mxu0 }
 0xd83   :  { %v8780_v35 = vpop.f32.mrf.mxu0 }
 0xd89   :  { %v7115_v38 = vpop.f32.mrf.mxu0 }
 0xd8a   :  { %v2431_v58 = vsel %vm1025_vm4, %v7115_v38, -inf }
 0xd8b   :  { %v2369_v43 = vpop.f32.mrf.mxu0 }
 0xd8c   :  { %v2430_v44 = vsel %vm1025_vm4, %v2369_v43, -inf }
 0xd8d   :  { %v2432_v29 = vmax.f32 %v2430_v44, %v2431_v58 }
 0xd8f   :  { %v2414_v45 = vpop.xlane.xlu0 %2413  ;;  %2433 = vmax.xlane.f32.xlu1 %v2432_v29 }
 0xd90   :  { %v2418_v46 = vsub.f32 %v2410_v42, %v2414_v45  ;;  %v2387_v42 = vsel %vm828_vm3, %v8776_v33, 0.0 }
 0xd92   :  { %v2420_v63 = vmul.f32 1.442695, %v2418_v46 }
 0xd93   :  { %2404 = vadd.xlane.f32.xlu1 %v2403_v0 }
 0xd94   :  { %7639 = vpow2.f32 %v2420_v63 }
 0xda1   :  { %v7640_v62 = vpop.eup %7639 }
 0xda2   :  { %v2424_v3 = vadd.f32 0.0001, %v7640_v62 }
 0xda4   :  { %v2426_v2 = vmul.f32 0.25, %v2424_v3  ;;  %2506 = vrot.lane.b32.xlu1 %v8549_v6, %s8147_s2  ;;  %v2406_v6 = vmul.f32 0.5, %v8756_v19 }
 0xda6   :  { %7127 = vmatprep.mubr.msk.f32.mxu0 %vm1025_vm4, %v2426_v2  ;;  %v2408_v10 = vmul.f32 0.35355338, %v2406_v6 }
 0xda8   :  { %v2428_v17 = vsub.f32 %v2369_v43, %v2408_v10  ;;  %v1073_v43 = vadd.f32 %v1072_v25, %v1071_v32 }
 0xdaa   :  { %v1074_v29 = vrot.slane %v1073_v43, 1 }
 0xdac   :  { %v1075_v45 = vadd.f32 %v1074_v29, %v1073_v43 }
 0xdae   :  { %v1076_v0 = vmul.f32 %v1075_v45, %v8604_v22 }
 0xdb0   :  { %v1078_v62 = vsel %vm1025_vm4, %v1076_v0, 0.0 }
 0xe18   :  { %v2434_v47 = vpop.xlane.xlu1 %2433 }
 0xe19   :  { %v2435_v48 = vrot.slane %v2434_v47, 4 }
 0xe1b   :  { %v2436_v16 = vmax.f32 %v2434_v47, %v2435_v48 }
 0xe1c   :  { %v2405_v49 = vpop.xlane.xlu1 %2404 }
 0xe1d   :  { %v2437_v52 = vrot.slane %v2436_v16, 2  ;;  %v2407_v59 = vmul.f32 0.5, %v2405_v49 }
 0xe1f   :  { %v2438_v53 = vmax.f32 %v2436_v16, %v2437_v52  ;;  %v2409_v60 = vmul.f32 0.35355338, %v2407_v59 }
 0xe20   :  { %v2507_v54 = vpop.permute.xlu1 %2506 }
 0xe21   :  { %7116 = vmatprep.subr.mxu1 %v2507_v54  ;;  %v2439_v55 = vrot.slane %v2438_v53, 1  ;;  %v2429_v31 = vsub.f32 %v7115_v38, %v2409_v60  ;;  %v2417_v38 = vpop.xlane.xlu0 %2416 }
 0xe22   :  { %7117 = vmatpush3.msra.mxu1 %v2507_v54 }
 0xe23   :  { %7118 = vmatprep.subr.mxu1 %v8760_v61  ;;  %v2440_v57 = vmax.f32 %v2438_v53, %v2439_v55 }
 0xe24   :  { %7119 = vmatpush3.msra.mxu1 %v8760_v61 }
 0xe25   :  { %7520 = vpush %v2440_v57  ;;  %v1540_v58 = vpop.xlane.xlu0 %1539 }
 0xe29   :  { %v1543_v46 = vpop.xlane.xlu0 %1542 }
 0xe2d   :  { %v2004_v56 = vpop.xlane.xlu0 %2003 }
 0xe31   :  { %v2007_v3 = vpop.xlane.xlu0 %2006 }
 0xe56   :  { %s7521_s24 = spop %7520 }
 0xe57   :  { %v2442_v1 = vstv %s7521_s24  ;;  %s9460_s24 = sld [smem:[#allocation72_spill]] }
 0xe58   :  { %v2443_v4 = vsub.f32 %v2428_v17, %v2442_v1  ;;  %v2444_v50 = vsub.f32 %v2429_v31, %v2442_v1  ;;  %v1077_v17 = vmul.f32 %v1075_v45, %v8611_v36  ;;  %v2708_v36 = vld [vmem:[%s9438_s7 + $0x18] sm:$0xff] }
 0xe59   :  { %7130 = vmatprep.subr.mxu1 %v2708_v36 }
 0xe5a   :  { %v2445_v5 = vmul.f32 1.442695, %v2443_v4  ;;  %v2447_v7 = vmul.f32 1.442695, %v2444_v50  ;;  %v1081_v31 = vsel %vm1025_vm4, %v1077_v17, 0.0 }
 0xe5c   :  { %7641 = vpow2.f32 %v2445_v5  ;;  %v2707_v5 = vld [vmem:[%s9438_s7 + $0x10] sm:$0xff] }
 0xe5d   :  { %7643 = vpow2.f32 %v2447_v7 }
 0xe5e   :  { %7645 = vrcp.f32 %v1540_v58 }
 0xe5f   :  { %7647 = vrcp.f32 %v2004_v56 }
 0xe60   :  { %7649 = vrcp.f32 %v2007_v3 }
 0xe69   :  { %v7642_v12 = vpop.eup %7641 }
 0xe6a   :  { %v7644_v13 = vpop.eup %7643  ;;  %v2449_v14 = vadd.f32 0.0001, %v7642_v12  ;;  %v2706_v12 = vld [vmem:[%s9438_s7 + $0x8] sm:$0xff] }
 0xe6b   :  { %v2450_v61 = vadd.f32 0.0001, %v7644_v13  ;;  %v7646_v47 = vpop.eup %7645  ;;  %v2705_v13 = vld [vmem:[%s9438_s7] sm:$0xff]  ;;  %s9463_s7 = sld [smem:[#allocation67_spill]] }
 0xe6c   :  { %v2451_v51 = vmul.f32 0.25, %v2449_v14  ;;  %v1748_v33 = vmul.f32 %v7646_v47, %v8708_v40 }
 0xe6d   :  { %v2452_v15 = vmul.f32 0.25, %v2450_v61 }
 0xe6e   :  { %2472 = vxpose.xlu1.b32.start [1/2] (short) (narrow) %v2451_v51, 16  ;;  %v2453_v19 = vsel %vm1025_vm4, %v2451_v51, 0.0 }
 0xe6f   :  { %v2454_v18 = vsel %vm1025_vm4, %v2452_v15, 0.0 }
 0xe70   :  { %v2455_v20 = vadd.f32 %v2454_v18, %v2453_v19 }
 0xe72   :  { %2473 = vxpose.xlu1.b32.end [2/2] (short) (narrow) %v2452_v15, 16  ;;  %v2456_v24 = vrot.slane %v2455_v20, 4 }
 0xe74   :  { %v2457_v27 = vadd.f32 %v2456_v24, %v2455_v20 }
 0xe76   :  { %v2458_v28 = vrot.slane %v2457_v27, 2 }
 0xe78   :  { %v2459_v34 = vadd.f32 %v2458_v28, %v2457_v27 }
 0xe7a   :  { %v2460_v26 = vrot.slane %v2459_v34, 1 }
 0xe7c   :  { %v2461_v44 = vadd.f32 %v2460_v26, %v2459_v34 }
 0xe7e   :  { %v2462_v41 = vmul.f32 %v2461_v44, %v2426_v2  ;;  %v7648_v2 = vpop.eup %7647 }
 0xe7f   :  { %v2210_v48 = vmul.f32 %v7648_v2, %v8780_v35  ;;  %v7650_v16 = vpop.eup %7649 }
 0xe80   :  { %v2464_v63 = vsel %vm1025_vm4, %v2462_v41, 0.0  ;;  %v2211_v22 = vmul.f32 %v7650_v16, %v8778_v30 }
 0xe99   :  { %2388 = vadd.xlane.f32.xlu1 %v2387_v42 }
 0xe9d   :  { %2465 = vadd.xlane.f32.xlu1 %v2464_v63 }
 0xea1   :  { %1079 = vadd.xlane.f32.xlu1 %v1078_v62 }
 0xeb2   :  { %2676 = vrot.lane.b32.xlu1 %v1748_v33, %s8148_s6 }
 0xeb6   :  { %2684 = vrot.lane.b32.xlu1 %v2210_v48, %s8149_s3 }
 0xeba   :  { %2686 = vrot.lane.b32.xlu1 %v2211_v22, %s8149_s3 }
 0xeea   :  { %v2488_v49 = vpop.trf.xlu1 }
 0xeeb   :  { %7120 = vmatprep.mubr.msk.f32.mxu1 %vm1025_vm4, %v2488_v49 }
 0xeee   :  { %v2489_v52 = vpop.trf.xlu1 }
 0xeef   :  { %7121 = vmatmul.mubr.msk.f32.vlgmr.msra.gmra.mxu1 %vm1025_vm4, %v2489_v52 }
 0xef0   :  { %7131 = vmatpush3.msra.mxu1 %v2708_v36  ;;  %v6584_v36 = vld [vmem:[%s9442_s10] ss:$0 sm:$0xff]  ;;  %s9468_s10 = sld [smem:[#allocation34_spill]] }
 0xef1   :  { %7132 = vmatprep.subr.mxu1 %v2707_v5 }
 0xef2   :  { %7133 = vmatpush3.msra.mxu1 %v2707_v5 }
 0xef3   :  { %7134 = vmatprep.subr.mxu1 %v2706_v12 }
 0xef4   :  { %7135 = vmatpush3.msra.mxu1 %v2706_v12 }
 0xef5   :  { %7136 = vmatprep.subr.mxu1 %v2705_v13 }
 0xef6   :  { %7137 = vmatpush3.msra.mxu1 %v2705_v13 }
 0xf22   :  { %v2389_v40 = vpop.xlane.xlu1 %2388 }
 0xf23   :  { %v2391_v53 = vmul.f32 0.5, %v2389_v40 }
 0xf25   :  { %v2393_v54 = vmul.f32 0.35355338, %v2391_v53 }
 0xf27   :  { %v2411_v55 = vsub.f32 %v8764_v11, %v2393_v54 }
 0xf29   :  { %v2419_v35 = vsub.f32 %v2411_v55, %v2417_v38 }
 0xf2b   :  { %v2422_v57 = vmul.f32 1.442695, %v2419_v35  ;;  %v2846_v35 = vld [vmem:[%s9440_s16 + $0x18] sm:$0xff] }
 0xf2d   :  { %7651 = vpow2.f32 %v2422_v57  ;;  %v2845_v57 = vld [vmem:[%s9440_s16 + $0x10] sm:$0xff] }
 0xf2e   :  { %7653 = vrcp.f32 %v1543_v46 }
 0xf3a   :  { %v7652_v59 = vpop.eup %7651 }
 0xf3b   :  { %v2425_v6 = vadd.f32 0.0001, %v7652_v59  ;;  %v7654_v1 = vpop.eup %7653  ;;  %v2844_v59 = vld [vmem:[%s9440_s16 + $0x8] sm:$0xff] }
 0xf3c   :  { %v1749_v11 = vmul.f32 %v7654_v1, %v8706_v39  ;;  %v2466_v39 = vpop.xlane.xlu1 %2465 }
 0xf3d   :  { %v2427_v60 = vmul.f32 0.25, %v2425_v6  ;;  %v2843_v6 = vld [vmem:[%s9440_s16] sm:$0xff]  ;;  %s9466_s16 = sld [smem:[#allocation64_spill]] }
 0xf3f   :  { %v2463_v30 = vmul.f32 %v2461_v44, %v2427_v60 }
 0xf40   :  { %v1080_v20 = vpop.xlane.xlu1 %1079 }
 0xf41   :  { %v2467_v10 = vsel %vm1025_vm4, %v2463_v30, 0.0 }
 0xf42   :  { %2468 = vadd.xlane.f32.xlu0 %v2467_v10 }
 0xf44   :  { %v2677_v23 = vpop.permute.xlu1 %2676 }
 0xf46   :  { %1082 = vadd.xlane.f32.xlu0 %v1081_v31 }
 0xf48   :  { %v2685_v27 = vpop.permute.xlu1 %2684 }
 0xf4c   :  { %v2687_v38 = vpop.permute.xlu1 %2686 }
 0xf5c   :  { %2678 = vrot.lane.b32.xlu0 %v1749_v11, %s8148_s6 }
 0xfaf   :  { %v7122_v4 = vpop.f32.mrf.mxu1 }
 0xfb0   :  { %7123 = vmatprep.subr.mxu0 %v7122_v4 }
 0xfb1   :  { %v2582_v50 = vpop.f32.mrf.mxu1  ;;  %7124 = vmatpush3.msra.mxu0 %v7122_v4  ;;  %v6583_v4 = vld [vmem:[%s9441_s14] ss:$0 sm:$0xff]  ;;  %s9467_s14 = sld [smem:[#allocation66_spill]] }
 0xfb2   :  { %7125 = vmatprep.subr.mxu0 %v2582_v50 }
 0xfb3   :  { %7126 = vmatpush3.msra.mxu0 %v2582_v50 }
 0xfb4   :  { %7128 = vmatmul.mubr.msk.f32.vlgmr.msra.gmra.mxu0 %vm1025_vm4, %v2427_v60  ;;  %7141 = vmatprep.subr.mxu0 %v2846_v35 }
 0xfb5   :  { %7142 = vmatpush3.msra.mxu0 %v2846_v35  ;;  %v3055_v35 = vld [vmem:[%s9445_s9 + $0x10] sm:$0xff] }
 0xfb6   :  { %7143 = vmatprep.subr.mxu0 %v2845_v57 }
 0xfb7   :  { %7144 = vmatpush3.msra.mxu0 %v2845_v57  ;;  %v3054_v57 = vld [vmem:[%s9445_s9 + $0x8] sm:$0xff] }
 0xfb8   :  { %7145 = vmatprep.subr.mxu0 %v2844_v59 }
 0xfb9   :  { %7146 = vmatpush3.msra.mxu0 %v2844_v59  ;;  %v3053_v59 = vld [vmem:[%s9445_s9] sm:$0xff] }
 0xfba   :  { %7147 = vmatprep.subr.mxu0 %v2843_v6 }
 0xfbb   :  { %7148 = vmatpush3.msra.mxu0 %v2843_v6  ;;  %v6588_v6 = vld [vmem:[%s9446_s28] ss:$0 sm:$0xff] }
 0xfcb   :  { %v2469_v7 = vpop.xlane.xlu0 %2468 }
 0xfcc   :  { %7655 = vrcp.f32 %v2469_v7 }
 0xfcd   :  { %7657 = vrcp.f32 %v2466_v39 }
 0xfce   :  { %7659 = vrcp.f32 %v1080_v20  ;;  %v2963_v20 = vld [vmem:[%s9443_s20 + $0x50] sm:$0xff] }
 0xfcf   :  { %v1083_v24 = vpop.xlane.xlu0 %1082 }
 0xfd0   :  { %7661 = vrcp.f32 %v1083_v24  ;;  %v2962_v24 = vld [vmem:[%s9443_s20 + $0x48] sm:$0xff] }
 0xfd3   :  { %v2679_v26 = vpop.permute.xlu0 %2678 }
 0xfd9   :  { %v7656_v14 = vpop.eup %7655 }
 0xfda   :  { %v7658_v15 = vpop.eup %7657 }
 0xfdb   :  { %v7660_v28 = vpop.eup %7659 }
 0xfdc   :  { %v1280_v34 = vmul.f32 %v7660_v28, %v8627_v37  ;;  %v2959_v28 = vld [vmem:[%s9443_s20 + $0x30] sm:$0xff] }
 0xfdd   :  { %v7662_v32 = vpop.eup %7661 }
 0xfde   :  { %v1281_v25 = vmul.f32 %v7662_v32, %v8625_v21  ;;  %v2698_v43 = vsel %vm828_vm3, %v1280_v34, %v2677_v23  ;;  %v6580_v21 = vld [vmem:[%s9439_s15] ss:$0 sm:$0xff]  ;;  %v2958_v32 = vld [vmem:[%s9443_s20 + $0x28] sm:$0xff]  ;;  %s9465_s15 = sld [smem:[#allocation65_spill]] }
 0xfdf   :  { %v2700_v29 = vsel %vm1025_vm4, %v2698_v43, %v2685_v27  ;;  %v2961_v23 = vld [vmem:[%s9443_s20 + $0x40] sm:$0xff]  ;;  %v2960_v27 = vld [vmem:[%s9443_s20 + $0x38] sm:$0xff] }
 0xfe0   :  { %v2699_v58 = vsel %vm828_vm3, %v1281_v25, %v2679_v26  ;;  %v2957_v34 = vld [vmem:[%s9443_s20 + $0x20] sm:$0xff]  ;;  %v2956_v25 = vld [vmem:[%s9443_s20 + $0x18] sm:$0xff]  ;;  %v2954_v26 = vld [vmem:[%s9443_s20 + $0x8] sm:$0xff] }
 0xfe1   :  { %v2701_v41 = vsel %vm1025_vm4, %v2699_v58, %v2687_v38  ;;  %v2955_v38 = vld [vmem:[%s9443_s20 + $0x10] sm:$0xff]  ;;  %v2953_v43 = vld [vmem:[%s9443_s20] sm:$0xff] }
 0xfe2   :  { %v6585_v58 = vld [vmem:[%s9444_s13] ss:$0 sm:$0xff] }
0x1074   :  { %v7129_v61 = vpop.f32.mrf.mxu0 }
0x1075   :  { %v2673_v51 = vmul.f32 %v7656_v14, %v7129_v61  ;;  %v2968_v61 = vld [vmem:[%s9443_s20 + $0x78] sm:$0xff] }
0x1076   :  { %v2663_v19 = vpop.f32.mrf.mxu0  ;;  %7152 = vmatprep.subr.mxu1 %v2968_v61 }
0x1077   :  { %v2672_v18 = vmul.f32 %v7658_v15, %v2663_v19  ;;  %2694 = vrot.lane.b32.xlu1 %v2673_v51, %s8150_s12  ;;  %v2967_v51 = vld [vmem:[%s9443_s20 + $0x70] sm:$0xff]  ;;  %v2966_v15 = vld [vmem:[%s9443_s20 + $0x68] sm:$0xff]  ;;  %v2965_v19 = vld [vmem:[%s9443_s20 + $0x60] sm:$0xff] }
0x1079   :  { %2692 = vrot.lane.b32.xlu0 %v2672_v18, %s8150_s12  ;;  %v2964_v18 = vld [vmem:[%s9443_s20 + $0x58] sm:$0xff] }
0x10e9   :  { %v2695_v44 = vpop.permute.xlu1 %2694 }
0x10ea   :  { %v2704_v46 = vsel %vm2702_vm5, %v2701_v41, %v2695_v44 }
0x10eb   :  { %v2693_v42 = vpop.permute.xlu0 %2692 }
0x10ec   :  { %v2703_v45 = vsel %vm2702_vm5, %v2700_v29, %v2693_v42 }
0x10ed   :  { %7138 = vmatprep.mubr.msk.f32.mxu1 %vm516_vm2, %v2703_v45 }
0x10ee   :  { %7139 = vmatmul.mubr.msk.f32.vlgmr.msra.gmra.mxu1 %vm516_vm2, %v2704_v46 }
0x10ef   :  { %7153 = vmatpush3.msra.mxu1 %v2968_v61 }
0x10f0   :  { %7154 = vmatprep.subr.mxu1 %v2967_v51 }
0x10f1   :  { %7155 = vmatpush3.msra.mxu1 %v2967_v51 }
0x10f2   :  { %7156 = vmatprep.subr.mxu1 %v2966_v15 }
0x10f3   :  { %7157 = vmatpush3.msra.mxu1 %v2966_v15 }
0x10f4   :  { %7158 = vmatprep.subr.mxu1 %v2965_v19 }
0x10f5   :  { %7159 = vmatpush3.msra.mxu1 %v2965_v19 }
0x10f6   :  { %7160 = vmatprep.subr.mxu1 %v2964_v18 }
0x10f7   :  { %7161 = vmatpush3.msra.mxu1 %v2964_v18 }
0x10f8   :  { %7162 = vmatprep.subr.mxu1 %v2963_v20 }
0x10f9   :  { %7163 = vmatpush3.msra.mxu1 %v2963_v20  ;;  %v3194_v20 = vld [vmem:[%s9448_s8 + $0x18] sm:$0xff] }
0x10fa   :  { %7164 = vmatprep.subr.mxu1 %v2962_v24 }
0x10fb   :  { %7165 = vmatpush3.msra.mxu1 %v2962_v24  ;;  %v3193_v24 = vld [vmem:[%s9448_s8 + $0x10] sm:$0xff] }
0x10fc   :  { %7166 = vmatprep.subr.mxu1 %v2961_v23 }
0x10fd   :  { %7167 = vmatpush3.msra.mxu1 %v2961_v23  ;;  %v3192_v23 = vld [vmem:[%s9448_s8 + $0x8] sm:$0xff] }
0x10fe   :  { %7168 = vmatprep.subr.mxu1 %v2960_v27 }
0x10ff   :  { %7169 = vmatpush3.msra.mxu1 %v2960_v27  ;;  %v3191_v27 = vld [vmem:[%s9448_s8] sm:$0xff] }
0x1100   :  { %7170 = vmatprep.subr.mxu1 %v2959_v28 }
0x1101   :  { %7171 = vmatpush3.msra.mxu1 %v2959_v28  ;;  %v3300_v28 = vld [vmem:[%s9449_s17 + $0x78] sm:$0xff] }
0x1102   :  { %7172 = vmatprep.subr.mxu1 %v2958_v32 }
0x1103   :  { %7173 = vmatpush3.msra.mxu1 %v2958_v32 }
0x1104   :  { %7174 = vmatprep.subr.mxu1 %v2957_v34 }
0x1105   :  { %7175 = vmatpush3.msra.mxu1 %v2957_v34 }
0x1106   :  { %7176 = vmatprep.subr.mxu1 %v2956_v25 }
0x1107   :  { %7177 = vmatpush3.msra.mxu1 %v2956_v25 }
0x1108   :  { %7178 = vmatprep.subr.mxu1 %v2955_v38 }
0x1109   :  { %7179 = vmatpush3.msra.mxu1 %v2955_v38 }
0x110a   :  { %7180 = vmatprep.subr.mxu1 %v2954_v26 }
0x110b   :  { %7181 = vmatpush3.msra.mxu1 %v2954_v26 }
0x110c   :  { %7182 = vmatprep.subr.mxu1 %v2953_v43 }
0x110d   :  { %7183 = vmatpush3.msra.mxu1 %v2953_v43 }
0x11ae   :  { %v7140_v37 = vpop.f32.mrf.mxu1 }
0x11af   :  { %v2794_v63 = vadd.f32 %v7140_v37, %v6580_v21 }
0x11b0   :  { %v2788_v0 = vpop.f32.mrf.mxu1 }
0x11b1   :  { %v8833_v56 = vadd.f32 %v2794_v63, %v8476_v9  ;;  %v2789_v62 = vadd.f32 %v6580_v21, %v2788_v0 }
0x11b3   :  { %v8836_v3 = vadd.f32 %v2789_v62, %v8474_v8  ;;  %v2802_v47 = vsel %vm516_vm2, %v8833_v56, 0.0 }
0x11b4   :  { %2803 = vadd.xlane.f32.xlu1 %v2802_v47 }
0x11b5   :  { %v2799_v33 = vsel %vm516_vm2, %v8836_v3, 0.0 }
0x11b6   :  { %2800 = vadd.xlane.f32.xlu0 %v2799_v33 }
0x123d   :  { %v2804_v2 = vpop.xlane.xlu1 %2803 }
0x123e   :  { %v2806_v48 = vmul.f32 0.03125, %v2804_v2 }
0x123f   :  { %v2801_v16 = vpop.xlane.xlu0 %2800 }
0x1240   :  { %v2805_v22 = vmul.f32 0.03125, %v2801_v16  ;;  %v2808_v49 = vsub.f32 %v8833_v56, %v2806_v48 }
0x1242   :  { %v2807_v52 = vsub.f32 %v8836_v3, %v2805_v22  ;;  %v2810_v54 = vmul.f32 %v2808_v49, %v2808_v49 }
0x1244   :  { %v2809_v40 = vmul.f32 %v2807_v52, %v2807_v52  ;;  %v2814_v55 = vsel %vm516_vm2, %v2810_v54, 0.0 }
0x1246   :  { %v2811_v53 = vsel %vm516_vm2, %v2809_v40, 0.0 }
0x1247   :  { %2812 = vadd.xlane.f32.xlu0 %v2811_v53 }
0x124b   :  { %2815 = vadd.xlane.f32.xlu0 %v2814_v55  ;;  %v3056_v55 = vld [vmem:[%s9445_s9 + $0x18] sm:$0xff] }
0x124c   :  { %7187 = vmatprep.subr.mxu0 %v3056_v55 }
0x12d0   :  { %v2813_v60 = vpop.xlane.xlu0 %2812 }
0x12d1   :  { %v2817_v30 = vmul.f32 0.03125, %v2813_v60 }
0x12d3   :  { %v2819_v10 = vadd.f32 1e-05, %v2817_v30 }
0x12d4   :  { %v2816_v17 = vpop.xlane.xlu0 %2815 }
0x12d5   :  { %7663 = vrsqrt.f32 %v2819_v10  ;;  %v2818_v31 = vmul.f32 0.03125, %v2816_v17 }
0x12d7   :  { %v2820_v1 = vadd.f32 1e-05, %v2818_v31 }
0x12d9   :  { %7665 = vrsqrt.f32 %v2820_v1 }
0x12e2   :  { %v7664_v11 = vpop.eup %7663 }
0x12e3   :  { %v2823_v50 = vmul.f32 %v7664_v11, %v2807_v52  ;;  %v6589_v11 = vld [vmem:[%s9447_s22] ss:$0 sm:$0xff] }
0x12e5   :  { %v2832_v5 = vmul.f32 %v6583_v4, %v2823_v50 }
0x12e6   :  { %v7666_v7 = vpop.eup %7665 }
0x12e7   :  { %v2824_v39 = vmul.f32 %v7666_v7, %v2808_v49  ;;  %v2841_v12 = vadd.f32 %v6584_v36, %v2832_v5 }
0x12e9   :  { %v2833_v13 = vmul.f32 %v6583_v4, %v2824_v39  ;;  %7149 = vmatprep.mubr.msk.f32.mxu0 %vm516_vm2, %v2841_v12 }
0x12eb   :  { %v2842_v14 = vadd.f32 %v6584_v36, %v2833_v13 }
0x12ed   :  { %7150 = vmatmul.mubr.msk.f32.vlgmr.msra.gmra.mxu0 %vm516_vm2, %v2842_v14 }
0x12ee   :  { %7188 = vmatpush3.msra.mxu0 %v3056_v55  ;;  %v3286_v55 = vld [vmem:[%s9449_s17 + $0x8] sm:$0xff] }
0x12ef   :  { %7189 = vmatprep.subr.mxu0 %v3055_v35 }
0x12f0   :  { %7190 = vmatpush3.msra.mxu0 %v3055_v35  ;;  %v3285_v35 = vld [vmem:[%s9449_s17] sm:$0xff] }
0x12f1   :  { %7191 = vmatprep.subr.mxu0 %v3054_v57 }
0x12f2   :  { %7192 = vmatpush3.msra.mxu0 %v3054_v57  ;;  %v6594_v57 = vld [vmem:[%s9452_s11] ss:$0 sm:$0xff] }
0x12f3   :  { %7193 = vmatprep.subr.mxu0 %v3053_v59 }
0x12f4   :  { %7194 = vmatpush3.msra.mxu0 %v3053_v59 }
0x12f5   :  { %7198 = vmatprep.subr.mxu0 %v3194_v20 }
0x13ad   :  { %v7151_v44 = vpop.f32.mrf.mxu0 }
0x13ae   :  { %v2932_v29 = vadd.f32 %v7151_v44, %v6585_v58 }
0x13af   :  { %v2926_v42 = vpop.f32.mrf.mxu0 }
0x13b0   :  { %v2936_v41 = vmul.f32 %v2932_v29, %v2932_v29  ;;  %v2927_v45 = vadd.f32 %v6585_v58, %v2926_v42 }
0x13b2   :  { %v2938_v46 = vmul.f32 %v2936_v41, %v2932_v29  ;;  %v2935_v21 = vmul.f32 %v2927_v45, %v2927_v45 }
0x13b4   :  { %v2940_v37 = vmul.f32 0.044715, %v2938_v46  ;;  %v2937_v63 = vmul.f32 %v2935_v21, %v2927_v45  ;;  %v6593_v21 = vld [vmem:[%s9451_s5] ss:$0 sm:$0xff] }
0x13b6   :  { %v2942_v0 = vadd.f32 %v2940_v37, %v2932_v29  ;;  %v2939_v62 = vmul.f32 0.044715, %v2937_v63 }
0x13b8   :  { %v2944_v47 = vmul.f32 0.7978846, %v2942_v0  ;;  %v2941_v33 = vadd.f32 %v2939_v62, %v2927_v45  ;;  %v3299_v0 = vld [vmem:[%s9449_s17 + $0x70] sm:$0xff]  ;;  %v3298_v62 = vld [vmem:[%s9449_s17 + $0x68] sm:$0xff] }
0x13ba   :  { %7667 = vtanh.f32 %v2944_v47  ;;  %v2943_v2 = vmul.f32 0.7978846, %v2941_v33  ;;  %v3297_v47 = vld [vmem:[%s9449_s17 + $0x60] sm:$0xff]  ;;  %v3296_v33 = vld [vmem:[%s9449_s17 + $0x58] sm:$0xff] }
0x13bc   :  { %7669 = vtanh.f32 %v2943_v2  ;;  %v3295_v2 = vld [vmem:[%s9449_s17 + $0x50] sm:$0xff] }
0x13c7   :  { %v7668_v48 = vpop.eup %7667 }
0x13c8   :  { %v2948_v16 = vadd.f32 1.0, %v7668_v48  ;;  %v3294_v48 = vld [vmem:[%s9449_s17 + $0x48] sm:$0xff] }
0x13c9   :  { %v7670_v22 = vpop.eup %7669 }
0x13ca   :  { %v2947_v49 = vadd.f32 1.0, %v7670_v22  ;;  %v2950_v52 = vmul.f32 0.5, %v2948_v16  ;;  %v3293_v16 = vld [vmem:[%s9449_s17 + $0x40] sm:$0xff]  ;;  %v3292_v22 = vld [vmem:[%s9449_s17 + $0x38] sm:$0xff] }
0x13cc   :  { %v2949_v40 = vmul.f32 0.5, %v2947_v49  ;;  %v2952_v54 = vmul.f32 %v2950_v52, %v2932_v29  ;;  %v6592_v29 = vld [vmem:[%s9450_s4] ss:$0 sm:$0xff]  ;;  %v3291_v49 = vld [vmem:[%s9449_s17 + $0x30] sm:$0xff]  ;;  %v3290_v52 = vld [vmem:[%s9449_s17 + $0x28] sm:$0xff] }
0x13ce   :  { %v2951_v53 = vmul.f32 %v2949_v40, %v2927_v45  ;;  %v3289_v40 = vld [vmem:[%s9449_s17 + $0x20] sm:$0xff] }
0x13d0   :  { %7184 = vmatprep.mubr.f32.mxu1 %v2951_v53  ;;  %v3288_v53 = vld [vmem:[%s9449_s17 + $0x18] sm:$0xff] }
0x13d1   :  { %7185 = vmatmul.mubr.f32.vlgmr.msra.gmra.mxu1 %v2952_v54  ;;  %v3287_v54 = vld [vmem:[%s9449_s17 + $0x10] sm:$0xff] }
0x1491   :  { %v7186_v60 = vpop.f32.mrf.mxu1 }
0x1492   :  { %v3048_v30 = vadd.f32 %v7186_v60, %v6588_v6 }
0x1493   :  { %v3042_v10 = vpop.f32.mrf.mxu1 }
0x1494   :  { %v3043_v17 = vadd.f32 %v6588_v6, %v3042_v10  ;;  %v3052_v1 = vadd.f32 %v3048_v30, %v8833_v56 }
0x1496   :  { %v3051_v31 = vadd.f32 %v3043_v17, %v8836_v3 }
0x1498   :  { %7195 = vmatprep.mubr.msk.f32.mxu0 %vm516_vm2, %v3051_v31  ;;  %v6597_v31 = vld [vmem:[%s9453_s18] ss:$0 sm:$0xff] }
0x1499   :  { %7196 = vmatmul.mubr.msk.f32.vlgmr.msra.gmra.mxu0 %vm516_vm2, %v3052_v1 }
0x149a   :  { %7199 = vmatpush3.msra.mxu0 %v3194_v20 }
0x149b   :  { %7200 = vmatprep.subr.mxu0 %v3193_v24 }
0x149c   :  { %7201 = vmatpush3.msra.mxu0 %v3193_v24 }
0x149d   :  { %7202 = vmatprep.subr.mxu0 %v3192_v23 }
0x149e   :  { %7203 = vmatpush3.msra.mxu0 %v3192_v23 }
0x149f   :  { %7204 = vmatprep.subr.mxu0 %v3191_v27 }
0x14a0   :  { %7205 = vmatpush3.msra.mxu0 %v3191_v27 }
0x14a1   :  { %7209 = vmatprep.subr.mxu0 %v3300_v28 }
0x1559   :  { %v7197_v4 = vpop.f32.mrf.mxu0 }
0x155a   :  { %v3142_v50 = vadd.f32 %v7197_v4, %v6589_v11 }
0x155b   :  { %v3136_v36 = vpop.f32.mrf.mxu0 }
0x155c   :  { %v3146_v5 = vadd.f32 %v3142_v50, %v8476_v9  ;;  %v3137_v7 = vadd.f32 %v6589_v11, %v3136_v36 }
0x155e   :  { %v3150_v39 = vsel %vm516_vm2, %v3146_v5, 0.0  ;;  %v3145_v12 = vadd.f32 %v3137_v7, %v8474_v8 }
0x155f   :  { %3151 = vadd.xlane.f32.xlu0 %v3150_v39 }
0x1560   :  { %v3147_v56 = vsel %vm516_vm2, %v3145_v12, 0.0 }
0x1561   :  { %3148 = vadd.xlane.f32.xlu1 %v3147_v56 }
0x15e8   :  { %v3152_v3 = vpop.xlane.xlu0 %3151 }
0x15e9   :  { %v3154_v13 = vmul.f32 0.03125, %v3152_v3 }
0x15ea   :  { %v3149_v14 = vpop.xlane.xlu1 %3148 }
0x15eb   :  { %v3156_v61 = vsub.f32 %v3146_v5, %v3154_v13  ;;  %v3153_v51 = vmul.f32 0.03125, %v3149_v14 }
0x15ed   :  { %v3155_v15 = vsub.f32 %v3145_v12, %v3153_v51  ;;  %v3158_v9 = vmul.f32 %v3156_v61, %v3156_v61 }
0x15ef   :  { %v3162_v19 = vsel %vm516_vm2, %v3158_v9, 0.0  ;;  %v3157_v18 = vmul.f32 %v3155_v15, %v3155_v15 }
0x15f0   :  { %3163 = vadd.xlane.f32.xlu0 %v3162_v19 }
0x15f1   :  { %v3159_v8 = vsel %vm516_vm2, %v3157_v18, 0.0 }
0x15f2   :  { %3160 = vadd.xlane.f32.xlu1 %v3159_v8 }
0x1679   :  { %v3164_v32 = vpop.xlane.xlu0 %3163 }
0x167a   :  { %v3166_v34 = vmul.f32 0.03125, %v3164_v32  ;;  %v6598_v32 = vld [vmem:[%s9454_s23] ss:$0 sm:$0xff] }
0x167b   :  { %v3161_v25 = vpop.xlane.xlu1 %3160 }
0x167c   :  { %v3168_v38 = vadd.f32 1e-05, %v3166_v34  ;;  %v3165_v26 = vmul.f32 0.03125, %v3161_v25 }
0x167e   :  { %7671 = vrsqrt.f32 %v3168_v38  ;;  %v3167_v43 = vadd.f32 1e-05, %v3165_v26  ;;  %v6599_v38 = vld [vmem:[%s9455_s26] ss:$0 sm:$0xff] }
0x1680   :  { %7673 = vrsqrt.f32 %v3167_v43 }
0x168b   :  { %v7672_v58 = vpop.eup %7671 }
0x168c   :  { %v3172_v44 = vmul.f32 %v7672_v58, %v3156_v61 }
0x168d   :  { %v7674_v42 = vpop.eup %7673 }
0x168e   :  { %v3171_v41 = vmul.f32 %v7674_v42, %v3155_v15  ;;  %v3181_v45 = vmul.f32 %v6592_v29, %v3172_v44 }
0x1690   :  { %v3180_v46 = vmul.f32 %v6592_v29, %v3171_v41  ;;  %v3190_v63 = vadd.f32 %v6593_v21, %v3181_v45 }
0x1692   :  { %v8894_v37 = vadd.f32 %v6593_v21, %v3180_v46 }
0x1694   :  { %7206 = vmatprep.mubr.msk.f32.mxu0 %vm516_vm2, %v8894_v37 }
0x1695   :  { %7207 = vmatmul.mubr.msk.f32.vlgmr.msra.gmra.mxu0 %vm516_vm2, %v3190_v63 }
0x1696   :  { %7210 = vmatpush3.msra.mxu0 %v3300_v28 }
0x1697   :  { %7211 = vmatprep.subr.mxu0 %v3299_v0 }
0x1698   :  { %7212 = vmatpush3.msra.mxu0 %v3299_v0 }
0x1699   :  { %7213 = vmatprep.subr.mxu0 %v3298_v62 }
0x169a   :  { %7214 = vmatpush3.msra.mxu0 %v3298_v62 }
0x169b   :  { %7215 = vmatprep.subr.mxu0 %v3297_v47 }
0x169c   :  { %7216 = vmatpush3.msra.mxu0 %v3297_v47 }
0x169d   :  { %7217 = vmatprep.subr.mxu0 %v3296_v33 }
0x169e   :  { %7218 = vmatpush3.msra.mxu0 %v3296_v33 }
0x169f   :  { %7219 = vmatprep.subr.mxu0 %v3295_v2 }
0x16a0   :  { %7220 = vmatpush3.msra.mxu0 %v3295_v2 }
0x16a1   :  { %7221 = vmatprep.subr.mxu0 %v3294_v48 }
0x16a2   :  { %7222 = vmatpush3.msra.mxu0 %v3294_v48  ;;  %v3478_v48 = vld [vmem:[%s9456_s19 + $0x18] sm:$0xff] }
0x16a3   :  { %7223 = vmatprep.subr.mxu0 %v3293_v16  ;;  %7244 = vmatprep.subr.mxu1 %v3478_v48 }
0x16a4   :  { %7224 = vmatpush3.msra.mxu0 %v3293_v16  ;;  %v3477_v16 = vld [vmem:[%s9456_s19 + $0x10] sm:$0xff]  ;;  %7245 = vmatpush3.msra.mxu1 %v3478_v48 }
0x16a5   :  { %7225 = vmatprep.subr.mxu0 %v3292_v22  ;;  %7246 = vmatprep.subr.mxu1 %v3477_v16 }
0x16a6   :  { %7226 = vmatpush3.msra.mxu0 %v3292_v22  ;;  %v3476_v22 = vld [vmem:[%s9456_s19 + $0x8] sm:$0xff]  ;;  %7247 = vmatpush3.msra.mxu1 %v3477_v16 }
0x16a7   :  { %7227 = vmatprep.subr.mxu0 %v3291_v49  ;;  %7248 = vmatprep.subr.mxu1 %v3476_v22 }
0x16a8   :  { %7228 = vmatpush3.msra.mxu0 %v3291_v49  ;;  %v3475_v49 = vld [vmem:[%s9456_s19] sm:$0xff]  ;;  %7249 = vmatpush3.msra.mxu1 %v3476_v22 }
0x16a9   :  { %7229 = vmatprep.subr.mxu0 %v3290_v52  ;;  %7250 = vmatprep.subr.mxu1 %v3475_v49 }
0x16aa   :  { %7230 = vmatpush3.msra.mxu0 %v3290_v52  ;;  %7251 = vmatpush3.msra.mxu1 %v3475_v49  ;;  %v3570_v52 = vld [vmem:[%s9457_s27 + $0x18] sm:$0xff] }
0x16ab   :  { %7231 = vmatprep.subr.mxu0 %v3289_v40  ;;  %7255 = vmatprep.subr.mxu1 %v3570_v52 }
0x16ac   :  { %7232 = vmatpush3.msra.mxu0 %v3289_v40 }
0x16ad   :  { %7233 = vmatprep.subr.mxu0 %v3288_v53 }
0x16ae   :  { %7234 = vmatpush3.msra.mxu0 %v3288_v53 }
0x16af   :  { %7235 = vmatprep.subr.mxu0 %v3287_v54 }
0x16b0   :  { %7236 = vmatpush3.msra.mxu0 %v3287_v54 }
0x16b1   :  { %7237 = vmatprep.subr.mxu0 %v3286_v55 }
0x16b2   :  { %7238 = vmatpush3.msra.mxu0 %v3286_v55 }
0x16b3   :  { %7239 = vmatprep.subr.mxu0 %v3285_v35 }
0x16b4   :  { %7240 = vmatpush3.msra.mxu0 %v3285_v35 }
0x1755   :  { %v7208_v59 = vpop.f32.mrf.mxu0 }
0x1756   :  { %v3280_v6 = vadd.f32 %v7208_v59, %v6594_v57 }
0x1757   :  { %v3274_v60 = vpop.f32.mrf.mxu0 }
0x1758   :  { %v3275_v30 = vadd.f32 %v6594_v57, %v3274_v60  ;;  %v3284_v17 = vmax.f32 %v3280_v6, 0.0  ;;  %v6600_v60 = vld [vmem:[#allocation3] ss:$0 sm:$0xff] }
0x175a   :  { %v3283_v10 = vmax.f32 %v3275_v30, 0.0 }
0x175c   :  { %7241 = vmatprep.mubr.f32.mxu0 %v3283_v10 }
0x175d   :  { %7242 = vmatmul.mubr.f32.vlgmr.msra.gmra.mxu0 %v3284_v17 }
0x181d   :  { %v7243_v1 = vpop.f32.mrf.mxu0 }
0x181e   :  { %v3380_v11 = vadd.f32 %v7243_v1, %v6597_v31  ;;  %v6601_v1 = vld [vmem:[#allocation5] ss:$0 sm:$0xff] }
0x181f   :  { %v3374_v4 = vpop.f32.mrf.mxu0 }
0x1820   :  { %v3384_v50 = vadd.f32 %v3380_v11, %v3190_v63  ;;  %v3375_v36 = vadd.f32 %v6597_v31, %v3374_v4 }
0x1822   :  { %v3388_v5 = vsel %vm516_vm2, %v3384_v50, 0.0  ;;  %v3383_v7 = vadd.f32 %v3375_v36, %v8894_v37  ;;  %v3568_v36 = vld [vmem:[%s9457_s27 + $0x8] sm:$0xff] }
0x1823   :  { %3389 = vadd.xlane.f32.xlu0 %v3388_v5  ;;  %v3567_v5 = vld [vmem:[%s9457_s27] sm:$0xff] }
0x1824   :  { %v3385_v39 = vsel %vm516_vm2, %v3383_v7, 0.0 }
0x1825   :  { %3386 = vadd.xlane.f32.xlu1 %v3385_v39  ;;  %v3655_v39 = vld [vmem:[%s9458_s30 + $0x10] sm:$0xff] }
0x18ac   :  { %v3390_v12 = vpop.xlane.xlu0 %3389 }
0x18ad   :  { %v3392_v56 = vmul.f32 0.03125, %v3390_v12  ;;  %v3654_v12 = vld [vmem:[%s9458_s30 + $0x8] sm:$0xff] }
0x18ae   :  { %v3387_v3 = vpop.xlane.xlu1 %3386 }
0x18af   :  { %v3394_v13 = vsub.f32 %v3384_v50, %v3392_v56  ;;  %v3391_v14 = vmul.f32 0.03125, %v3387_v3  ;;  %v3569_v50 = vld [vmem:[%s9457_s27 + $0x10] sm:$0xff]  ;;  %v3653_v56 = vld [vmem:[%s9458_s30] sm:$0xff]  ;;  %v8954_v3 = vld [vmem:[%s9459_s0 + $0x8] sm:$0xff] }
0x18b0   :  { %7277 = vmatprep.subr.msk.mxu0 %vm828_vm3, %v8954_v3 }
0x18b1   :  { %v3393_v61 = vsub.f32 %v3383_v7, %v3391_v14  ;;  %v3396_v51 = vmul.f32 %v3394_v13, %v3394_v13  ;;  %v3656_v7 = vld [vmem:[%s9458_s30 + $0x18] sm:$0xff]  ;;  %7278 = vmatpush3.xpose.msk.msra.mxu0 %vm828_vm3, %v8954_v3  ;;  %v6602_v14 = vld [vmem:[#allocation17] ss:$0 sm:$0xff] }
0x18b3   :  { %v3400_v15 = vsel %vm516_vm2, %v3396_v51, 0.0  ;;  %v3395_v9 = vmul.f32 %v3393_v61, %v3393_v61 }
0x18b4   :  { %3401 = vadd.xlane.f32.xlu0 %v3400_v15 }
0x18b5   :  { %v3397_v19 = vsel %vm516_vm2, %v3395_v9, 0.0 }
0x18b6   :  { %3398 = vadd.xlane.f32.xlu1 %v3397_v19 }
0x193d   :  { %v3402_v18 = vpop.xlane.xlu0 %3401 }
0x193e   :  { %v3404_v8 = vmul.f32 0.03125, %v3402_v18 }
0x193f   :  { %v3399_v20 = vpop.xlane.xlu1 %3398 }
0x1940   :  { %v3406_v24 = vadd.f32 1e-05, %v3404_v8  ;;  %v3403_v23 = vmul.f32 0.03125, %v3399_v20  ;;  %v6605_v8 = vld [vmem:[#allocation14] ss:$0 sm:$0xff] }
0x1942   :  { %7675 = vrsqrt.f32 %v3406_v24  ;;  %v3405_v27 = vadd.f32 1e-05, %v3403_v23 }
0x1944   :  { %7677 = vrsqrt.f32 %v3405_v27 }
0x194f   :  { %v7676_v28 = vpop.eup %7675 }
0x1950   :  { %v3410_v34 = vmul.f32 %v7676_v28, %v3394_v13  ;;  %v8965_v13 = vld [vmem:[%s9459_s0] sm:$0xff] }
0x1951   :  { %v7678_v25 = vpop.eup %7677  ;;  %7279 = vmatprep.subr.msk.mxu0 %vm828_vm3, %v8965_v13 }
0x1952   :  { %v3419_v26 = vmul.f32 %v6598_v32, %v3410_v34  ;;  %v3409_v43 = vmul.f32 %v7678_v25, %v3393_v61  ;;  %7280 = vmatpush3.xpose.msk.msra.mxu0 %vm828_vm3, %v8965_v13  ;;  %v6608_v25 = vld [vmem:[#allocation19] ss:$0 sm:$0xff] }
0x1954   :  { %v8923_v58 = vadd.f32 %v6599_v38, %v3419_v26  ;;  %v3418_v44 = vmul.f32 %v6598_v32, %v3409_v43 }
0x1956   :  { %v3434_v29 = vsel %vm516_vm2, %v8923_v58, 0.0  ;;  %v8927_v42 = vadd.f32 %v6599_v38, %v3418_v44 }
0x1957   :  { %3435 = vadd.xlane.f32.xlu0 %v3434_v29 }
0x1958   :  { %v3431_v41 = vsel %vm516_vm2, %v8927_v42, 0.0 }
0x1959   :  { %3432 = vadd.xlane.f32.xlu1 %v3431_v41 }
0x19e0   :  { %v3436_v45 = vpop.xlane.xlu0 %3435 }
0x19e1   :  { %v3438_v46 = vmul.f32 0.03125, %v3436_v45 }
0x19e2   :  { %v3433_v21 = vpop.xlane.xlu1 %3432 }
0x19e3   :  { %v3440_v37 = vsub.f32 %v8923_v58, %v3438_v46  ;;  %v3437_v63 = vmul.f32 0.03125, %v3433_v21 }
0x19e5   :  { %v3439_v0 = vsub.f32 %v8927_v42, %v3437_v63  ;;  %v3442_v62 = vmul.f32 %v3440_v37, %v3440_v37 }
0x19e7   :  { %v3446_v47 = vsel %vm516_vm2, %v3442_v62, 0.0  ;;  %v3441_v33 = vmul.f32 %v3439_v0, %v3439_v0 }
0x19e8   :  { %3447 = vadd.xlane.f32.xlu0 %v3446_v47 }
0x19e9   :  { %v3443_v2 = vsel %vm516_vm2, %v3441_v33, 0.0 }
0x19ea   :  { %3444 = vadd.xlane.f32.xlu1 %v3443_v2 }
0x1a71   :  { %v3448_v40 = vpop.xlane.xlu0 %3447 }
0x1a72   :  { %v3450_v53 = vmul.f32 0.03125, %v3448_v40 }
0x1a73   :  { %v3445_v54 = vpop.xlane.xlu1 %3444 }
0x1a74   :  { %v3452_v55 = vadd.f32 1e-05, %v3450_v53  ;;  %v3449_v35 = vmul.f32 0.03125, %v3445_v54 }
0x1a76   :  { %7679 = vrsqrt.f32 %v3452_v55  ;;  %v3451_v57 = vadd.f32 1e-05, %v3449_v35 }
0x1a78   :  { %7681 = vrsqrt.f32 %v3451_v57 }
0x1a83   :  { %v7680_v59 = vpop.eup %7679 }
0x1a84   :  { %v3456_v6 = vmul.f32 %v7680_v59, %v3440_v37 }
0x1a85   :  { %v7682_v30 = vpop.eup %7681 }
0x1a86   :  { %v3455_v10 = vmul.f32 %v7682_v30, %v3439_v0  ;;  %v3465_v17 = vmul.f32 %v6600_v60, %v3456_v6 }
0x1a88   :  { %v3464_v31 = vmul.f32 %v6600_v60, %v3455_v10  ;;  %v3474_v4 = vadd.f32 %v6601_v1, %v3465_v17 }
0x1a8a   :  { %v3473_v11 = vadd.f32 %v6601_v1, %v3464_v31 }
0x1a8c   :  { %7252 = vmatprep.mubr.msk.f32.mxu1 %vm516_vm2, %v3473_v11 }
0x1a8d   :  { %7253 = vmatmul.mubr.msk.f32.vlgmr.msra.gmra.mxu1 %vm516_vm2, %v3474_v4 }
0x1a8e   :  { %7256 = vmatpush3.msra.mxu1 %v3570_v52  ;;  %7263 = vmatprep.mubr.msk.f32.mxu1 %vm516_vm2, %v3473_v11 }
0x1a8f   :  { %7257 = vmatprep.subr.mxu1 %v3569_v50 }
0x1a90   :  { %7258 = vmatpush3.msra.mxu1 %v3569_v50 }
0x1a91   :  { %7259 = vmatprep.subr.mxu1 %v3568_v36 }
0x1a92   :  { %7260 = vmatpush3.msra.mxu1 %v3568_v36 }
0x1a93   :  { %7261 = vmatprep.subr.mxu1 %v3567_v5 }
0x1a94   :  { %7262 = vmatpush3.msra.mxu1 %v3567_v5 }
0x1a95   :  { %7264 = vmatmul.mubr.msk.f32.vlgmr.msra.gmra.mxu1 %vm516_vm2, %v3474_v4  ;;  %7266 = vmatprep.subr.mxu1 %v3656_v7 }
0x1a96   :  { %7267 = vmatpush3.msra.mxu1 %v3656_v7  ;;  %7274 = vmatprep.mubr.msk.f32.mxu1 %vm516_vm2, %v3473_v11 }
0x1a97   :  { %7268 = vmatprep.subr.mxu1 %v3655_v39 }
0x1a98   :  { %7269 = vmatpush3.msra.mxu1 %v3655_v39 }
0x1a99   :  { %7270 = vmatprep.subr.mxu1 %v3654_v12 }
0x1a9a   :  { %7271 = vmatpush3.msra.mxu1 %v3654_v12 }
0x1a9b   :  { %7272 = vmatprep.subr.mxu1 %v3653_v56 }
0x1a9c   :  { %7273 = vmatpush3.msra.mxu1 %v3653_v56 }
0x1a9d   :  { %7275 = vmatmul.mubr.msk.f32.vlgmr.msra.gmra.mxu1 %vm516_vm2, %v3474_v4  ;;  %7284 = vmatprep.subr.msk.mxu1 %vm828_vm3, %v8954_v3 }
0x1a9e   :  { %7285 = vmatpush3.xpose.msk.msra.mxu1 %vm828_vm3, %v8954_v3 }
0x1a9f   :  { %7286 = vmatprep.subr.msk.mxu1 %vm828_vm3, %v8965_v13 }
0x1aa2   :  { %7287 = vmatpush3.xpose.msk.msra.mxu1 %vm828_vm3, %v8965_v13 }
0x1aa3   :  { %7305 = vmatprep.subr.msk.mxu1 %vm828_vm3, %v8954_v3 }
0x1b4d   :  { %v7254_v61 = vpop.f32.mrf.mxu1 }
0x1b4e   :  { %v3564_v51 = vadd.f32 %v7254_v61, %v6602_v14 }
0x1b4f   :  { %v3558_v15 = vpop.f32.mrf.mxu1 }
0x1b50   :  { %v3559_v9 = vadd.f32 %v6602_v14, %v3558_v15  ;;  %v8979_v18 = vmul.f32 0.59460354, %v3564_v51  ;;  %v9019_v47 = vmul.f32 %v3564_v51, %v3564_v51 }
0x1b52   :  { %v8977_v19 = vmul.f32 0.59460354, %v3559_v9  ;;  %v9015_v0 = vmul.f32 %v3559_v9, %v3559_v9  ;;  %v3916_v48 = vsel %vm828_vm3, %v9019_v47, 0.0 }
0x1b54   :  { %7281 = vmatprep.mubr.msk.f32.mxu0 %vm828_vm3, %v8977_v19  ;;  %v3913_v33 = vsel %vm828_vm3, %v9015_v0, 0.0 }
0x1b55   :  { %v7265_v20 = vpop.f32.mrf.mxu1  ;;  %7282 = vmatmul.mubr.msk.f32.vlgmr.msra.gmra.mxu0 %vm828_vm3, %v8979_v18 }
0x1b56   :  { %v3650_v24 = vadd.f32 %v7265_v20, %v6605_v8 }
0x1b57   :  { %v3644_v23 = vpop.f32.mrf.mxu1 }
0x1b58   :  { %v3645_v27 = vadd.f32 %v6605_v8, %v3644_v23  ;;  %v8989_v34 = vmul.f32 0.59460354, %v3650_v24  ;;  %v9013_v63 = vmul.f32 %v3650_v24, %v3650_v24 }
0x1b5a   :  { %v8985_v28 = vmul.f32 0.59460354, %v3645_v27  ;;  %v8987_v32 = vmul.f32 %v3645_v27, %v3645_v27  ;;  %v3928_v62 = vsel %vm828_vm3, %v9013_v63, 0.0 }
0x1b5c   :  { %7288 = vmatprep.mubr.msk.f32.mxu1 %vm828_vm3, %v8985_v28  ;;  %v3925_v38 = vsel %vm828_vm3, %v8987_v32, 0.0 }
0x1b5d   :  { %v7276_v26 = vpop.f32.mrf.mxu1  ;;  %3926 = vadd.xlane.f32.xlu0 %v3925_v38  ;;  %7289 = vmatmul.mubr.msk.f32.vlgmr.msra.gmra.mxu1 %vm828_vm3, %v8989_v34 }
0x1b5e   :  { %v8997_v43 = vadd.f32 %v7276_v26, %v6608_v25  ;;  %7306 = vmatpush3.xpose.msk.msra.mxu1 %vm828_vm3, %v8954_v3 }
0x1b5f   :  { %v3730_v44 = vpop.f32.mrf.mxu1  ;;  %7307 = vmatprep.subr.msk.mxu1 %vm828_vm3, %v8965_v13 }
0x1b60   :  { %v9003_v29 = vadd.f32 %v6608_v25, %v3730_v44  ;;  %7291 = vmatprep.subr.mxu0 %v8997_v43 }
0x1b61   :  { %7292 = vmatpush3.msra.mxu0 %v8997_v43 }
0x1b62   :  { %7293 = vmatprep.subr.mxu0 %v9003_v29  ;;  %7308 = vmatpush3.xpose.msk.msra.mxu1 %vm828_vm3, %v8965_v13 }
0x1b63   :  { %7294 = vmatpush3.msra.mxu0 %v9003_v29 }
0x1be6   :  { %v3927_v6 = vpop.xlane.xlu0 %3926 }
0x1be7   :  { %v3931_v30 = vmul.f32 0.5, %v3927_v6 }
0x1be9   :  { %v3933_v17 = vmul.f32 0.35355338, %v3931_v30 }
0x1c15   :  { %v9023_v2 = vpop.f32.mrf.mxu0 }
0x1c16   :  { %v3940_v49 = vsel %vm1025_vm4, %v9023_v2, -inf }
0x1c17   :  { %v3819_v16 = vpop.f32.mrf.mxu0 }
0x1c18   :  { %v3937_v22 = vsel %vm1025_vm4, %v3819_v16, -inf }
0x1c1d   :  { %v7290_v41 = vpop.f32.mrf.mxu1 }
0x1c1e   :  { %v3956_v46 = vsel %vm1025_vm4, %v7290_v41, -inf }
0x1c1f   :  { %v3902_v45 = vpop.f32.mrf.mxu1 }
0x1c20   :  { %v3955_v21 = vsel %vm1025_vm4, %v3902_v45, -inf  ;;  %v3953_v31 = vsub.f32 %v3902_v45, %v3933_v17 }
0x1c21   :  { %v3957_v37 = vmax.f32 %v3955_v21, %v3956_v46 }
0x1c23   :  { %3958 = vmax.xlane.f32.xlu1 %v3957_v37 }
0x1c27   :  { %3929 = vadd.xlane.f32.xlu1 %v3928_v62 }
0x1c2b   :  { %3914 = vadd.xlane.f32.xlu1 %v3913_v33 }
0x1c2f   :  { %3917 = vadd.xlane.f32.xlu1 %v3916_v48 }
0x1c33   :  { %3938 = vmax.xlane.f32.xlu1 %v3937_v22 }
0x1c37   :  { %3941 = vmax.xlane.f32.xlu1 %v3940_v49 }
0x1c48   :  { %4276 = vrot.lane.b32.xlu1 %v8985_v28, %s8145_s1 }
0x1c4c   :  { %4278 = vrot.lane.b32.xlu1 %v8989_v34, %s8145_s1 }
0x1c50   :  { %4379 = vrot.lane.b32.xlu1 %v8987_v32, %s8145_s1 }
0x1c54   :  { %4381 = vrot.lane.b32.xlu1 %v9013_v63, %s8145_s1 }
0x1cac   :  { %v3959_v52 = vpop.xlane.xlu1 %3958 }
0x1cad   :  { %v3960_v40 = vrot.slane %v3959_v52, 4 }
0x1caf   :  { %v3961_v53 = vmax.f32 %v3959_v52, %v3960_v40 }
0x1cb0   :  { %v3930_v59 = vpop.xlane.xlu1 %3929 }
0x1cb1   :  { %v3962_v54 = vrot.slane %v3961_v53, 2  ;;  %v3932_v60 = vmul.f32 0.5, %v3930_v59 }
0x1cb3   :  { %v3963_v55 = vmax.f32 %v3961_v53, %v3962_v54  ;;  %v3934_v10 = vmul.f32 0.35355338, %v3932_v60 }
0x1cb4   :  { %v3915_v8 = vpop.xlane.xlu1 %3914 }
0x1cb5   :  { %v3964_v35 = vrot.slane %v3963_v55, 1  ;;  %v3954_v1 = vsub.f32 %v7290_v41, %v3934_v10  ;;  %v3919_v44 = vmul.f32 0.5, %v3915_v8 }
0x1cb7   :  { %v3965_v57 = vmax.f32 %v3963_v55, %v3964_v35  ;;  %v3921_v41 = vmul.f32 0.35355338, %v3919_v44 }
0x1cb8   :  { %v3918_v20 = vpop.xlane.xlu1 %3917 }
0x1cb9   :  { %7522 = vpush %v3965_v57  ;;  %v3935_v45 = vsub.f32 %v3819_v16, %v3921_v41  ;;  %v3920_v40 = vmul.f32 0.5, %v3918_v20 }
0x1cbb   :  { %v3922_v53 = vmul.f32 0.35355338, %v3920_v40 }
0x1cbc   :  { %v3939_v24 = vpop.xlane.xlu1 %3938 }
0x1cbd   :  { %v3943_v46 = vsub.f32 %v3935_v45, %v3939_v24  ;;  %v3936_v54 = vsub.f32 %v9023_v2, %v3922_v53 }
0x1cbf   :  { %v3945_v21 = vmul.f32 1.442695, %v3943_v46 }
0x1cc0   :  { %v3942_v23 = vpop.xlane.xlu1 %3941 }
0x1cc1   :  { %v3944_v55 = vsub.f32 %v3936_v54, %v3942_v23 }
0x1cc3   :  { %v3947_v35 = vmul.f32 1.442695, %v3944_v55 }
0x1cc4   :  { %v4277_v27 = vpop.permute.xlu1 %4276 }
0x1cc8   :  { %v4279_v25 = vpop.permute.xlu1 %4278 }
0x1ccc   :  { %v4380_v38 = vpop.permute.xlu1 %4379 }
0x1ccd   :  { %v4385_v26 = vsel %vm828_vm3, %v4380_v38, 0.0 }
0x1cea   :  { %s7523_s25 = spop %7522 }
0x1ceb   :  { %v3967_v11 = vstv %s7523_s25 }
0x1cec   :  { %v3968_v4 = vsub.f32 %v3953_v31, %v3967_v11  ;;  %v3969_v50 = vsub.f32 %v3954_v1, %v3967_v11 }
0x1cee   :  { %v3970_v36 = vmul.f32 1.442695, %v3968_v4  ;;  %v3972_v5 = vmul.f32 1.442695, %v3969_v50  ;;  %v4382_v50 = vpop.permute.xlu1 %4381 }
0x1cf0   :  { %7683 = vpow2.f32 %v3970_v36  ;;  %v4388_v36 = vsel %vm828_vm3, %v4382_v50, 0.0 }
0x1cf1   :  { %7685 = vpow2.f32 %v3972_v5 }
0x1cf2   :  { %7687 = vpow2.f32 %v3945_v21 }
0x1cf3   :  { %7689 = vpow2.f32 %v3947_v35 }
0x1cfd   :  { %v7684_v7 = vpop.eup %7683 }
0x1cfe   :  { %v7686_v39 = vpop.eup %7685  ;;  %v3974_v12 = vadd.f32 0.0001, %v7684_v7 }
0x1cff   :  { %v3975_v56 = vadd.f32 0.0001, %v7686_v39  ;;  %v7688_v37 = vpop.eup %7687 }
0x1d00   :  { %v3976_v14 = vmul.f32 0.25, %v3974_v12  ;;  %v3949_v62 = vadd.f32 0.0001, %v7688_v37  ;;  %v7690_v57 = vpop.eup %7689 }
0x1d01   :  { %v3977_v61 = vmul.f32 0.25, %v3975_v56  ;;  %v3950_v59 = vadd.f32 0.0001, %v7690_v57 }
0x1d02   :  { %v3978_v51 = vsel %vm1025_vm4, %v3976_v14, 0.0  ;;  %3997 = vxpose.xlu0.b32.start [1/2] (short) (narrow) %v3976_v14, 16  ;;  %v9048_v48 = vmul.f32 0.25, %v3949_v62 }
0x1d03   :  { %v3979_v15 = vsel %vm1025_vm4, %v3977_v61, 0.0  ;;  %v9055_v30 = vmul.f32 0.25, %v3950_v59 }
0x1d04   :  { %v9040_v9 = vadd.f32 %v3979_v15, %v3978_v51 }
0x1d06   :  { %3998 = vxpose.xlu0.b32.end [2/2] (short) (narrow) %v3977_v61, 16 }
0x1d2f   :  { %4193 = vrot.lane.b32.xlu0 %v8977_v19, %s8145_s1 }
0x1d4e   :  { %4386 = vadd.xlane.f32.xlu0 %v4385_v26 }
0x1d64   :  { %4493 = vrot.lane.b32.xlu0 %v8997_v43, %s8145_s1 }
0x1d7e   :  { %v4013_v33 = vpop.trf.xlu0 }
0x1d7f   :  { %7295 = vmatprep.mubr.msk.f32.mxu0 %vm1025_vm4, %v4013_v33 }
0x1d82   :  { %v4014_v22 = vpop.trf.xlu0 }
0x1d83   :  { %7296 = vmatmul.mubr.msk.f32.vlgmr.msra.gmra.mxu0 %vm1025_vm4, %v4014_v22 }
0x1d84   :  { %7302 = vmatprep.mubr.msk.f32.mxu0 %vm1025_vm4, %v9048_v48 }
0x1da1   :  { %v4194_v16 = vpop.permute.xlu0 %4193 }
0x1da2   :  { %7309 = vmatprep.mubr.msk.f32.mxu1 %vm828_vm3, %v4194_v16 }
0x1dd7   :  { %v4387_v49 = vpop.xlane.xlu0 %4386 }
0x1dd8   :  { %v4391_v20 = vmul.f32 0.5, %v4387_v49 }
0x1ddb   :  { %v4494_v52 = vpop.permute.xlu0 %4493 }
0x1ddc   :  { %7319 = vmatprep.subr.mxu1 %v4494_v52 }
0x1e43   :  { %v7297_v6 = vpop.f32.mrf.mxu0 }
0x1e44   :  { %7298 = vmatprep.subr.mxu0 %v7297_v6 }
0x1e45   :  { %v4101_v60 = vpop.f32.mrf.mxu0  ;;  %7299 = vmatpush3.msra.mxu0 %v7297_v6 }
0x1e46   :  { %7300 = vmatprep.subr.mxu0 %v4101_v60 }
0x1e47   :  { %7301 = vmatpush3.msra.mxu0 %v4101_v60 }
0x1e48   :  { %7303 = vmatmul.mubr.msk.f32.vlgmr.msra.gmra.mxu0 %vm1025_vm4, %v9055_v30  ;;  %7312 = vmatprep.subr.msk.mxu0 %vm828_vm3, %v8954_v3 }
0x1e49   :  { %7313 = vmatpush3.xpose.msk.msra.mxu0 %vm828_vm3, %v8954_v3  ;;  %7316 = vmatprep.mubr.msk.f32.mxu0 %vm828_vm3, %v4277_v27  ;;  %v4393_v27 = vmul.f32 0.35355338, %v4391_v20 }
0x1e4a   :  { %7314 = vmatprep.subr.msk.mxu0 %vm828_vm3, %v8965_v13 }
0x1e4d   :  { %7315 = vmatpush3.xpose.msk.msra.mxu0 %vm828_vm3, %v8965_v13 }
0x1e50   :  { %7317 = vmatmul.mubr.msk.f32.vlgmr.msra.gmra.mxu0 %vm828_vm3, %v4279_v25 }
0x1f08   :  { %v9069_v2 = vpop.f32.mrf.mxu0 }
0x1f0a   :  { %v9071_v10 = vpop.f32.mrf.mxu0 }
0x1f10   :  { %v7318_v17 = vpop.f32.mrf.mxu0 }
0x1f11   :  { %v4416_v1 = vsel %vm1025_vm4, %v7318_v17, -inf }
0x1f12   :  { %v4350_v31 = vpop.f32.mrf.mxu0 }
0x1f13   :  { %v4415_v11 = vsel %vm1025_vm4, %v4350_v31, -inf  ;;  %v4413_v38 = vsub.f32 %v4350_v31, %v4393_v27 }
0x1f14   :  { %v4417_v4 = vmax.f32 %v4415_v11, %v4416_v1 }
0x1f16   :  { %4418 = vmax.xlane.f32.xlu1 %v4417_v4 }
0x1f27   :  { %4195 = vrot.lane.b32.xlu1 %v8979_v18, %s8145_s1 }
0x1f4b   :  { %4389 = vadd.xlane.f32.xlu1 %v4388_v36 }
0x1f5c   :  { %4491 = vrot.lane.b32.xlu1 %v9003_v29, %s8145_s1 }
0x1f60   :  { %4361 = vrot.lane.b32.xlu1 %v9015_v0, %s8145_s1 }
0x1f64   :  { %4363 = vrot.lane.b32.xlu1 %v9019_v47, %s8145_s1 }
0x1f9f   :  { %v4419_v5 = vpop.xlane.xlu1 %4418 }
0x1fa0   :  { %v4420_v7 = vrot.slane %v4419_v5, 4 }
0x1fa2   :  { %v4421_v39 = vmax.f32 %v4419_v5, %v4420_v7 }
0x1fa3   :  { %v4196_v12 = vpop.permute.xlu1 %4195 }
0x1fa4   :  { %v4422_v56 = vrot.slane %v4421_v39, 2  ;;  %7310 = vmatmul.mubr.msk.f32.vlgmr.msra.gmra.mxu1 %vm828_vm3, %v4196_v12 }
0x1fa5   :  { %7320 = vmatpush3.msra.mxu1 %v4494_v52 }
0x1fa6   :  { %v4423_v14 = vmax.f32 %v4421_v39, %v4422_v56 }
0x1fa8   :  { %v4424_v61 = vrot.slane %v4423_v14, 1 }
0x1faa   :  { %v4425_v51 = vmax.f32 %v4423_v14, %v4424_v61 }
0x1fac   :  { %7524 = vpush %v4425_v51 }
0x1fd4   :  { %v4390_v15 = vpop.xlane.xlu1 %4389 }
0x1fd5   :  { %v4392_v8 = vmul.f32 0.5, %v4390_v15 }
0x1fd7   :  { %v4394_v23 = vmul.f32 0.35355338, %v4392_v8 }
0x1fd8   :  { %v4492_v24 = vpop.permute.xlu1 %4491 }
0x1fd9   :  { %7321 = vmatprep.subr.mxu1 %v4492_v24  ;;  %v4414_v26 = vsub.f32 %v7318_v17, %v4394_v23 }
0x1fda   :  { %7322 = vmatpush3.msra.mxu1 %v4492_v24 }
0x1fdb   :  { %7333 = vmatprep.subr.msk.mxu1 %vm828_vm3, %v8954_v3 }
0x1fdc   :  { %v4362_v25 = vpop.permute.xlu1 %4361 }
0x1fdd   :  { %v4367_v44 = vsel %vm828_vm3, %v4362_v25, 0.0  ;;  %s7525_s1 = spop %7524 }
0x1fde   :  { %v4427_v41 = vstv %s7525_s1  ;;  %4368 = vadd.xlane.f32.xlu1 %v4367_v44 }
0x1fdf   :  { %v4428_v45 = vsub.f32 %v4413_v38, %v4427_v41  ;;  %v4429_v46 = vsub.f32 %v4414_v26, %v4427_v41 }
0x1fe0   :  { %v4364_v55 = vpop.permute.xlu1 %4363 }
0x1fe1   :  { %v4430_v21 = vmul.f32 1.442695, %v4428_v45  ;;  %v4432_v37 = vmul.f32 1.442695, %v4429_v46  ;;  %v4370_v35 = vsel %vm828_vm3, %v4364_v55, 0.0 }
0x1fe3   :  { %7691 = vpow2.f32 %v4430_v21 }
0x1fe4   :  { %7693 = vpow2.f32 %v4432_v37 }
0x1ff0   :  { %v7692_v62 = vpop.eup %7691 }
0x1ff1   :  { %v7694_v33 = vpop.eup %7693  ;;  %v4434_v22 = vadd.f32 0.0001, %v7692_v62 }
0x1ff2   :  { %v4435_v16 = vadd.f32 0.0001, %v7694_v33 }
0x1ff3   :  { %v4436_v49 = vmul.f32 0.25, %v4434_v22 }
0x1ff4   :  { %v4437_v52 = vmul.f32 0.25, %v4435_v16 }
0x1ff5   :  { %v4438_v40 = vsel %vm1025_vm4, %v4436_v49, 0.0  ;;  %4457 = vxpose.xlu0.b32.start [1/2] (short) (narrow) %v4436_v49, 16 }
0x1ff6   :  { %v4439_v53 = vsel %vm1025_vm4, %v4437_v52, 0.0 }
0x1ff7   :  { %v4440_v54 = vadd.f32 %v4439_v53, %v4438_v40 }
0x1ff9   :  { %4458 = vxpose.xlu0.b32.end [2/2] (short) (narrow) %v4437_v52, 16  ;;  %v4441_v61 = vrot.slane %v4440_v54, 4 }
0x1ffb   :  { %v4442_v23 = vadd.f32 %v4441_v61, %v4440_v54 }
0x1ffd   :  { %v4443_v38 = vrot.slane %v4442_v23, 2 }
0x1fff   :  { %v4444_v41 = vadd.f32 %v4443_v38, %v4442_v23 }
0x2001   :  { %v4445_v45 = vrot.slane %v4444_v41, 1 }
0x2003   :  { %v4446_v62 = vadd.f32 %v4445_v45, %v4444_v41 }
0x2026   :  { %4371 = vadd.xlane.f32.xlu0 %v4370_v35 }
0x203c   :  { %4746 = vrot.lane.b32.xlu0 %v8989_v34, %s8146_s29 }
0x2040   :  { %4661 = vrot.lane.b32.xlu0 %v8977_v19, %s8146_s29 }
0x2044   :  { %4663 = vrot.lane.b32.xlu0 %v8979_v18, %s8146_s29 }
0x2064   :  { %v7311_v57 = vpop.f32.mrf.mxu1 }
0x2065   :  { %v4400_v60 = vsel %vm1025_vm4, %v7311_v57, -inf }
0x2066   :  { %v4267_v59 = vpop.f32.mrf.mxu1 }
0x2067   :  { %v4397_v6 = vsel %vm1025_vm4, %v4267_v59, -inf  ;;  %v4369_v36 = vpop.xlane.xlu1 %4368 }
0x2068   :  { %4398 = vmax.xlane.f32.xlu1 %v4397_v6  ;;  %v4373_v5 = vmul.f32 0.5, %v4369_v36 }
0x206a   :  { %v4375_v7 = vmul.f32 0.35355338, %v4373_v5 }
0x206c   :  { %4401 = vmax.xlane.f32.xlu1 %v4400_v60  ;;  %v4395_v56 = vsub.f32 %v4267_v59, %v4375_v7 }
0x2071   :  { %v4473_v17 = vpop.trf.xlu0 }
0x2072   :  { %7323 = vmatprep.mubr.msk.f32.mxu1 %vm1025_vm4, %v4473_v17 }
0x2075   :  { %v4474_v31 = vpop.trf.xlu0 }
0x2076   :  { %7324 = vmatmul.mubr.msk.f32.vlgmr.msra.gmra.mxu1 %vm1025_vm4, %v4474_v31 }
0x2077   :  { %7334 = vmatpush3.xpose.msk.msra.mxu1 %vm828_vm3, %v8954_v3 }
0x2078   :  { %7335 = vmatprep.subr.msk.mxu1 %vm828_vm3, %v8965_v13 }
0x207b   :  { %7336 = vmatpush3.xpose.msk.msra.mxu1 %vm828_vm3, %v8965_v13 }
0x207d   :  { %4744 = vrot.lane.b32.xlu1 %v8985_v28, %s8146_s29 }
0x2081   :  { %4843 = vrot.lane.b32.xlu1 %v8987_v32, %s8146_s29 }
0x2085   :  { %4845 = vrot.lane.b32.xlu1 %v9013_v63, %s8146_s29 }
0x20af   :  { %v4372_v1 = vpop.xlane.xlu0 %4371 }
0x20b0   :  { %v4374_v39 = vmul.f32 0.5, %v4372_v1 }
0x20b2   :  { %v4376_v12 = vmul.f32 0.35355338, %v4374_v39 }
0x20b3   :  { %v4747_v11 = vpop.permute.xlu0 %4746 }
0x20b4   :  { %v4396_v8 = vsub.f32 %v7311_v57, %v4376_v12 }
0x20b7   :  { %v4662_v4 = vpop.permute.xlu0 %4661 }
0x20b8   :  { %7337 = vmatprep.mubr.msk.f32.mxu1 %vm828_vm3, %v4662_v4 }
0x20bb   :  { %v4664_v50 = vpop.permute.xlu0 %4663 }
0x20bc   :  { %7338 = vmatmul.mubr.msk.f32.vlgmr.msra.gmra.mxu1 %vm828_vm3, %v4664_v50 }
0x20f1   :  { %v4399_v14 = vpop.xlane.xlu1 %4398 }
0x20f2   :  { %v4403_v51 = vsub.f32 %v4395_v56, %v4399_v14 }
0x20f4   :  { %v4405_v15 = vmul.f32 1.442695, %v4403_v51 }
0x20f5   :  { %v4402_v20 = vpop.xlane.xlu1 %4401 }
0x20f6   :  { %7695 = vpow2.f32 %v4405_v15  ;;  %v4404_v24 = vsub.f32 %v4396_v8, %v4402_v20 }
0x20f8   :  { %v4407_v27 = vmul.f32 1.442695, %v4404_v24 }
0x20f9   :  { %v4745_v25 = vpop.permute.xlu1 %4744 }
0x20fa   :  { %7697 = vpow2.f32 %v4407_v27 }
0x20fd   :  { %v4844_v26 = vpop.permute.xlu1 %4843 }
0x20fe   :  { %v4849_v44 = vsel %vm828_vm3, %v4844_v26, 0.0 }
0x20ff   :  { %4850 = vadd.xlane.f32.xlu0 %v4849_v44 }
0x2101   :  { %v4846_v7 = vpop.permute.xlu1 %4845 }
0x2103   :  { %v7696_v46 = vpop.eup %7695 }
0x2104   :  { %v4409_v21 = vadd.f32 0.0001, %v7696_v46 }
0x2106   :  { %v4411_v37 = vmul.f32 0.25, %v4409_v21 }
0x2107   :  { %v7698_v33 = vpop.eup %7697 }
0x2108   :  { %v4410_v22 = vadd.f32 0.0001, %v7698_v33  ;;  %7330 = vmatprep.mubr.msk.f32.mxu0 %vm1025_vm4, %v4411_v37  ;;  %v9117_v16 = vmul.f32 %v4446_v62, %v4411_v37 }
0x210a   :  { %v4412_v49 = vmul.f32 0.25, %v4410_v22 }
0x210c   :  { %v9119_v52 = vmul.f32 %v4446_v62, %v4412_v49 }
0x2115   :  { %4953 = vrot.lane.b32.xlu0 %v9003_v29, %s8146_s29 }
0x2119   :  { %4827 = vrot.lane.b32.xlu0 %v9015_v0, %s8146_s29 }
0x211d   :  { %4829 = vrot.lane.b32.xlu0 %v9019_v47, %s8146_s29 }
0x2136   :  { %v7325_v40 = vpop.f32.mrf.mxu1 }
0x2137   :  { %7326 = vmatprep.subr.mxu0 %v7325_v40 }
0x2138   :  { %v4569_v53 = vpop.f32.mrf.mxu1  ;;  %7327 = vmatpush3.msra.mxu0 %v7325_v40 }
0x2139   :  { %7328 = vmatprep.subr.mxu0 %v4569_v53 }
0x213a   :  { %7329 = vmatpush3.msra.mxu0 %v4569_v53 }
0x213b   :  { %7331 = vmatmul.mubr.msk.f32.vlgmr.msra.gmra.mxu0 %vm1025_vm4, %v4412_v49  ;;  %7340 = vmatprep.subr.msk.mxu0 %vm828_vm3, %v8954_v3 }
0x213c   :  { %7341 = vmatpush3.xpose.msk.msra.mxu0 %vm828_vm3, %v8954_v3  ;;  %7344 = vmatprep.mubr.msk.f32.mxu0 %vm828_vm3, %v4745_v25 }
0x213d   :  { %7342 = vmatprep.subr.msk.mxu0 %vm828_vm3, %v8965_v13 }
0x2140   :  { %7343 = vmatpush3.xpose.msk.msra.mxu0 %vm828_vm3, %v8965_v13 }
0x2143   :  { %7345 = vmatmul.mubr.msk.f32.vlgmr.msra.gmra.mxu0 %vm828_vm3, %v4747_v11 }
0x217c   :  { %v9138_v35 = vpop.f32.mrf.mxu1 }
0x217d   :  { %v4864_v17 = vsel %vm1025_vm4, %v9138_v35, -inf }
0x217e   :  { %v4735_v6 = vpop.f32.mrf.mxu1 }
0x217f   :  { %v4861_v60 = vsel %vm1025_vm4, %v4735_v6, -inf }
0x2188   :  { %v4851_v54 = vpop.xlane.xlu0 %4850 }
0x2189   :  { %v4855_v21 = vmul.f32 0.5, %v4851_v54 }
0x218b   :  { %v4857_v62 = vmul.f32 0.35355338, %v4855_v21 }
0x218c   :  { %v4954_v55 = vpop.permute.xlu0 %4953 }
0x2190   :  { %v4828_v57 = vpop.permute.xlu0 %4827 }
0x2191   :  { %v4833_v59 = vsel %vm828_vm3, %v4828_v57, 0.0 }
0x2192   :  { %4834 = vadd.xlane.f32.xlu0 %v4833_v59 }
0x2196   :  { %4862 = vmax.xlane.f32.xlu0 %v4861_v60 }
0x219a   :  { %4865 = vmax.xlane.f32.xlu0 %v4864_v17 }
0x21b0   :  { %5206 = vrot.lane.b32.xlu0 %v8985_v28, %s8147_s2  ;;  %v4852_v28 = vsel %vm828_vm3, %v4846_v7, 0.0 }
0x21b4   :  { %5305 = vrot.lane.b32.xlu0 %v8987_v32, %s8147_s2  ;;  %v4830_v32 = vpop.permute.xlu0 %4829 }
0x21b8   :  { %5307 = vrot.lane.b32.xlu0 %v9013_v63, %s8147_s2 }
0x21fb   :  { %v9150_v31 = vpop.f32.mrf.mxu0 }
0x21fd   :  { %v9152_v1 = vpop.f32.mrf.mxu0 }
0x2203   :  { %v7346_v11 = vpop.f32.mrf.mxu0 }
0x2204   :  { %v4880_v50 = vsel %vm1025_vm4, %v7346_v11, -inf }
0x2205   :  { %v4818_v4 = vpop.f32.mrf.mxu0 }
0x2206   :  { %v4879_v36 = vsel %vm1025_vm4, %v4818_v4, -inf  ;;  %v4877_v33 = vsub.f32 %v4818_v4, %v4857_v62 }
0x2207   :  { %v4881_v5 = vmax.f32 %v4879_v36, %v4880_v50 }
0x2209   :  { %4882 = vmax.xlane.f32.xlu1 %v4881_v5  ;;  %v4836_v5 = vsel %vm828_vm3, %v4830_v32, 0.0 }
0x220d   :  { %4853 = vadd.xlane.f32.xlu1 %v4852_v28 }
0x221b   :  { %v4835_v39 = vpop.xlane.xlu0 %4834 }
0x221c   :  { %v4839_v12 = vmul.f32 0.5, %v4835_v39 }
0x221e   :  { %v4841_v63 = vmul.f32 0.35355338, %v4839_v12  ;;  %4955 = vrot.lane.b32.xlu1 %v8997_v43, %s8146_s29 }
0x221f   :  { %v4863_v14 = vpop.xlane.xlu0 %4862 }
0x2220   :  { %v4859_v56 = vsub.f32 %v4735_v6, %v4841_v63 }
0x2222   :  { %v4867_v61 = vsub.f32 %v4859_v56, %v4863_v14 }
0x2223   :  { %v4866_v7 = vpop.xlane.xlu0 %4865 }
0x2224   :  { %v4869_v51 = vmul.f32 1.442695, %v4867_v61 }
0x2226   :  { %7699 = vpow2.f32 %v4869_v51 }
0x2227   :  { %v5207_v28 = vpop.permute.xlu0 %5206 }
0x222b   :  { %v5306_v39 = vpop.permute.xlu0 %5305 }
0x222c   :  { %v5311_v12 = vsel %vm828_vm3, %v5306_v39, 0.0 }
0x2233   :  { %v7700_v15 = vpop.eup %7699 }
0x2234   :  { %v4873_v8 = vadd.f32 0.0001, %v7700_v15 }
0x2236   :  { %v9159_v20 = vmul.f32 0.25, %v4873_v8 }
0x2238   :  { %7358 = vmatprep.mubr.msk.f32.mxu0 %vm1025_vm4, %v9159_v20 }
0x2292   :  { %v4883_v24 = vpop.xlane.xlu1 %4882 }
0x2293   :  { %v4884_v23 = vrot.slane %v4883_v24, 4 }
0x2295   :  { %v4885_v27 = vmax.f32 %v4883_v24, %v4884_v23 }
0x2296   :  { %v4854_v25 = vpop.xlane.xlu1 %4853 }
0x2297   :  { %v4886_v38 = vrot.slane %v4885_v27, 2  ;;  %v4856_v46 = vmul.f32 0.5, %v4854_v25 }
0x2299   :  { %v4887_v26 = vmax.f32 %v4885_v27, %v4886_v38  ;;  %v4858_v37 = vmul.f32 0.35355338, %v4856_v46 }
0x229a   :  { %v4956_v44 = vpop.permute.xlu1 %4955 }
0x229b   :  { %7347 = vmatprep.subr.mxu1 %v4956_v44  ;;  %v4888_v41 = vrot.slane %v4887_v26, 1  ;;  %v4878_v22 = vsub.f32 %v7346_v11, %v4858_v37 }
0x229c   :  { %7348 = vmatpush3.msra.mxu1 %v4956_v44 }
0x229d   :  { %7349 = vmatprep.subr.mxu1 %v4954_v55  ;;  %v4889_v45 = vmax.f32 %v4887_v26, %v4888_v41 }
0x229e   :  { %7350 = vmatpush3.msra.mxu1 %v4954_v55 }
0x229f   :  { %7526 = vpush %v4889_v45  ;;  %7361 = vmatprep.subr.msk.mxu1 %vm828_vm3, %v8954_v3 }
0x22d0   :  { %s7527_s29 = spop %7526 }
0x22d1   :  { %v4891_v49 = vstv %s7527_s29 }
0x22d2   :  { %v4892_v40 = vsub.f32 %v4877_v33, %v4891_v49  ;;  %v4893_v53 = vsub.f32 %v4878_v22, %v4891_v49  ;;  %v4452_v22 = vsel %vm1025_vm4, %v9119_v52, 0.0 }
0x22d4   :  { %v4894_v57 = vmul.f32 1.442695, %v4892_v40  ;;  %v4896_v59 = vmul.f32 1.442695, %v4893_v53 }
0x22d6   :  { %7701 = vpow2.f32 %v4894_v57 }
0x22d7   :  { %7703 = vpow2.f32 %v4896_v59 }
0x22e3   :  { %v7702_v6 = vpop.eup %7701 }
0x22e4   :  { %v7704_v55 = vpop.eup %7703  ;;  %v4898_v60 = vadd.f32 0.0001, %v7702_v6 }
0x22e5   :  { %v4899_v17 = vadd.f32 0.0001, %v7704_v55 }
0x22e6   :  { %v4900_v50 = vmul.f32 0.25, %v4898_v60 }
0x22e7   :  { %v4901_v36 = vmul.f32 0.25, %v4899_v17 }
0x22e8   :  { %v4902_v54 = vsel %vm1025_vm4, %v4900_v50, 0.0  ;;  %4921 = vxpose.xlu1.b32.start [1/2] (short) (narrow) %v4900_v50, 16 }
0x22e9   :  { %v4903_v4 = vsel %vm1025_vm4, %v4901_v36, 0.0 }
0x22ea   :  { %v4904_v11 = vadd.f32 %v4903_v4, %v4902_v54 }
0x22ec   :  { %4922 = vxpose.xlu1.b32.end [2/2] (short) (narrow) %v4901_v36, 16 }
0x2313   :  { %4837 = vadd.xlane.f32.xlu1 %v4836_v5 }
0x2324   :  { %5208 = vrot.lane.b32.xlu1 %v8989_v34, %s8147_s2 }
0x2328   :  { %5123 = vrot.lane.b32.xlu1 %v8977_v19, %s8147_s2 }
0x232c   :  { %5125 = vrot.lane.b32.xlu1 %v8979_v18, %s8147_s2 }
0x2350   :  { %5312 = vadd.xlane.f32.xlu1 %v5311_v12 }
0x2361   :  { %5415 = vrot.lane.b32.xlu1 %v9003_v29, %s8147_s2 }
0x2364   :  { %v4937_v32 = vpop.trf.xlu1 }
0x2365   :  { %7351 = vmatprep.mubr.msk.f32.mxu1 %vm1025_vm4, %v4937_v32  ;;  %5289 = vrot.lane.b32.xlu1 %v9015_v0, %s8147_s2 }
0x2368   :  { %v4938_v34 = vpop.trf.xlu1 }
0x2369   :  { %7352 = vmatmul.mubr.msk.f32.vlgmr.msra.gmra.mxu1 %vm1025_vm4, %v4938_v34  ;;  %5291 = vrot.lane.b32.xlu1 %v9019_v47, %s8147_s2 }
0x236a   :  { %7362 = vmatpush3.xpose.msk.msra.mxu1 %vm828_vm3, %v8954_v3 }
0x236b   :  { %7363 = vmatprep.subr.msk.mxu1 %vm828_vm3, %v8965_v13 }
0x236e   :  { %7364 = vmatpush3.xpose.msk.msra.mxu1 %vm828_vm3, %v8965_v13 }
0x239c   :  { %v4838_v19 = vpop.xlane.xlu1 %4837 }
0x239d   :  { %v4840_v61 = vmul.f32 0.5, %v4838_v19 }
0x239f   :  { %v4842_v51 = vmul.f32 0.35355338, %v4840_v61 }
0x23a0   :  { %v5209_v18 = vpop.permute.xlu1 %5208 }
0x23a1   :  { %v4860_v15 = vsub.f32 %v9138_v35, %v4842_v51  ;;  %v4905_v35 = vrot.slane %v4904_v11, 4 }
0x23a3   :  { %v4868_v8 = vsub.f32 %v4860_v15, %v4866_v7  ;;  %v4906_v44 = vadd.f32 %v4905_v35, %v4904_v11 }
0x23a4   :  { %v5124_v29 = vpop.permute.xlu1 %5123 }
0x23a5   :  { %7365 = vmatprep.mubr.msk.f32.mxu1 %vm828_vm3, %v5124_v29  ;;  %v4871_v24 = vmul.f32 1.442695, %v4868_v8  ;;  %v4907_v41 = vrot.slane %v4906_v44, 2 }
0x23a7   :  { %7705 = vpow2.f32 %v4871_v24  ;;  %v4908_v37 = vadd.f32 %v4907_v41, %v4906_v44 }
0x23a8   :  { %v5126_v0 = vpop.permute.xlu1 %5125 }
0x23a9   :  { %7366 = vmatmul.mubr.msk.f32.vlgmr.msra.gmra.mxu1 %vm828_vm3, %v5126_v0  ;;  %v4909_v62 = vrot.slane %v4908_v37, 1 }
0x23ab   :  { %v4910_v33 = vadd.f32 %v4909_v62, %v4908_v37 }
0x23ad   :  { %v4911_v49 = vmul.f32 %v4910_v33, %v9159_v20 }
0x23af   :  { %v4913_v40 = vsel %vm1025_vm4, %v4911_v49, 0.0  ;;  %v3981_v49 = vrot.slane %v9040_v9, 4 }
0x23b4   :  { %v7706_v23 = vpop.eup %7705 }
0x23b5   :  { %v4874_v27 = vadd.f32 0.0001, %v7706_v23 }
0x23b7   :  { %v4876_v26 = vmul.f32 0.25, %v4874_v27 }
0x23b9   :  { %v4912_v53 = vmul.f32 %v4910_v33, %v4876_v26 }
0x23bb   :  { %v4916_v57 = vsel %vm1025_vm4, %v4912_v53, 0.0 }
0x23d9   :  { %v9191_v63 = vpop.xlane.xlu1 %5312 }
0x23da   :  { %v5317_v24 = vmul.f32 0.5, %v9191_v63 }
0x23dc   :  { %v5319_v23 = vmul.f32 0.35355338, %v5317_v24 }
0x23dd   :  { %v9193_v47 = vpop.permute.xlu1 %5415 }
0x23e1   :  { %v5290_v56 = vpop.permute.xlu1 %5289 }
0x23e2   :  { %v5295_v14 = vsel %vm828_vm3, %v5290_v56, 0.0 }
0x23e3   :  { %5296 = vadd.xlane.f32.xlu1 %v5295_v14 }
0x23e5   :  { %v9220_v59 = vpop.permute.xlu1 %5291 }
0x2429   :  { %v7353_v25 = vpop.f32.mrf.mxu1 }
0x242a   :  { %7354 = vmatprep.subr.mxu0 %v7353_v25 }
0x242b   :  { %v5031_v38 = vpop.f32.mrf.mxu1  ;;  %7355 = vmatpush3.msra.mxu0 %v7353_v25 }
0x242c   :  { %7356 = vmatprep.subr.mxu0 %v5031_v38 }
0x242d   :  { %7357 = vmatpush3.msra.mxu0 %v5031_v38 }
0x242e   :  { %7359 = vmatmul.mubr.msk.f32.vlgmr.msra.gmra.mxu0 %vm1025_vm4, %v4876_v26  ;;  %7368 = vmatprep.subr.msk.mxu0 %vm828_vm3, %v8954_v3 }
0x242f   :  { %7369 = vmatpush3.xpose.msk.msra.mxu0 %vm828_vm3, %v8954_v3  ;;  %7372 = vmatprep.mubr.msk.f32.mxu0 %vm828_vm3, %v5207_v28  ;;  %v5308_v28 = vpop.permute.xlu0 %5307 }
0x2430   :  { %7370 = vmatprep.subr.msk.mxu0 %vm828_vm3, %v8965_v13  ;;  %v5314_v39 = vsel %vm828_vm3, %v5308_v28, 0.0 }
0x2433   :  { %7371 = vmatpush3.xpose.msk.msra.mxu0 %vm828_vm3, %v8965_v13  ;;  %v4449_v13 = vsel %vm1025_vm4, %v9117_v16, 0.0 }
0x2436   :  { %7373 = vmatmul.mubr.msk.f32.vlgmr.msra.gmra.mxu0 %vm828_vm3, %v5209_v18 }
0x2469   :  { %v9208_v45 = vpop.f32.mrf.mxu1 }
0x246a   :  { %v5326_v3 = vsel %vm1025_vm4, %v9208_v45, -inf }
0x246b   :  { %v5197_v46 = vpop.f32.mrf.mxu1 }
0x246c   :  { %v5323_v21 = vsel %vm1025_vm4, %v5197_v46, -inf  ;;  %v5297_v6 = vpop.xlane.xlu1 %5296 }
0x246d   :  { %5324 = vmax.xlane.f32.xlu1 %v5323_v21  ;;  %v5301_v55 = vmul.f32 0.5, %v5297_v6 }
0x246f   :  { %v5303_v60 = vmul.f32 0.35355338, %v5301_v55 }
0x2471   :  { %5327 = vmax.xlane.f32.xlu1 %v5326_v3  ;;  %v5321_v52 = vsub.f32 %v5197_v46, %v5303_v60 }
0x2475   :  { %4450 = vadd.xlane.f32.xlu1 %v4449_v13 }
0x2479   :  { %4453 = vadd.xlane.f32.xlu1 %v4452_v22 }
0x247d   :  { %4914 = vadd.xlane.f32.xlu1 %v4913_v40 }
0x2481   :  { %4917 = vadd.xlane.f32.xlu1 %v4916_v57  ;;  %v3982_v57 = vadd.f32 %v3981_v49, %v9040_v9 }
0x2483   :  { %v3983_v55 = vrot.slane %v3982_v57, 2 }
0x24ee   :  { %v9222_v16 = vpop.f32.mrf.mxu0 }
0x24f0   :  { %v9224_v17 = vpop.f32.mrf.mxu0 }
0x24f6   :  { %v7374_v50 = vpop.f32.mrf.mxu0  ;;  %v5325_v20 = vpop.xlane.xlu1 %5324 }
0x24f7   :  { %v5329_v36 = vsub.f32 %v5321_v52, %v5325_v20  ;;  %v5342_v4 = vsel %vm1025_vm4, %v7374_v50, -inf  ;;  %v3984_v52 = vadd.f32 %v3983_v55, %v3982_v57 }
0x24f8   :  { %v5280_v54 = vpop.f32.mrf.mxu0 }
0x24f9   :  { %v5331_v11 = vmul.f32 1.442695, %v5329_v36  ;;  %v5341_v5 = vsel %vm1025_vm4, %v5280_v54, -inf  ;;  %v5339_v27 = vsub.f32 %v5280_v54, %v5319_v23  ;;  %v3985_v20 = vrot.slane %v3984_v52, 1 }
0x24fa   :  { %v5343_v7 = vmax.f32 %v5341_v5, %v5342_v4  ;;  %v5298_v36 = vsel %vm828_vm3, %v9220_v59, 0.0 }
0x24fb   :  { %7707 = vpow2.f32 %v5331_v11  ;;  %v3986_v4 = vadd.f32 %v3985_v20, %v3984_v52  ;;  %v5328_v11 = vpop.xlane.xlu1 %5327 }
0x24fc   :  { %5344 = vmax.xlane.f32.xlu0 %v5343_v7 }
0x24fd   :  { %v3987_v7 = vmul.f32 %v3986_v4, %v9048_v48 }
0x24ff   :  { %v3989_v9 = vsel %vm1025_vm4, %v3987_v7, 0.0  ;;  %v4451_v28 = vpop.xlane.xlu1 %4450 }
0x2500   :  { %5315 = vadd.xlane.f32.xlu0 %v5314_v39 }
0x2508   :  { %v7708_v12 = vpop.eup %7707 }
0x2509   :  { %v5335_v32 = vadd.f32 0.0001, %v7708_v12 }
0x250b   :  { %v5337_v34 = vmul.f32 0.25, %v5335_v32 }
0x250d   :  { %7386 = vmatprep.mubr.msk.f32.mxu0 %vm1025_vm4, %v5337_v34 }
0x2516   :  { %5417 = vrot.lane.b32.xlu0 %v8997_v43, %s8147_s2 }
0x2585   :  { %v5345_v19 = vpop.xlane.xlu0 %5344 }
0x2586   :  { %v5346_v18 = vrot.slane %v5345_v19, 4 }
0x2588   :  { %v5347_v29 = vmax.f32 %v5345_v19, %v5346_v18 }
0x2589   :  { %v5316_v0 = vpop.xlane.xlu0 %5315 }
0x258a   :  { %v5348_v56 = vrot.slane %v5347_v29, 2  ;;  %v5318_v8 = vmul.f32 0.5, %v5316_v0 }
0x258c   :  { %v5349_v14 = vmax.f32 %v5347_v29, %v5348_v56  ;;  %v5320_v43 = vmul.f32 0.35355338, %v5318_v8  ;;  %v3988_v8 = vmul.f32 %v3986_v4, %v9055_v30 }
0x258d   :  { %v5418_v61 = vpop.permute.xlu0 %5417 }
0x258e   :  { %7375 = vmatprep.subr.mxu1 %v5418_v61  ;;  %v5350_v51 = vrot.slane %v5349_v14, 1  ;;  %v5340_v25 = vsub.f32 %v7374_v50, %v5320_v43  ;;  %v3992_v43 = vsel %vm1025_vm4, %v3988_v8, 0.0 }
0x258f   :  { %7376 = vmatpush3.msra.mxu1 %v5418_v61 }
0x2590   :  { %7377 = vmatprep.subr.mxu1 %v9193_v47  ;;  %v5351_v15 = vmax.f32 %v5349_v14, %v5350_v51 }
0x2591   :  { %7378 = vmatpush3.msra.mxu1 %v9193_v47 }
0x2592   :  { %7528 = vpush %v5351_v15 }
0x25c3   :  { %s7529_s2 = spop %7528 }
0x25c4   :  { %v5353_v38 = vstv %s7529_s2 }
0x25c5   :  { %v5354_v26 = vsub.f32 %v5339_v27, %v5353_v38  ;;  %v5355_v35 = vsub.f32 %v5340_v25, %v5353_v38 }
0x25c7   :  { %v5356_v44 = vmul.f32 1.442695, %v5354_v26  ;;  %v5358_v41 = vmul.f32 1.442695, %v5355_v35 }
0x25c9   :  { %7709 = vpow2.f32 %v5356_v44 }
0x25ca   :  { %7711 = vpow2.f32 %v5358_v41  ;;  %v5617_v41 = vld [vmem:[%s9460_s24 + $0x10] sm:$0xff] }
0x25cb   :  { %7713 = vrcp.f32 %v4451_v28 }
0x25d6   :  { %v7710_v46 = vpop.eup %7709 }
0x25d7   :  { %v7712_v21 = vpop.eup %7711  ;;  %v5360_v37 = vadd.f32 0.0001, %v7710_v46  ;;  %v5616_v46 = vld [vmem:[%s9460_s24 + $0x8] sm:$0xff] }
0x25d8   :  { %v5361_v47 = vadd.f32 0.0001, %v7712_v21  ;;  %v7714_v39 = vpop.eup %7713  ;;  %v5615_v21 = vld [vmem:[%s9460_s24] sm:$0xff] }
0x25d9   :  { %v5362_v3 = vmul.f32 0.25, %v5360_v37  ;;  %v4659_v12 = vmul.f32 %v7714_v39, %v9152_v1  ;;  %v4454_v1 = vpop.xlane.xlu1 %4453 }
0x25da   :  { %v5363_v62 = vmul.f32 0.25, %v5361_v47 }
0x25db   :  { %5383 = vxpose.xlu0.b32.start [1/2] (short) (narrow) %v5362_v3, 16  ;;  %v5364_v63 = vsel %vm1025_vm4, %v5362_v3, 0.0 }
0x25dc   :  { %v5365_v13 = vsel %vm1025_vm4, %v5363_v62, 0.0 }
0x25dd   :  { %v5366_v33 = vadd.f32 %v5365_v13, %v5364_v63  ;;  %v4915_v24 = vpop.xlane.xlu1 %4914 }
0x25df   :  { %5384 = vxpose.xlu0.b32.end [2/2] (short) (narrow) %v5363_v62, 16  ;;  %v5367_v22 = vrot.slane %v5366_v33, 4 }
0x25e1   :  { %v5368_v40 = vadd.f32 %v5367_v22, %v5366_v33 }
0x25e3   :  { %v5369_v53 = vrot.slane %v5368_v40, 2 }
0x25e5   :  { %v5370_v6 = vadd.f32 %v5369_v53, %v5368_v40 }
0x25e7   :  { %v5371_v60 = vrot.slane %v5370_v6, 1 }
0x25e9   :  { %v5372_v50 = vadd.f32 %v5371_v60, %v5370_v6 }
0x25eb   :  { %v5373_v54 = vmul.f32 %v5372_v50, %v5337_v34 }
0x25ed   :  { %v5375_v5 = vsel %vm1025_vm4, %v5373_v54, 0.0 }
0x260c   :  { %5299 = vadd.xlane.f32.xlu0 %v5298_v36 }
0x2610   :  { %5376 = vadd.xlane.f32.xlu0 %v5375_v5 }
0x2614   :  { %3990 = vadd.xlane.f32.xlu0 %v3989_v9 }
0x262a   :  { %5587 = vrot.lane.b32.xlu0 %v4659_v12, %s8148_s6 }
0x2657   :  { %v5399_v59 = vpop.trf.xlu0 }
0x2658   :  { %7379 = vmatprep.mubr.msk.f32.mxu1 %vm1025_vm4, %v5399_v59 }
0x265b   :  { %v5400_v32 = vpop.trf.xlu0 }
0x265c   :  { %7380 = vmatmul.mubr.msk.f32.vlgmr.msra.gmra.mxu1 %vm1025_vm4, %v5400_v32 }
0x2695   :  { %v5300_v34 = vpop.xlane.xlu0 %5299 }
0x2696   :  { %v5302_v19 = vmul.f32 0.5, %v5300_v34 }
0x2698   :  { %v5304_v48 = vmul.f32 0.35355338, %v5302_v19 }
0x269a   :  { %v5322_v18 = vsub.f32 %v9208_v45, %v5304_v48  ;;  %v4918_v45 = vpop.xlane.xlu1 %4917 }
0x269c   :  { %v5330_v29 = vsub.f32 %v5322_v18, %v5328_v11 }
0x269e   :  { %v5333_v0 = vmul.f32 1.442695, %v5330_v29 }
0x26a0   :  { %7715 = vpow2.f32 %v5333_v0 }
0x26a1   :  { %7717 = vrcp.f32 %v4454_v1 }
0x26a2   :  { %7719 = vrcp.f32 %v4915_v24 }
0x26a3   :  { %7721 = vrcp.f32 %v4918_v45 }
0x26ad   :  { %v7716_v56 = vpop.eup %7715 }
0x26ae   :  { %v5336_v14 = vadd.f32 0.0001, %v7716_v56  ;;  %v7718_v23 = vpop.eup %7717 }
0x26af   :  { %v4660_v27 = vmul.f32 %v7718_v23, %v9150_v31  ;;  %v7720_v25 = vpop.eup %7719  ;;  %v5618_v31 = vld [vmem:[%s9460_s24 + $0x18] sm:$0xff] }
0x26b0   :  { %v5338_v61 = vmul.f32 0.25, %v5336_v14  ;;  %v5121_v38 = vmul.f32 %v7720_v25, %v9224_v17  ;;  %v7722_v30 = vpop.eup %7721  ;;  %7389 = vmatprep.subr.mxu1 %v5618_v31 }
0x26b1   :  { %v5122_v26 = vmul.f32 %v7722_v30, %v9222_v16  ;;  %7390 = vmatpush3.msra.mxu1 %v5618_v31  ;;  %v5377_v16 = vpop.xlane.xlu0 %5376  ;;  %v6663_v31 = vld [vmem:[#allocation8] ss:$0 sm:$0xff] }
0x26b2   :  { %v5374_v51 = vmul.f32 %v5372_v50, %v5338_v61  ;;  %7391 = vmatprep.subr.mxu1 %v5617_v41 }
0x26b3   :  { %7392 = vmatpush3.msra.mxu1 %v5617_v41 }
0x26b4   :  { %v5378_v15 = vsel %vm1025_vm4, %v5374_v51, 0.0  ;;  %7393 = vmatprep.subr.mxu1 %v5616_v46 }
0x26b5   :  { %5379 = vadd.xlane.f32.xlu1 %v5378_v15  ;;  %7394 = vmatpush3.msra.mxu1 %v5616_v46  ;;  %v3991_v22 = vpop.xlane.xlu0 %3990 }
0x26b6   :  { %7395 = vmatprep.subr.mxu1 %v5615_v21 }
0x26b7   :  { %7396 = vmatpush3.msra.mxu1 %v5615_v21 }
0x26b9   :  { %3993 = vadd.xlane.f32.xlu1 %v3992_v43  ;;  %v5588_v52 = vpop.permute.xlu0 %5587 }
0x26ca   :  { %5589 = vrot.lane.b32.xlu1 %v4660_v27, %s8148_s6  ;;  %s9461_s6 = sld [smem:[#allocation68_spill]] }
0x26ce   :  { %5595 = vrot.lane.b32.xlu1 %v5121_v38, %s8149_s3 }
0x26d0   :  { %v5756_v15 = vld [vmem:[%s9461_s6 + $0x18] sm:$0xff]  ;;  %v5755_v8 = vld [vmem:[%s9461_s6 + $0x10] sm:$0xff]  ;;  %v5754_v24 = vld [vmem:[%s9461_s6 + $0x8] sm:$0xff] }
0x26d1   :  { %v5753_v43 = vld [vmem:[%s9461_s6] sm:$0xff] }
0x26d2   :  { %5597 = vrot.lane.b32.xlu1 %v5122_v26, %s8149_s3  ;;  %s9462_s3 = sld [smem:[#allocation69_spill]] }
0x271c   :  { %v7381_v35 = vpop.f32.mrf.mxu1 }
0x271d   :  { %7382 = vmatprep.subr.mxu0 %v7381_v35 }
0x271e   :  { %v5493_v44 = vpop.f32.mrf.mxu1  ;;  %7383 = vmatpush3.msra.mxu0 %v7381_v35  ;;  %v6662_v35 = vld [vmem:[#allocation7] ss:$0 sm:$0xff] }
0x271f   :  { %7384 = vmatprep.subr.mxu0 %v5493_v44 }
0x2720   :  { %7385 = vmatpush3.msra.mxu0 %v5493_v44 }
0x2721   :  { %7387 = vmatmul.mubr.msk.f32.vlgmr.msra.gmra.mxu0 %vm1025_vm4, %v5338_v61  ;;  %7400 = vmatprep.subr.mxu0 %v5756_v15 }
0x2722   :  { %7401 = vmatpush3.msra.mxu0 %v5756_v15  ;;  %v5965_v15 = vld [vmem:[%s9463_s7 + $0x10] sm:$0xff] }
0x2723   :  { %7402 = vmatprep.subr.mxu0 %v5755_v8 }
0x2724   :  { %7403 = vmatpush3.msra.mxu0 %v5755_v8  ;;  %v5964_v8 = vld [vmem:[%s9463_s7 + $0x8] sm:$0xff] }
0x2725   :  { %7404 = vmatprep.subr.mxu0 %v5754_v24 }
0x2726   :  { %7405 = vmatpush3.msra.mxu0 %v5754_v24  ;;  %v5963_v24 = vld [vmem:[%s9463_s7] sm:$0xff] }
0x2727   :  { %7406 = vmatprep.subr.mxu0 %v5753_v43 }
0x2728   :  { %7407 = vmatpush3.msra.mxu0 %v5753_v43  ;;  %v6667_v43 = vld [vmem:[#allocation13] ss:$0 sm:$0xff] }
0x273e   :  { %v5380_v17 = vpop.xlane.xlu1 %5379 }
0x273f   :  { %7723 = vrcp.f32 %v5380_v17 }
0x2740   :  { %7725 = vrcp.f32 %v5377_v16 }
0x2742   :  { %v3994_v33 = vpop.xlane.xlu1 %3993 }
0x2743   :  { %7727 = vrcp.f32 %v3994_v33  ;;  %v5873_v33 = vld [vmem:[%s9462_s3 + $0x50] sm:$0xff] }
0x2744   :  { %7729 = vrcp.f32 %v3991_v22  ;;  %v5872_v22 = vld [vmem:[%s9462_s3 + $0x48] sm:$0xff] }
0x2746   :  { %v5590_v49 = vpop.permute.xlu1 %5589 }
0x274a   :  { %v5596_v40 = vpop.permute.xlu1 %5595 }
0x274c   :  { %v7724_v37 = vpop.eup %7723 }
0x274d   :  { %v7726_v62 = vpop.eup %7725 }
0x274e   :  { %v5598_v60 = vpop.permute.xlu1 %5597 }
0x2750   :  { %v7728_v53 = vpop.eup %7727 }
0x2751   :  { %v7730_v57 = vpop.eup %7729  ;;  %v4192_v6 = vmul.f32 %v7728_v53, %v9069_v2  ;;  %v6659_v2 = vld [vmem:[#allocation16] ss:$0 sm:$0xff] }
0x2752   :  { %v4191_v55 = vmul.f32 %v7730_v57, %v9071_v10  ;;  %v5869_v53 = vld [vmem:[%s9462_s3 + $0x30] sm:$0xff]  ;;  %v5868_v57 = vld [vmem:[%s9462_s3 + $0x28] sm:$0xff] }
0x2753   :  { %v5610_v50 = vsel %vm828_vm3, %v4192_v6, %v5590_v49  ;;  %v5871_v49 = vld [vmem:[%s9462_s3 + $0x40] sm:$0xff] }
0x2754   :  { %v5609_v20 = vsel %vm828_vm3, %v4191_v55, %v5588_v52  ;;  %v5612_v11 = vsel %vm1025_vm4, %v5610_v50, %v5598_v60  ;;  %v5867_v6 = vld [vmem:[%s9462_s3 + $0x20] sm:$0xff]  ;;  %v5866_v55 = vld [vmem:[%s9462_s3 + $0x18] sm:$0xff]  ;;  %v5865_v60 = vld [vmem:[%s9462_s3 + $0x10] sm:$0xff] }
0x2755   :  { %v5611_v54 = vsel %vm1025_vm4, %v5609_v20, %v5596_v40  ;;  %v5870_v40 = vld [vmem:[%s9462_s3 + $0x38] sm:$0xff]  ;;  %v5864_v52 = vld [vmem:[%s9462_s3 + $0x8] sm:$0xff]  ;;  %v5863_v50 = vld [vmem:[%s9462_s3] sm:$0xff] }
0x2756   :  { %v6664_v20 = vld [vmem:[#allocation11] ss:$0 sm:$0xff] }
0x27e1   :  { %v7388_v47 = vpop.f32.mrf.mxu0 }
0x27e2   :  { %v5584_v3 = vmul.f32 %v7724_v37, %v7388_v47  ;;  %v5878_v47 = vld [vmem:[%s9462_s3 + $0x78] sm:$0xff] }
0x27e3   :  { %v5574_v63 = vpop.f32.mrf.mxu0  ;;  %7411 = vmatprep.subr.mxu1 %v5878_v47 }
0x27e4   :  { %v5583_v13 = vmul.f32 %v7726_v62, %v5574_v63  ;;  %5605 = vrot.lane.b32.xlu1 %v5584_v3, %s8150_s12  ;;  %v5877_v3 = vld [vmem:[%s9462_s3 + $0x70] sm:$0xff]  ;;  %v5876_v62 = vld [vmem:[%s9462_s3 + $0x68] sm:$0xff]  ;;  %v5875_v63 = vld [vmem:[%s9462_s3 + $0x60] sm:$0xff] }
0x27e6   :  { %5603 = vrot.lane.b32.xlu0 %v5583_v13, %s8150_s12  ;;  %v5874_v13 = vld [vmem:[%s9462_s3 + $0x58] sm:$0xff]  ;;  %s9464_s12 = sld [smem:[#allocation63_spill]] }
0x2856   :  { %v5606_v36 = vpop.permute.xlu1 %5605 }
0x2857   :  { %v5614_v7 = vsel %vm2702_vm5, %v5612_v11, %v5606_v36 }
0x2858   :  { %v5604_v4 = vpop.permute.xlu0 %5603 }
0x2859   :  { %v5613_v5 = vsel %vm2702_vm5, %v5611_v54, %v5604_v4 }
0x285a   :  { %7397 = vmatprep.mubr.msk.f32.mxu1 %vm516_vm2, %v5613_v5 }
0x285b   :  { %7398 = vmatmul.mubr.msk.f32.vlgmr.msra.gmra.mxu1 %vm516_vm2, %v5614_v7 }
0x285c   :  { %7412 = vmatpush3.msra.mxu1 %v5878_v47 }
0x285d   :  { %7413 = vmatprep.subr.mxu1 %v5877_v3 }
0x285e   :  { %7414 = vmatpush3.msra.mxu1 %v5877_v3 }
0x285f   :  { %7415 = vmatprep.subr.mxu1 %v5876_v62 }
0x2860   :  { %7416 = vmatpush3.msra.mxu1 %v5876_v62 }
0x2861   :  { %7417 = vmatprep.subr.mxu1 %v5875_v63 }
0x2862   :  { %7418 = vmatpush3.msra.mxu1 %v5875_v63 }
0x2863   :  { %7419 = vmatprep.subr.mxu1 %v5874_v13 }
0x2864   :  { %7420 = vmatpush3.msra.mxu1 %v5874_v13 }
0x2865   :  { %7421 = vmatprep.subr.mxu1 %v5873_v33 }
0x2866   :  { %7422 = vmatpush3.msra.mxu1 %v5873_v33  ;;  %v6104_v33 = vld [vmem:[%s9464_s12 + $0x18] sm:$0xff] }
0x2867   :  { %7423 = vmatprep.subr.mxu1 %v5872_v22 }
0x2868   :  { %7424 = vmatpush3.msra.mxu1 %v5872_v22  ;;  %v6103_v22 = vld [vmem:[%s9464_s12 + $0x10] sm:$0xff] }
0x2869   :  { %7425 = vmatprep.subr.mxu1 %v5871_v49 }
0x286a   :  { %7426 = vmatpush3.msra.mxu1 %v5871_v49  ;;  %v6102_v49 = vld [vmem:[%s9464_s12 + $0x8] sm:$0xff] }
0x286b   :  { %7427 = vmatprep.subr.mxu1 %v5870_v40 }
0x286c   :  { %7428 = vmatpush3.msra.mxu1 %v5870_v40  ;;  %v6101_v40 = vld [vmem:[%s9464_s12] sm:$0xff] }
0x286d   :  { %7429 = vmatprep.subr.mxu1 %v5869_v53 }
0x286e   :  { %7430 = vmatpush3.msra.mxu1 %v5869_v53  ;;  %v6210_v53 = vld [vmem:[%s9465_s15 + $0x78] sm:$0xff] }
0x286f   :  { %7431 = vmatprep.subr.mxu1 %v5868_v57 }
0x2870   :  { %7432 = vmatpush3.msra.mxu1 %v5868_v57 }
0x2871   :  { %7433 = vmatprep.subr.mxu1 %v5867_v6 }
0x2872   :  { %7434 = vmatpush3.msra.mxu1 %v5867_v6 }
0x2873   :  { %7435 = vmatprep.subr.mxu1 %v5866_v55 }
0x2874   :  { %7436 = vmatpush3.msra.mxu1 %v5866_v55 }
0x2875   :  { %7437 = vmatprep.subr.mxu1 %v5865_v60 }
0x2876   :  { %7438 = vmatpush3.msra.mxu1 %v5865_v60 }
0x2877   :  { %7439 = vmatprep.subr.mxu1 %v5864_v52 }
0x2878   :  { %7440 = vmatpush3.msra.mxu1 %v5864_v52 }
0x2879   :  { %7441 = vmatprep.subr.mxu1 %v5863_v50 }
0x287a   :  { %7442 = vmatpush3.msra.mxu1 %v5863_v50 }
0x291b   :  { %v7399_v10 = vpop.f32.mrf.mxu1 }
0x291c   :  { %v5704_v9 = vadd.f32 %v7399_v10, %v6659_v2 }
0x291d   :  { %v5698_v28 = vpop.f32.mrf.mxu1 }
0x291e   :  { %v9276_v39 = vadd.f32 %v5704_v9, %v8923_v58  ;;  %v5699_v12 = vadd.f32 %v6659_v2, %v5698_v28 }
0x2920   :  { %v9279_v59 = vadd.f32 %v5699_v12, %v8927_v42  ;;  %v5712_v32 = vsel %vm516_vm2, %v9276_v39, 0.0 }
0x2921   :  { %5713 = vadd.xlane.f32.xlu1 %v5712_v32 }
0x2922   :  { %v5709_v34 = vsel %vm516_vm2, %v9279_v59, 0.0 }
0x2923   :  { %5710 = vadd.xlane.f32.xlu0 %v5709_v34 }
0x29aa   :  { %v5714_v19 = vpop.xlane.xlu1 %5713 }
0x29ab   :  { %v5716_v48 = vmul.f32 0.03125, %v5714_v19 }
0x29ac   :  { %v5711_v18 = vpop.xlane.xlu0 %5710 }
0x29ad   :  { %v5715_v29 = vmul.f32 0.03125, %v5711_v18  ;;  %v5718_v0 = vsub.f32 %v9276_v39, %v5716_v48 }
0x29af   :  { %v5717_v56 = vsub.f32 %v9279_v59, %v5715_v29  ;;  %v5720_v1 = vmul.f32 %v5718_v0, %v5718_v0 }
0x29b1   :  { %v5719_v14 = vmul.f32 %v5717_v56, %v5717_v56  ;;  %v5724_v51 = vsel %vm516_vm2, %v5720_v1, 0.0 }
0x29b3   :  { %v5721_v61 = vsel %vm516_vm2, %v5719_v14, 0.0 }
0x29b4   :  { %5722 = vadd.xlane.f32.xlu0 %v5721_v61 }
0x29b8   :  { %5725 = vadd.xlane.f32.xlu0 %v5724_v51  ;;  %v5966_v51 = vld [vmem:[%s9463_s7 + $0x18] sm:$0xff] }
0x29b9   :  { %7446 = vmatprep.subr.mxu0 %v5966_v51 }
0x2a3d   :  { %v5723_v45 = vpop.xlane.xlu0 %5722 }
0x2a3e   :  { %v5727_v23 = vmul.f32 0.03125, %v5723_v45 }
0x2a40   :  { %v5729_v27 = vadd.f32 1e-05, %v5727_v23 }
0x2a41   :  { %v5726_v25 = vpop.xlane.xlu0 %5725 }
0x2a42   :  { %7731 = vrsqrt.f32 %v5729_v27  ;;  %v5728_v38 = vmul.f32 0.03125, %v5726_v25 }
0x2a44   :  { %v5730_v30 = vadd.f32 1e-05, %v5728_v38 }
0x2a46   :  { %7733 = vrsqrt.f32 %v5730_v30 }
0x2a4f   :  { %v7732_v26 = vpop.eup %7731 }
0x2a50   :  { %v5733_v44 = vmul.f32 %v7732_v26, %v5717_v56  ;;  %v6668_v26 = vld [vmem:[#allocation10] ss:$0 sm:$0xff] }
0x2a52   :  { %v5742_v41 = vmul.f32 %v6662_v35, %v5733_v44 }
0x2a53   :  { %v7734_v17 = vpop.eup %7733 }
0x2a54   :  { %v5734_v16 = vmul.f32 %v7734_v17, %v5718_v0  ;;  %v5751_v46 = vadd.f32 %v6663_v31, %v5742_v41 }
0x2a56   :  { %v5743_v21 = vmul.f32 %v6662_v35, %v5734_v16  ;;  %7408 = vmatprep.mubr.msk.f32.mxu0 %vm516_vm2, %v5751_v46 }
0x2a58   :  { %v5752_v37 = vadd.f32 %v6663_v31, %v5743_v21 }
0x2a5a   :  { %7409 = vmatmul.mubr.msk.f32.vlgmr.msra.gmra.mxu0 %vm516_vm2, %v5752_v37 }
0x2a5b   :  { %7447 = vmatpush3.msra.mxu0 %v5966_v51  ;;  %v6196_v51 = vld [vmem:[%s9465_s15 + $0x8] sm:$0xff] }
0x2a5c   :  { %7448 = vmatprep.subr.mxu0 %v5965_v15 }
0x2a5d   :  { %7449 = vmatpush3.msra.mxu0 %v5965_v15  ;;  %v6195_v15 = vld [vmem:[%s9465_s15] sm:$0xff] }
0x2a5e   :  { %7450 = vmatprep.subr.mxu0 %v5964_v8 }
0x2a5f   :  { %7451 = vmatpush3.msra.mxu0 %v5964_v8  ;;  %v6673_v8 = vld [vmem:[%s9466_s16] ss:$0 sm:$0xff] }
0x2a60   :  { %7452 = vmatprep.subr.mxu0 %v5963_v24 }
0x2a61   :  { %7453 = vmatpush3.msra.mxu0 %v5963_v24 }
0x2a62   :  { %7457 = vmatprep.subr.mxu0 %v6104_v33 }
0x2b1a   :  { %v7410_v36 = vpop.f32.mrf.mxu0 }
0x2b1b   :  { %v5842_v54 = vadd.f32 %v7410_v36, %v6664_v20 }
0x2b1c   :  { %v5836_v4 = vpop.f32.mrf.mxu0 }
0x2b1d   :  { %v5846_v11 = vmul.f32 %v5842_v54, %v5842_v54  ;;  %v5837_v5 = vadd.f32 %v6664_v20, %v5836_v4 }
0x2b1f   :  { %v5848_v7 = vmul.f32 %v5846_v11, %v5842_v54  ;;  %v5845_v2 = vmul.f32 %v5837_v5, %v5837_v5 }
0x2b21   :  { %v5850_v10 = vmul.f32 0.044715, %v5848_v7  ;;  %v5847_v9 = vmul.f32 %v5845_v2, %v5837_v5  ;;  %v6672_v2 = vld [vmem:[#allocation22] ss:$0 sm:$0xff] }
0x2b23   :  { %v5852_v28 = vadd.f32 %v5850_v10, %v5842_v54  ;;  %v5849_v12 = vmul.f32 0.044715, %v5847_v9 }
0x2b25   :  { %v5854_v32 = vmul.f32 0.7978846, %v5852_v28  ;;  %v5851_v34 = vadd.f32 %v5849_v12, %v5837_v5  ;;  %v6209_v28 = vld [vmem:[%s9465_s15 + $0x70] sm:$0xff]  ;;  %v6208_v12 = vld [vmem:[%s9465_s15 + $0x68] sm:$0xff] }
0x2b27   :  { %7735 = vtanh.f32 %v5854_v32  ;;  %v5853_v19 = vmul.f32 0.7978846, %v5851_v34  ;;  %v6207_v32 = vld [vmem:[%s9465_s15 + $0x60] sm:$0xff]  ;;  %v6206_v34 = vld [vmem:[%s9465_s15 + $0x58] sm:$0xff] }
0x2b29   :  { %7737 = vtanh.f32 %v5853_v19  ;;  %v6205_v19 = vld [vmem:[%s9465_s15 + $0x50] sm:$0xff] }
0x2b34   :  { %v7736_v48 = vpop.eup %7735 }
0x2b35   :  { %v5858_v18 = vadd.f32 1.0, %v7736_v48  ;;  %v6204_v48 = vld [vmem:[%s9465_s15 + $0x48] sm:$0xff] }
0x2b36   :  { %v7738_v29 = vpop.eup %7737 }
0x2b37   :  { %v5857_v0 = vadd.f32 1.0, %v7738_v29  ;;  %v5860_v56 = vmul.f32 0.5, %v5858_v18  ;;  %v6203_v18 = vld [vmem:[%s9465_s15 + $0x40] sm:$0xff]  ;;  %v6202_v29 = vld [vmem:[%s9465_s15 + $0x38] sm:$0xff] }
0x2b39   :  { %v5859_v14 = vmul.f32 0.5, %v5857_v0  ;;  %v5862_v1 = vmul.f32 %v5860_v56, %v5842_v54  ;;  %v6671_v54 = vld [vmem:[#allocation20] ss:$0 sm:$0xff]  ;;  %v6200_v56 = vld [vmem:[%s9465_s15 + $0x28] sm:$0xff] }
0x2b3a   :  { %v6201_v0 = vld [vmem:[%s9465_s15 + $0x30] sm:$0xff] }
0x2b3b   :  { %v5861_v61 = vmul.f32 %v5859_v14, %v5837_v5  ;;  %v6199_v14 = vld [vmem:[%s9465_s15 + $0x20] sm:$0xff] }
0x2b3d   :  { %7443 = vmatprep.mubr.f32.mxu1 %v5861_v61  ;;  %v6198_v61 = vld [vmem:[%s9465_s15 + $0x18] sm:$0xff] }
0x2b3e   :  { %7444 = vmatmul.mubr.f32.vlgmr.msra.gmra.mxu1 %v5862_v1  ;;  %v6197_v1 = vld [vmem:[%s9465_s15 + $0x10] sm:$0xff] }
0x2bfe   :  { %v7445_v45 = vpop.f32.mrf.mxu1 }
0x2bff   :  { %v5958_v23 = vadd.f32 %v7445_v45, %v6667_v43 }
0x2c00   :  { %v5952_v27 = vpop.f32.mrf.mxu1 }
0x2c01   :  { %v5953_v25 = vadd.f32 %v6667_v43, %v5952_v27  ;;  %v5962_v30 = vadd.f32 %v5958_v23, %v9276_v39 }
0x2c03   :  { %v5961_v38 = vadd.f32 %v5953_v25, %v9279_v59 }
0x2c05   :  { %7454 = vmatprep.mubr.msk.f32.mxu0 %vm516_vm2, %v5961_v38  ;;  %v6676_v38 = vld [vmem:[%s9467_s14] ss:$0 sm:$0xff] }
0x2c06   :  { %7455 = vmatmul.mubr.msk.f32.vlgmr.msra.gmra.mxu0 %vm516_vm2, %v5962_v30 }
0x2c07   :  { %7458 = vmatpush3.msra.mxu0 %v6104_v33  ;;  %v6340_v33 = vld [vmem:[%s9468_s10 + $0x8] sm:$0xff] }
0x2c08   :  { %7459 = vmatprep.subr.mxu0 %v6103_v22 }
0x2c09   :  { %7460 = vmatpush3.msra.mxu0 %v6103_v22  ;;  %v6339_v22 = vld [vmem:[%s9468_s10] sm:$0xff] }
0x2c0a   :  { %7461 = vmatprep.subr.mxu0 %v6102_v49 }
0x2c0b   :  { %7462 = vmatpush3.msra.mxu0 %v6102_v49 }
0x2c0c   :  { %7463 = vmatprep.subr.mxu0 %v6101_v40 }
0x2c0d   :  { %7464 = vmatpush3.msra.mxu0 %v6101_v40 }
0x2c0e   :  { %7468 = vmatprep.subr.mxu0 %v6210_v53 }
0x2cc6   :  { %v7456_v35 = vpop.f32.mrf.mxu0 }
0x2cc7   :  { %v6052_v44 = vadd.f32 %v7456_v35, %v6668_v26 }
0x2cc8   :  { %v6046_v31 = vpop.f32.mrf.mxu0 }
0x2cc9   :  { %v6056_v41 = vadd.f32 %v6052_v44, %v8923_v58  ;;  %v6047_v17 = vadd.f32 %v6668_v26, %v6046_v31 }
0x2ccb   :  { %v6055_v16 = vadd.f32 %v6047_v17, %v8927_v42  ;;  %v6060_v46 = vsel %vm516_vm2, %v6056_v41, 0.0 }
0x2ccc   :  { %6061 = vadd.xlane.f32.xlu1 %v6060_v46 }
0x2ccd   :  { %v6057_v39 = vsel %vm516_vm2, %v6055_v16, 0.0 }
0x2cce   :  { %6058 = vadd.xlane.f32.xlu0 %v6057_v39 }
0x2d55   :  { %v6062_v59 = vpop.xlane.xlu1 %6061 }
0x2d56   :  { %v6064_v21 = vmul.f32 0.03125, %v6062_v59 }
0x2d57   :  { %v6059_v37 = vpop.xlane.xlu0 %6058 }
0x2d58   :  { %v6066_v47 = vsub.f32 %v6056_v41, %v6064_v21  ;;  %v6063_v3 = vmul.f32 0.03125, %v6059_v37 }
0x2d5a   :  { %v6065_v62 = vsub.f32 %v6055_v16, %v6063_v3  ;;  %v6068_v58 = vmul.f32 %v6066_v47, %v6066_v47 }
0x2d5c   :  { %v6072_v63 = vsel %vm516_vm2, %v6068_v58, 0.0  ;;  %v6067_v42 = vmul.f32 %v6065_v62, %v6065_v62 }
0x2d5d   :  { %6073 = vadd.xlane.f32.xlu1 %v6072_v63 }
0x2d5e   :  { %v6069_v13 = vsel %vm516_vm2, %v6067_v42, 0.0  ;;  %v6342_v42 = vld [vmem:[%s9468_s10 + $0x18] sm:$0xff] }
0x2d5f   :  { %6070 = vadd.xlane.f32.xlu0 %v6069_v13  ;;  %v6341_v13 = vld [vmem:[%s9468_s10 + $0x10] sm:$0xff]  ;;  %7503 = vmatprep.subr.mxu1 %v6342_v42 }
0x2d60   :  { %7504 = vmatpush3.msra.mxu1 %v6342_v42 }
0x2d61   :  { %7505 = vmatprep.subr.mxu1 %v6341_v13 }
0x2d62   :  { %7506 = vmatpush3.msra.mxu1 %v6341_v13 }
0x2d63   :  { %7507 = vmatprep.subr.mxu1 %v6340_v33 }
0x2d64   :  { %7508 = vmatpush3.msra.mxu1 %v6340_v33 }
0x2d65   :  { %7509 = vmatprep.subr.mxu1 %v6339_v22 }
0x2d66   :  { %7510 = vmatpush3.msra.mxu1 %v6339_v22 }
0x2de6   :  { %v6074_v57 = vpop.xlane.xlu1 %6073 }
0x2de7   :  { %v6076_v6 = vmul.f32 0.03125, %v6074_v57 }
0x2de8   :  { %v6071_v55 = vpop.xlane.xlu0 %6070 }
0x2de9   :  { %v6078_v60 = vadd.f32 1e-05, %v6076_v6  ;;  %v6075_v52 = vmul.f32 0.03125, %v6071_v55 }
0x2deb   :  { %7739 = vrsqrt.f32 %v6078_v60  ;;  %v6077_v50 = vadd.f32 1e-05, %v6075_v52 }
0x2ded   :  { %7741 = vrsqrt.f32 %v6077_v50  ;;  %v6677_v50 = vld [vmem:[#allocation23] ss:$0 sm:$0xff] }
0x2df8   :  { %v7740_v20 = vpop.eup %7739 }
0x2df9   :  { %v6082_v36 = vmul.f32 %v7740_v20, %v6066_v47 }
0x2dfa   :  { %v7742_v4 = vpop.eup %7741 }
0x2dfb   :  { %v6081_v11 = vmul.f32 %v7742_v4, %v6065_v62  ;;  %v6091_v5 = vmul.f32 %v6671_v54, %v6082_v36 }
0x2dfd   :  { %v6090_v7 = vmul.f32 %v6671_v54, %v6081_v11  ;;  %v6100_v9 = vadd.f32 %v6672_v2, %v6091_v5  ;;  %v6678_v11 = vld [vmem:[#allocation25] ss:$0 sm:$0xff] }
0x2dff   :  { %v9330_v10 = vadd.f32 %v6672_v2, %v6090_v7  ;;  %v6679_v2 = vld [vmem:[#allocation2] ss:$0 sm:$0xff] }
0x2e01   :  { %7465 = vmatprep.mubr.msk.f32.mxu0 %vm516_vm2, %v9330_v10 }
0x2e02   :  { %7466 = vmatmul.mubr.msk.f32.vlgmr.msra.gmra.mxu0 %vm516_vm2, %v6100_v9 }
0x2e03   :  { %7469 = vmatpush3.msra.mxu0 %v6210_v53 }
0x2e04   :  { %7470 = vmatprep.subr.mxu0 %v6209_v28 }
0x2e05   :  { %7471 = vmatpush3.msra.mxu0 %v6209_v28 }
0x2e06   :  { %7472 = vmatprep.subr.mxu0 %v6208_v12 }
0x2e07   :  { %7473 = vmatpush3.msra.mxu0 %v6208_v12 }
0x2e08   :  { %7474 = vmatprep.subr.mxu0 %v6207_v32 }
0x2e09   :  { %7475 = vmatpush3.msra.mxu0 %v6207_v32 }
0x2e0a   :  { %7476 = vmatprep.subr.mxu0 %v6206_v34 }
0x2e0b   :  { %7477 = vmatpush3.msra.mxu0 %v6206_v34 }
0x2e0c   :  { %7478 = vmatprep.subr.mxu0 %v6205_v19 }
0x2e0d   :  { %7479 = vmatpush3.msra.mxu0 %v6205_v19 }
0x2e0e   :  { %7480 = vmatprep.subr.mxu0 %v6204_v48 }
0x2e0f   :  { %7481 = vmatpush3.msra.mxu0 %v6204_v48 }
0x2e10   :  { %7482 = vmatprep.subr.mxu0 %v6203_v18 }
0x2e11   :  { %7483 = vmatpush3.msra.mxu0 %v6203_v18 }
0x2e12   :  { %7484 = vmatprep.subr.mxu0 %v6202_v29 }
0x2e13   :  { %7485 = vmatpush3.msra.mxu0 %v6202_v29 }
0x2e14   :  { %7486 = vmatprep.subr.mxu0 %v6201_v0 }
0x2e15   :  { %7487 = vmatpush3.msra.mxu0 %v6201_v0 }
0x2e16   :  { %7488 = vmatprep.subr.mxu0 %v6200_v56 }
0x2e17   :  { %7489 = vmatpush3.msra.mxu0 %v6200_v56 }
0x2e18   :  { %7490 = vmatprep.subr.mxu0 %v6199_v14 }
0x2e19   :  { %7491 = vmatpush3.msra.mxu0 %v6199_v14 }
0x2e1a   :  { %7492 = vmatprep.subr.mxu0 %v6198_v61 }
0x2e1b   :  { %7493 = vmatpush3.msra.mxu0 %v6198_v61 }
0x2e1c   :  { %7494 = vmatprep.subr.mxu0 %v6197_v1 }
0x2e1d   :  { %7495 = vmatpush3.msra.mxu0 %v6197_v1 }
0x2e1e   :  { %7496 = vmatprep.subr.mxu0 %v6196_v51 }
0x2e1f   :  { %7497 = vmatpush3.msra.mxu0 %v6196_v51 }
0x2e20   :  { %7498 = vmatprep.subr.mxu0 %v6195_v15 }
0x2e21   :  { %7499 = vmatpush3.msra.mxu0 %v6195_v15 }
0x2ec2   :  { %v7467_v24 = vpop.f32.mrf.mxu0 }
0x2ec3   :  { %v6190_v43 = vadd.f32 %v7467_v24, %v6673_v8 }
0x2ec4   :  { %v6184_v45 = vpop.f32.mrf.mxu0 }
0x2ec5   :  { %v6185_v23 = vadd.f32 %v6673_v8, %v6184_v45  ;;  %v6194_v25 = vmax.f32 %v6190_v43, 0.0 }
0x2ec7   :  { %v6193_v27 = vmax.f32 %v6185_v23, 0.0 }
0x2ec9   :  { %7500 = vmatprep.mubr.f32.mxu0 %v6193_v27 }
0x2eca   :  { %7501 = vmatmul.mubr.f32.vlgmr.msra.gmra.mxu0 %v6194_v25 }
0x2f8a   :  { %v7502_v30 = vpop.f32.mrf.mxu0 }
0x2f8b   :  { %v6290_v26 = vadd.f32 %v7502_v30, %v6676_v38 }
0x2f8c   :  { %v6284_v35 = vpop.f32.mrf.mxu0 }
0x2f8d   :  { %v6294_v44 = vadd.f32 %v6290_v26, %v6100_v9  ;;  %v6285_v31 = vadd.f32 %v6676_v38, %v6284_v35 }
0x2f8f   :  { %v6293_v41 = vadd.f32 %v6285_v31, %v9330_v10  ;;  %v6298_v17 = vsel %vm516_vm2, %v6294_v44, 0.0 }
0x2f90   :  { %6299 = vadd.xlane.f32.xlu1 %v6298_v17 }
0x2f91   :  { %v6295_v16 = vsel %vm516_vm2, %v6293_v41, 0.0 }
0x2f92   :  { %6296 = vadd.xlane.f32.xlu0 %v6295_v16 }
0x3019   :  { %v6300_v46 = vpop.xlane.xlu1 %6299 }
0x301a   :  { %v6302_v39 = vmul.f32 0.03125, %v6300_v46 }
0x301b   :  { %v6297_v59 = vpop.xlane.xlu0 %6296 }
0x301c   :  { %v6304_v21 = vsub.f32 %v6294_v44, %v6302_v39  ;;  %v6301_v37 = vmul.f32 0.03125, %v6297_v59 }
0x301e   :  { %v6303_v47 = vsub.f32 %v6293_v41, %v6301_v37  ;;  %v6306_v3 = vmul.f32 %v6304_v21, %v6304_v21 }
0x3020   :  { %v6310_v62 = vsel %vm516_vm2, %v6306_v3, 0.0  ;;  %v6305_v58 = vmul.f32 %v6303_v47, %v6303_v47 }
0x3021   :  { %6311 = vadd.xlane.f32.xlu1 %v6310_v62 }
0x3022   :  { %v6307_v63 = vsel %vm516_vm2, %v6305_v58, 0.0 }
0x3023   :  { %6308 = vadd.xlane.f32.xlu0 %v6307_v63 }
0x30aa   :  { %v6312_v49 = vpop.xlane.xlu1 %6311 }
0x30ab   :  { %v6314_v40 = vmul.f32 0.03125, %v6312_v49 }
0x30ac   :  { %v6309_v53 = vpop.xlane.xlu0 %6308 }
0x30ad   :  { %v6316_v57 = vadd.f32 1e-05, %v6314_v40  ;;  %v6313_v6 = vmul.f32 0.03125, %v6309_v53 }
0x30af   :  { %7743 = vrsqrt.f32 %v6316_v57  ;;  %v6315_v55 = vadd.f32 1e-05, %v6313_v6 }
0x30b1   :  { %7745 = vrsqrt.f32 %v6315_v55 }
0x30bc   :  { %v7744_v60 = vpop.eup %7743 }
0x30bd   :  { %v6320_v52 = vmul.f32 %v7744_v60, %v6304_v21 }
0x30be   :  { %v7746_v20 = vpop.eup %7745 }
0x30bf   :  { %v6319_v36 = vmul.f32 %v7746_v20, %v6303_v47  ;;  %v6329_v54 = vmul.f32 %v6677_v50, %v6320_v52 }
0x30c1   :  { %v6328_v4 = vmul.f32 %v6677_v50, %v6319_v36  ;;  %v6338_v7 = vadd.f32 %v6678_v11, %v6329_v54 }
0x30c3   :  { %v6337_v5 = vadd.f32 %v6678_v11, %v6328_v4 }
0x30c5   :  { %7511 = vmatprep.mubr.msk.f32.mxu1 %vm516_vm2, %v6337_v5 }
0x30c6   :  { %7512 = vmatmul.mubr.msk.f32.vlgmr.msra.gmra.mxu1 %vm516_vm2, %v6338_v7 }
0x3186   :  { %v7513_v10 = vpop.f32.mrf.mxu1 }
0x3187   :  { %v6428_v9 = vadd.f32 %v7513_v10, %v6679_v2 }
0x3188   :  { %v6422_v28 = vpop.f32.mrf.mxu1 }
0x3189   :  { %v6683_v12 = vmul.f32 -1.442695, %v6428_v9  ;;  %v6423_v32 = vadd.f32 %v6679_v2, %v6422_v28 }
0x318b   :  { %7747 = vpow2.f32 %v6683_v12  ;;  %v6682_v34 = vmul.f32 -1.442695, %v6423_v32 }
0x318d   :  { %7749 = vpow2.f32 %v6682_v34 }
0x3198   :  { %v7748_v19 = vpop.eup %7747 }
0x3199   :  { %v6438_v48 = vadd.f32 1.0, %v7748_v19 }
0x319a   :  { %v7750_v18 = vpop.eup %7749 }
0x319b   :  { %7751 = vrcp.f32 %v6438_v48  ;;  %v6437_v29 = vadd.f32 1.0, %v7750_v18 }
0x319d   :  { %7753 = vrcp.f32 %v6437_v29 }
0x31a8   :  { %v7752_v0 = vpop.eup %7751 }
0x31a9   :  { %6445 = vst.msk [vmem:[%s8452_s21 + $0x8] sm:$0xff] %vm6443_vm6, %v7752_v0 }
0x31aa   :  { %v7754_v56 = vpop.eup %7753 }
0x31ab   :  { %6444 = vst.msk [vmem:[%s8452_s21] sm:$0xff] %vm6443_vm6, %v7754_v56 }
0x31ac   :  { %6450 = vsyncpa [#allocation4], 1 }
0x31ad   :  { %6451 = vsyncpa [#allocation6], 1 }
0x31ae   :  { %6452 = vsyncpa [#allocation9], 1 }
0x31af   :  { %6453 = vsyncpa [#allocation12], 1 }
0x31b0   :  { %6454 = vsyncpa [#allocation15], 1 }
0x31b1   :  { %6455 = vsyncpa [#allocation18], 1 }
0x31b2   :  { %6456 = vsyncpa [#allocation21], 1 }
0x31b3   :  { %6457 = vsyncpa [#allocation24], 1 }

</bundles_post_ra>
